<compile_context>
chip_gen: v7x
topology: tpu7x:2x2x1
jax: 0.10.0
libtpu: 0.0.40
codegen_flags: <defaults>
</compile_context>

<pallas_src>
import jax
import jax.numpy as jnp
from jax import lax
from jax.experimental import pallas as pl
from jax.experimental.pallas import tpu as pltpu

# ---- hyperparameters consistent with the module __init__ ----
DICT_NUMBER = 50   # dict_number
EMBED = 16         # embedding_size
HIDDEN = 32        # hidden_size
NUM_LABELS = 8     # num_labels
BATCH = 2
SEQ = 8

GATE_ORDER = (0, 1, 3, 2)   # kernel gate-column order: i, f, o, g (PyTorch rows are [i, f, g, o])


# =====================================================================
# Fused kernel: embedding -> biLSTM -> linear -> CRF (loss + viterbi)
# =====================================================================
def bilstm_crf_kernel(tok_ref, tags_ref, mask_ref,
                      emb_wih_ref, bgate_ref, whhf_ref, whhb_ref,
                      wcls_ref, bcls_ref,
                      trans_ref, start_ref, end_ref,
                      loss_ref, path_ref, hs_ref):
    B, T = tok_ref.shape
    V, H8 = emb_wih_ref.shape          # vocab, 8H
    H = whhf_ref.shape[0]
    H4 = 4 * H
    L = trans_ref.shape[0]
    f32 = jnp.float32
    bf16 = jnp.bfloat16

    # -------- fused embedding lookup + input->gate projection (one bf16 matmul) --------
    tok = tok_ref[...]                                                  # (B, T) int32
    tok_oh = (lax.broadcasted_iota(jnp.int32, (B, T, V), 2)
              == tok[:, :, None]).astype(f32).reshape(B * T, V)         # (B*T, V) one-hot
    xp = (jnp.dot(tok_oh.astype(bf16), emb_wih_ref[...],
                  preferred_element_type=f32)
          + bgate_ref[...]).reshape(B, T, H8)   # (B, T, 8H): [fwd i|f|o|g | bwd i|f|o|g]

    # -------- bidirectional LSTM recurrence (two dense (H, 4H) bf16 dots per step) --------
    whhf = whhf_ref[...]                                                # (H, 4H) bf16
    whhb = whhb_ref[...]                                                # (H, 4H) bf16

    h_f = jnp.zeros((B, H), f32)
    c_f = jnp.zeros((B, H), f32)
    h_b = jnp.zeros((B, H), f32)
    c_b = jnp.zeros((B, H), f32)

    def lstm_cell(gates, c):                    # gates cols: [i | f | o | g], f32
        sig = jax.nn.sigmoid(gates[:, 0:3 * H])
        i_g = sig[:, 0:H]
        f_g = sig[:, H:2 * H]
        o_g = sig[:, 2 * H:3 * H]
        g_g = jnp.tanh(gates[:, 3 * H:4 * H])
        c_new = f_g * c + i_g * g_g
        h_new = o_g * jnp.tanh(c_new)
        return h_new, c_new

    for t in range(T):                          # static unroll (T small)
        # lane-tile-aligned static slices of the precomputed projection (no per-step select)
        gates_f = xp[:, t, 0:H4] + jnp.dot(h_f.astype(bf16), whhf,
                                           preferred_element_type=f32)
        h_f, c_f = lstm_cell(gates_f, c_f)
        gates_b = xp[:, T - 1 - t, H4:2 * H4] + jnp.dot(h_b.astype(bf16), whhb,
                                                        preferred_element_type=f32)
        h_b, c_b = lstm_cell(gates_b, c_b)
        # write in original-time layout; stores are off the h/c dependency chain
        hs_ref[:, t, 0:H] = h_f
        hs_ref[:, T - 1 - t, H:2 * H] = h_b

    # -------- batched classifier: one bf16 matmul over all (b, t) --------
    hcat_all = hs_ref[...].reshape(B * T, 2 * H)                        # (B*T, 2H) f32
    em_flat = (jnp.dot(hcat_all.astype(bf16), wcls_ref[...],
                       preferred_element_type=f32)
               + bcls_ref[...])                                         # (B*T, L)
    em3 = em_flat.reshape(B, T, L)                                      # emissions (B, T, L)

    # ---------------- CRF ----------------
    trans = trans_ref[...]                                              # (L, L)
    start = start_ref[...]                                              # (1, L)
    end = end_ref[...]                                                  # (1, L)
    mask = mask_ref[...]                                                # (B, T) f32 (mask[:,0]==1)
    tags = tags_ref[...]                                                # (B, T) int32

    # hoisted iotas / broadcasts
    iota_l3 = lax.broadcasted_iota(jnp.int32, (B, T, L), 2)
    iota_t3 = lax.broadcasted_iota(jnp.int32, (B, T, L), 1)
    iota_bl = lax.broadcasted_iota(jnp.int32, (B, L), 1)
    iota_bt = lax.broadcasted_iota(jnp.int32, (B, T), 1)
    iota_src = lax.broadcasted_iota(jnp.int32, (B, L, L), 1)
    trans_b = trans[None, :, :]

    seq_len = jnp.sum(mask, axis=1, keepdims=True)                      # (B, 1)
    seq_end = seq_len.astype(jnp.int32) - 1                             # (B, 1)

    # -------- numerator: gold-path score, fully vectorized over time --------
    oh = (iota_l3 == tags[:, :, None]).astype(f32)                      # (B, T, L)
    tags_prev = jnp.concatenate([tags[:, :1], tags[:, :T - 1]], axis=1)
    ohp = ((iota_l3 == tags_prev[:, :, None]) & (iota_t3 > 0)).astype(f32)

    em_sel = jnp.sum(oh * em3 * mask[:, :, None], axis=1)               # (B, L)
    em_term = jnp.sum(em_sel, axis=1, keepdims=True)                    # (B, 1)

    # VPU transition gather: row[b,t,d] = sum_s ohp[b,t,s] * trans[s,d]   (one vreg)
    row = jnp.sum(ohp.reshape(B * T, L)[:, :, None] * trans[None, :, :], axis=1)
    tr_sel = jnp.sum((row * oh.reshape(B * T, L)).reshape(B, T, L)
                     * mask[:, :, None], axis=1)                        # (B, L)
    tr_term = jnp.sum(tr_sel, axis=1, keepdims=True)                    # (B, 1)

    start_term = jnp.sum(oh[:, 0, :] * start, axis=1, keepdims=True)    # (B, 1)
    is_last = (iota_bt == seq_end).astype(f32)                          # (B, T)
    last_oh = jnp.sum(oh * is_last[:, :, None], axis=1)                 # (B, L) last valid tag
    end_term = jnp.sum(last_oh * end, axis=1, keepdims=True)            # (B, 1)
    score = start_term + em_term + tr_term + end_term                   # (B, 1)

    # -------- fused forward algorithm (log-partition) + viterbi recursion --------
    alpha = start + em3[:, 0, :]                                        # (B, L)
    vit = alpha
    hist = []
    for t in range(1, T):
        em_t = em3[:, t, :]                                             # (B, L)
        keep = mask[:, t:t + 1] > 0.5                                   # (B, 1)

        # forward algorithm
        xa = alpha[:, :, None] + trans_b                                # (B, Lsrc, Ldst)
        ma = jnp.max(xa, axis=1)                                        # (B, L)
        nxt = ma + jnp.log(jnp.sum(jnp.exp(xa - ma[:, None, :]), axis=1)) + em_t
        alpha = jnp.where(keep, nxt, alpha)

        # viterbi
        xv = vit[:, :, None] + trans_b
        mv = jnp.max(xv, axis=1)                                        # (B, L)
        idx = jnp.min(jnp.where(xv == mv[:, None, :], iota_src, L), axis=1)   # first argmax
        hist.append(idx)
        vit = jnp.where(keep, mv + em_t, vit)

    alpha = alpha + end
    amax = jnp.max(alpha, axis=1, keepdims=True)
    logz = amax + jnp.log(jnp.sum(jnp.exp(alpha - amax), axis=1, keepdims=True))
    llh = score - logz                                                  # (B, 1)
    # reduction='mean' -> mean log-likelihood
    loss_ref[...] = jnp.sum(llh, axis=0, keepdims=True) * (1.0 / B)

    # -------- viterbi backtrace (single (B, T) store, zero-padded past seq end) --------
    vit = vit + end
    vmax = jnp.max(vit, axis=1, keepdims=True)
    tag = jnp.min(jnp.where(vit == vmax, iota_bl, L), axis=1, keepdims=True)  # (B, 1)
    pos_tags = [None] * T
    pos_tags[T - 1] = tag
    for i in range(T - 1, 0, -1):
        prev = jnp.sum(jnp.where(iota_bl == tag, hist[i - 1], 0),
                       axis=1, keepdims=True)                           # gather hist[i-1][tag]
        tag = jnp.where(i <= seq_end, prev, tag)
        pos_tags[i - 1] = tag
    path_bt = jnp.concatenate(pos_tags, axis=1)                         # (B, T)
    path_ref[...] = jnp.where(iota_bt <= seq_end, path_bt, 0)


# =====================================================================
# Parameter init (deterministic, shapes match the PyTorch module)
# =====================================================================
def init_params(key):
    ks = jax.random.split(key, 15)
    s = 0.1

    def u(k, shape):
        return jax.random.uniform(k, shape, jnp.float32, -s, s)

    return dict(
        embedding=jax.random.normal(ks[0], (DICT_NUMBER, EMBED), jnp.float32),
        w_ih_f=u(ks[1], (4 * HIDDEN, EMBED)),
        w_hh_f=u(ks[2], (4 * HIDDEN, HIDDEN)),
        b_ih_f=u(ks[3], (4 * HIDDEN,)),
        b_hh_f=u(ks[4], (4 * HIDDEN,)),
        w_ih_b=u(ks[5], (4 * HIDDEN, EMBED)),
        w_hh_b=u(ks[6], (4 * HIDDEN, HIDDEN)),
        b_ih_b=u(ks[7], (4 * HIDDEN,)),
        b_hh_b=u(ks[8], (4 * HIDDEN,)),
        w_cls=u(ks[9], (NUM_LABELS, 2 * HIDDEN)),
        b_cls=u(ks[10], (NUM_LABELS,)),
        crf_start=u(ks[11], (NUM_LABELS,)),
        crf_end=u(ks[12], (NUM_LABELS,)),
        crf_trans=u(ks[13], (NUM_LABELS, NUM_LABELS)),
    )


# One-time parameter folding: gate reorder, bias sums, emb@W_ih fold, bf16 MXU operands.
def prepare_params(p):
    H = HIDDEN
    bf16 = jnp.bfloat16

    def blk(w):                                    # (4H, X) -> 4 x (H, X), PyTorch [i,f,g,o] order
        return [w[g * H:(g + 1) * H] for g in range(4)]

    wif, wib = blk(p['w_ih_f']), blk(p['w_ih_b'])
    whf, whb = blk(p['w_hh_f']), blk(p['w_hh_b'])
    bf_ = p['b_ih_f'] + p['b_hh_f']
    bb_ = p['b_ih_b'] + p['b_hh_b']
    bfk = [bf_[g * H:(g + 1) * H] for g in range(4)]
    bbk = [bb_[g * H:(g + 1) * H] for g in range(4)]

    # per-direction column layout [i | f | o | g]; forward 4H block, then backward 4H block
    wih_f = jnp.concatenate([wif[g].T for g in GATE_ORDER], axis=1)     # (E, 4H)
    wih_b = jnp.concatenate([wib[g].T for g in GATE_ORDER], axis=1)     # (E, 4H)
    wih_cat = jnp.concatenate([wih_f, wih_b], axis=1)                   # (E, 8H)
    b_cat = jnp.concatenate([bfk[g] for g in GATE_ORDER]
                            + [bbk[g] for g in GATE_ORDER]).reshape(1, -1)  # (1, 8H)

    # fold the embedding into the input projection once: (V, E) @ (E, 8H) -> (V, 8H)
    emb_wih = jnp.dot(p['embedding'].astype(jnp.float32), wih_cat)

    whh_f = jnp.concatenate([whf[g].T for g in GATE_ORDER], axis=1)     # (H, 4H)
    whh_b = jnp.concatenate([whb[g].T for g in GATE_ORDER], axis=1)     # (H, 4H)

    return dict(
        emb_wih=emb_wih.astype(bf16),                                   # (V, 8H) bf16
        b_cat=b_cat.astype(jnp.float32),                                # (1, 8H) f32
        whh_f=whh_f.astype(bf16),                                       # (H, 4H) bf16
        whh_b=whh_b.astype(bf16),                                       # (H, 4H) bf16
        wcls_t=p['w_cls'].T.astype(bf16),                               # (2H, L) bf16
        bcls=p['b_cls'].reshape(1, -1),                                 # (1, L)  f32
        trans=p['crf_trans'],                                           # (L, L)  f32
        start=p['crf_start'].reshape(1, -1),                            # (1, L)  f32
        end=p['crf_end'].reshape(1, -1),                                # (1, L)  f32
    )


# =====================================================================
# Wrapper: one fused pallas_call, everything VMEM-resident (no grid needed)
# =====================================================================
def bilstm_crf_forward(prepped, x_tokens, y_tags, masks):
    B, T = x_tokens.shape
    vm = pl.BlockSpec(memory_space=pltpu.MemorySpace.VMEM)

    loss11, path = pl.pallas_call(
        bilstm_crf_kernel,
        out_shape=(jax.ShapeDtypeStruct((1, 1), jnp.float32),
                   jax.ShapeDtypeStruct((B, T), jnp.int32)),
        in_specs=[vm] * 12,
        out_specs=(vm, vm),
        scratch_shapes=[pltpu.VMEM((B, T, 2 * HIDDEN), jnp.float32)],   # per-time hidden states
    )(x_tokens.astype(jnp.int32), y_tags.astype(jnp.int32), masks.astype(jnp.float32),
      prepped['emb_wih'], prepped['b_cat'], prepped['whh_f'], prepped['whh_b'],
      prepped['wcls_t'], prepped['bcls'],
      prepped['trans'], prepped['start'], prepped['end'])

    # TODO(synk): torchcrf._viterbi_decode returns ragged python lists; here it is a
    # zero-padded (B, T) int32 array.
    y_pred = path                   # (B, T)
    loss = loss11[0, 0]             # mean log-likelihood (reduction='mean')
    return y_pred, loss


if __name__ == "__main__":
    key = jax.random.PRNGKey(0)
    kp, kx, ky = jax.random.split(key, 3)
    params = init_params(kp)
    prepped = prepare_params(params)                                    # one-time folding

    x = jax.random.randint(kx, (BATCH, SEQ), 0, DICT_NUMBER, jnp.int32)     # token ids
    y = jax.random.randint(ky, (BATCH, SEQ), 0, NUM_LABELS, jnp.int32)      # gold tags
    lengths = jnp.array([SEQ, SEQ - 2], jnp.int32)
    masks = jnp.arange(SEQ)[None, :] < lengths[:, None]                     # (B, T) bool, col 0 True

    fwd = jax.jit(bilstm_crf_forward)
    y_pred, loss = fwd(prepped, x, y, masks)
    jax.block_until_ready((y_pred, loss))
    print("KERNEL_OK")
</pallas_src>

<mosaic_0001>
module attributes {stable_mosaic.version = 11 : i64} {
  func.func @bilstm_crf_kernel(%arg0: memref<2x8xi32, #tpu.memory_space<vmem>>, %arg1: memref<2x8xi32, #tpu.memory_space<vmem>>, %arg2: memref<2x8xf32, #tpu.memory_space<vmem>>, %arg3: memref<50x256xbf16, #tpu.memory_space<vmem>>, %arg4: memref<1x256xf32, #tpu.memory_space<vmem>>, %arg5: memref<32x128xbf16, #tpu.memory_space<vmem>>, %arg6: memref<32x128xbf16, #tpu.memory_space<vmem>>, %arg7: memref<64x8xbf16, #tpu.memory_space<vmem>>, %arg8: memref<1x8xf32, #tpu.memory_space<vmem>>, %arg9: memref<8x8xf32, #tpu.memory_space<vmem>>, %arg10: memref<1x8xf32, #tpu.memory_space<vmem>>, %arg11: memref<1x8xf32, #tpu.memory_space<vmem>>, %arg12: memref<1x1xf32, #tpu.memory_space<vmem>>, %arg13: memref<2x8xi32, #tpu.memory_space<vmem>>, %arg14: memref<2x8x64xf32, #tpu.memory_space<vmem>>) attributes {dimension_semantics = [], scalar_prefetch = 0 : i64, scratch_operands = 1 : i64, tpu.core_type = #tpu.core_type<tc>} {
    %c0 = arith.constant 0 : index
    %c0_0 = arith.constant 0 : index
    %0 = vector.load %arg0[%c0, %c0_0] : memref<2x8xi32, #tpu.memory_space<vmem>>, vector<2x8xi32>
    %1 = tpu.iota {dimensions = array<i32: 2>} : vector<2x8x50xi32>
    %2 = vector.shape_cast %0 : vector<2x8xi32> to vector<2x8x1xi32>
    %3 = vector.broadcast %2 : vector<2x8x1xi32> to vector<2x8x50xi32>
    %4 = arith.cmpi eq, %1, %3 : vector<2x8x50xi32>
    %5 = arith.extui %4 : vector<2x8x50xi1> to vector<2x8x50xi32>
    %6 = arith.sitofp %5 : vector<2x8x50xi32> to vector<2x8x50xf32>
    %7 = vector.shape_cast %6 : vector<2x8x50xf32> to vector<16x50xf32>
    %8 = arith.truncf %7 : vector<16x50xf32> to vector<16x50xbf16>
    %c0_1 = arith.constant 0 : index
    %c0_2 = arith.constant 0 : index
    %9 = vector.load %arg3[%c0_1, %c0_2] : memref<50x256xbf16, #tpu.memory_space<vmem>>, vector<50x256xbf16>
    %cst = arith.constant dense<0.000000e+00> : vector<16x256xf32>
    %10 = tpu.matmul %8, %9, %cst {dimension_numbers = #tpu.dot_dimension_numbers<[1], [0], [0], [1], [0, 0, 1, 1], [], []>} : vector<16x50xbf16>, vector<50x256xbf16>, vector<16x256xf32> -> vector<16x256xf32>
    %c0_3 = arith.constant 0 : index
    %c0_4 = arith.constant 0 : index
    %11 = vector.load %arg4[%c0_3, %c0_4] : memref<1x256xf32, #tpu.memory_space<vmem>>, vector<1x256xf32>
    %12 = vector.broadcast %11 : vector<1x256xf32> to vector<16x256xf32>
    %13 = arith.addf %10, %12 : vector<16x256xf32>
    %14 = vector.shape_cast %13 : vector<16x256xf32> to vector<2x8x256xf32>
    %c0_5 = arith.constant 0 : index
    %c0_6 = arith.constant 0 : index
    %15 = vector.load %arg5[%c0_5, %c0_6] : memref<32x128xbf16, #tpu.memory_space<vmem>>, vector<32x128xbf16>
    %c0_7 = arith.constant 0 : index
    %c0_8 = arith.constant 0 : index
    %16 = vector.load %arg6[%c0_7, %c0_8] : memref<32x128xbf16, #tpu.memory_space<vmem>>, vector<32x128xbf16>
    %cst_9 = arith.constant 0.000000e+00 : f32
    %17 = vector.broadcast %cst_9 : f32 to vector<2x32xf32>
    %cst_10 = arith.constant 0.000000e+00 : f32
    %18 = vector.broadcast %cst_10 : f32 to vector<2x32xf32>
    %cst_11 = arith.constant 0.000000e+00 : f32
    %19 = vector.broadcast %cst_11 : f32 to vector<2x32xf32>
    %cst_12 = arith.constant 0.000000e+00 : f32
    %20 = vector.broadcast %cst_12 : f32 to vector<2x32xf32>
    %21 = vector.extract_strided_slice %14 {offsets = [0, 0, 0], sizes = [2, 1, 128], strides = [1, 1, 1]} : vector<2x8x256xf32> to vector<2x1x128xf32>
    %22 = vector.shape_cast %21 : vector<2x1x128xf32> to vector<2x128xf32>
    %23 = arith.truncf %17 : vector<2x32xf32> to vector<2x32xbf16>
    %cst_13 = arith.constant dense<0.000000e+00> : vector<2x128xf32>
    %24 = tpu.matmul %23, %15, %cst_13 {dimension_numbers = #tpu.dot_dimension_numbers<[1], [0], [0], [1], [0, 0, 1, 1], [], []>} : vector<2x32xbf16>, vector<32x128xbf16>, vector<2x128xf32> -> vector<2x128xf32>
    %25 = arith.addf %22, %24 : vector<2x128xf32>
    %26 = vector.extract_strided_slice %25 {offsets = [0, 0], sizes = [2, 96], strides = [1, 1]} : vector<2x128xf32> to vector<2x96xf32>
    %27 = arith.negf %26 : vector<2x96xf32>
    %28 = math.exp %27 : vector<2x96xf32>
    %cst_14 = arith.constant 1.000000e+00 : f32
    %29 = vector.broadcast %cst_14 : f32 to vector<2x96xf32>
    %30 = arith.addf %29, %28 : vector<2x96xf32>
    %31 = arith.divf %29, %30 : vector<2x96xf32>
    %32 = vector.extract_strided_slice %31 {offsets = [0, 0], sizes = [2, 32], strides = [1, 1]} : vector<2x96xf32> to vector<2x32xf32>
    %33 = vector.extract_strided_slice %31 {offsets = [0, 32], sizes = [2, 32], strides = [1, 1]} : vector<2x96xf32> to vector<2x32xf32>
    %34 = vector.extract_strided_slice %31 {offsets = [0, 64], sizes = [2, 32], strides = [1, 1]} : vector<2x96xf32> to vector<2x32xf32>
    %35 = vector.extract_strided_slice %25 {offsets = [0, 96], sizes = [2, 32], strides = [1, 1]} : vector<2x128xf32> to vector<2x32xf32>
    %36 = math.tanh %35 : vector<2x32xf32>
    %37 = arith.mulf %33, %18 : vector<2x32xf32>
    %38 = arith.mulf %32, %36 : vector<2x32xf32>
    %39 = arith.addf %37, %38 : vector<2x32xf32>
    %40 = math.tanh %39 : vector<2x32xf32>
    %41 = arith.mulf %34, %40 : vector<2x32xf32>
    %42 = vector.extract_strided_slice %14 {offsets = [0, 7, 128], sizes = [2, 1, 128], strides = [1, 1, 1]} : vector<2x8x256xf32> to vector<2x1x128xf32>
    %43 = vector.shape_cast %42 : vector<2x1x128xf32> to vector<2x128xf32>
    %44 = arith.truncf %19 : vector<2x32xf32> to vector<2x32xbf16>
    %cst_15 = arith.constant dense<0.000000e+00> : vector<2x128xf32>
    %45 = tpu.matmul %44, %16, %cst_15 {dimension_numbers = #tpu.dot_dimension_numbers<[1], [0], [0], [1], [0, 0, 1, 1], [], []>} : vector<2x32xbf16>, vector<32x128xbf16>, vector<2x128xf32> -> vector<2x128xf32>
    %46 = arith.addf %43, %45 : vector<2x128xf32>
    %47 = vector.extract_strided_slice %46 {offsets = [0, 0], sizes = [2, 96], strides = [1, 1]} : vector<2x128xf32> to vector<2x96xf32>
    %48 = arith.negf %47 : vector<2x96xf32>
    %49 = math.exp %48 : vector<2x96xf32>
    %cst_16 = arith.constant 1.000000e+00 : f32
    %50 = vector.broadcast %cst_16 : f32 to vector<2x96xf32>
    %51 = arith.addf %50, %49 : vector<2x96xf32>
    %52 = arith.divf %50, %51 : vector<2x96xf32>
    %53 = vector.extract_strided_slice %52 {offsets = [0, 0], sizes = [2, 32], strides = [1, 1]} : vector<2x96xf32> to vector<2x32xf32>
    %54 = vector.extract_strided_slice %52 {offsets = [0, 32], sizes = [2, 32], strides = [1, 1]} : vector<2x96xf32> to vector<2x32xf32>
    %55 = vector.extract_strided_slice %52 {offsets = [0, 64], sizes = [2, 32], strides = [1, 1]} : vector<2x96xf32> to vector<2x32xf32>
    %56 = vector.extract_strided_slice %46 {offsets = [0, 96], sizes = [2, 32], strides = [1, 1]} : vector<2x128xf32> to vector<2x32xf32>
    %57 = math.tanh %56 : vector<2x32xf32>
    %58 = arith.mulf %54, %20 : vector<2x32xf32>
    %59 = arith.mulf %53, %57 : vector<2x32xf32>
    %60 = arith.addf %58, %59 : vector<2x32xf32>
    %61 = math.tanh %60 : vector<2x32xf32>
    %62 = arith.mulf %55, %61 : vector<2x32xf32>
    %c0_17 = arith.constant 0 : index
    %c0_18 = arith.constant 0 : index
    %c0_19 = arith.constant 0 : index
    %63 = vector.load %arg14[%c0_17, %c0_18, %c0_19] : memref<2x8x64xf32, #tpu.memory_space<vmem>>, vector<2x1x32xf32>
    %64 = vector.shape_cast %63 : vector<2x1x32xf32> to vector<2x32xf32>
    %65 = vector.shape_cast %41 : vector<2x32xf32> to vector<2x1x32xf32>
    tpu.vector_store %arg14[%c0_17, %c0_18, %c0_19], %65 {strides = array<i32>} : memref<2x8x64xf32, #tpu.memory_space<vmem>>, vector<2x1x32xf32>,
    %c0_20 = arith.constant 0 : index
    %c7 = arith.constant 7 : index
    %c32 = arith.constant 32 : index
    %66 = vector.load %arg14[%c0_20, %c7, %c32] : memref<2x8x64xf32, #tpu.memory_space<vmem>>, vector<2x1x32xf32>
    %67 = vector.shape_cast %66 : vector<2x1x32xf32> to vector<2x32xf32>
    %68 = vector.shape_cast %62 : vector<2x32xf32> to vector<2x1x32xf32>
    tpu.vector_store %arg14[%c0_20, %c7, %c32], %68 {strides = array<i32>} : memref<2x8x64xf32, #tpu.memory_space<vmem>>, vector<2x1x32xf32>,
    %69 = vector.extract_strided_slice %14 {offsets = [0, 1, 0], sizes = [2, 1, 128], strides = [1, 1, 1]} : vector<2x8x256xf32> to vector<2x1x128xf32>
    %70 = vector.shape_cast %69 : vector<2x1x128xf32> to vector<2x128xf32>
    %71 = arith.truncf %41 : vector<2x32xf32> to vector<2x32xbf16>
    %cst_21 = arith.constant dense<0.000000e+00> : vector<2x128xf32>
    %72 = tpu.matmul %71, %15, %cst_21 {dimension_numbers = #tpu.dot_dimension_numbers<[1], [0], [0], [1], [0, 0, 1, 1], [], []>} : vector<2x32xbf16>, vector<32x128xbf16>, vector<2x128xf32> -> vector<2x128xf32>
    %73 = arith.addf %70, %72 : vector<2x128xf32>
    %74 = vector.extract_strided_slice %73 {offsets = [0, 0], sizes = [2, 96], strides = [1, 1]} : vector<2x128xf32> to vector<2x96xf32>
    %75 = arith.negf %74 : vector<2x96xf32>
    %76 = math.exp %75 : vector<2x96xf32>
    %cst_22 = arith.constant 1.000000e+00 : f32
    %77 = vector.broadcast %cst_22 : f32 to vector<2x96xf32>
    %78 = arith.addf %77, %76 : vector<2x96xf32>
    %79 = arith.divf %77, %78 : vector<2x96xf32>
    %80 = vector.extract_strided_slice %79 {offsets = [0, 0], sizes = [2, 32], strides = [1, 1]} : vector<2x96xf32> to vector<2x32xf32>
    %81 = vector.extract_strided_slice %79 {offsets = [0, 32], sizes = [2, 32], strides = [1, 1]} : vector<2x96xf32> to vector<2x32xf32>
    %82 = vector.extract_strided_slice %79 {offsets = [0, 64], sizes = [2, 32], strides = [1, 1]} : vector<2x96xf32> to vector<2x32xf32>
    %83 = vector.extract_strided_slice %73 {offsets = [0, 96], sizes = [2, 32], strides = [1, 1]} : vector<2x128xf32> to vector<2x32xf32>
    %84 = math.tanh %83 : vector<2x32xf32>
    %85 = arith.mulf %81, %39 : vector<2x32xf32>
    %86 = arith.mulf %80, %84 : vector<2x32xf32>
    %87 = arith.addf %85, %86 : vector<2x32xf32>
    %88 = math.tanh %87 : vector<2x32xf32>
    %89 = arith.mulf %82, %88 : vector<2x32xf32>
    %90 = vector.extract_strided_slice %14 {offsets = [0, 6, 128], sizes = [2, 1, 128], strides = [1, 1, 1]} : vector<2x8x256xf32> to vector<2x1x128xf32>
    %91 = vector.shape_cast %90 : vector<2x1x128xf32> to vector<2x128xf32>
    %92 = arith.truncf %62 : vector<2x32xf32> to vector<2x32xbf16>
    %cst_23 = arith.constant dense<0.000000e+00> : vector<2x128xf32>
    %93 = tpu.matmul %92, %16, %cst_23 {dimension_numbers = #tpu.dot_dimension_numbers<[1], [0], [0], [1], [0, 0, 1, 1], [], []>} : vector<2x32xbf16>, vector<32x128xbf16>, vector<2x128xf32> -> vector<2x128xf32>
    %94 = arith.addf %91, %93 : vector<2x128xf32>
    %95 = vector.extract_strided_slice %94 {offsets = [0, 0], sizes = [2, 96], strides = [1, 1]} : vector<2x128xf32> to vector<2x96xf32>
    %96 = arith.negf %95 : vector<2x96xf32>
    %97 = math.exp %96 : vector<2x96xf32>
    %cst_24 = arith.constant 1.000000e+00 : f32
    %98 = vector.broadcast %cst_24 : f32 to vector<2x96xf32>
    %99 = arith.addf %98, %97 : vector<2x96xf32>
    %100 = arith.divf %98, %99 : vector<2x96xf32>
    %101 = vector.extract_strided_slice %100 {offsets = [0, 0], sizes = [2, 32], strides = [1, 1]} : vector<2x96xf32> to vector<2x32xf32>
    %102 = vector.extract_strided_slice %100 {offsets = [0, 32], sizes = [2, 32], strides = [1, 1]} : vector<2x96xf32> to vector<2x32xf32>
    %103 = vector.extract_strided_slice %100 {offsets = [0, 64], sizes = [2, 32], strides = [1, 1]} : vector<2x96xf32> to vector<2x32xf32>
    %104 = vector.extract_strided_slice %94 {offsets = [0, 96], sizes = [2, 32], strides = [1, 1]} : vector<2x128xf32> to vector<2x32xf32>
    %105 = math.tanh %104 : vector<2x32xf32>
    %106 = arith.mulf %102, %60 : vector<2x32xf32>
    %107 = arith.mulf %101, %105 : vector<2x32xf32>
    %108 = arith.addf %106, %107 : vector<2x32xf32>
    %109 = math.tanh %108 : vector<2x32xf32>
    %110 = arith.mulf %103, %109 : vector<2x32xf32>
    %c0_25 = arith.constant 0 : index
    %c1 = arith.constant 1 : index
    %c0_26 = arith.constant 0 : index
    %111 = vector.load %arg14[%c0_25, %c1, %c0_26] : memref<2x8x64xf32, #tpu.memory_space<vmem>>, vector<2x1x32xf32>
    %112 = vector.shape_cast %111 : vector<2x1x32xf32> to vector<2x32xf32>
    %113 = vector.shape_cast %89 : vector<2x32xf32> to vector<2x1x32xf32>
    tpu.vector_store %arg14[%c0_25, %c1, %c0_26], %113 {strides = array<i32>} : memref<2x8x64xf32, #tpu.memory_space<vmem>>, vector<2x1x32xf32>,
    %c0_27 = arith.constant 0 : index
    %c6 = arith.constant 6 : index
    %c32_28 = arith.constant 32 : index
    %114 = vector.load %arg14[%c0_27, %c6, %c32_28] : memref<2x8x64xf32, #tpu.memory_space<vmem>>, vector<2x1x32xf32>
    %115 = vector.shape_cast %114 : vector<2x1x32xf32> to vector<2x32xf32>
    %116 = vector.shape_cast %110 : vector<2x32xf32> to vector<2x1x32xf32>
    tpu.vector_store %arg14[%c0_27, %c6, %c32_28], %116 {strides = array<i32>} : memref<2x8x64xf32, #tpu.memory_space<vmem>>, vector<2x1x32xf32>,
    %117 = vector.extract_strided_slice %14 {offsets = [0, 2, 0], sizes = [2, 1, 128], strides = [1, 1, 1]} : vector<2x8x256xf32> to vector<2x1x128xf32>
    %118 = vector.shape_cast %117 : vector<2x1x128xf32> to vector<2x128xf32>
    %119 = arith.truncf %89 : vector<2x32xf32> to vector<2x32xbf16>
    %cst_29 = arith.constant dense<0.000000e+00> : vector<2x128xf32>
    %120 = tpu.matmul %119, %15, %cst_29 {dimension_numbers = #tpu.dot_dimension_numbers<[1], [0], [0], [1], [0, 0, 1, 1], [], []>} : vector<2x32xbf16>, vector<32x128xbf16>, vector<2x128xf32> -> vector<2x128xf32>
    %121 = arith.addf %118, %120 : vector<2x128xf32>
    %122 = vector.extract_strided_slice %121 {offsets = [0, 0], sizes = [2, 96], strides = [1, 1]} : vector<2x128xf32> to vector<2x96xf32>
    %123 = arith.negf %122 : vector<2x96xf32>
    %124 = math.exp %123 : vector<2x96xf32>
    %cst_30 = arith.constant 1.000000e+00 : f32
    %125 = vector.broadcast %cst_30 : f32 to vector<2x96xf32>
    %126 = arith.addf %125, %124 : vector<2x96xf32>
    %127 = arith.divf %125, %126 : vector<2x96xf32>
    %128 = vector.extract_strided_slice %127 {offsets = [0, 0], sizes = [2, 32], strides = [1, 1]} : vector<2x96xf32> to vector<2x32xf32>
    %129 = vector.extract_strided_slice %127 {offsets = [0, 32], sizes = [2, 32], strides = [1, 1]} : vector<2x96xf32> to vector<2x32xf32>
    %130 = vector.extract_strided_slice %127 {offsets = [0, 64], sizes = [2, 32], strides = [1, 1]} : vector<2x96xf32> to vector<2x32xf32>
    %131 = vector.extract_strided_slice %121 {offsets = [0, 96], sizes = [2, 32], strides = [1, 1]} : vector<2x128xf32> to vector<2x32xf32>
    %132 = math.tanh %131 : vector<2x32xf32>
    %133 = arith.mulf %129, %87 : vector<2x32xf32>
    %134 = arith.mulf %128, %132 : vector<2x32xf32>
    %135 = arith.addf %133, %134 : vector<2x32xf32>
    %136 = math.tanh %135 : vector<2x32xf32>
    %137 = arith.mulf %130, %136 : vector<2x32xf32>
    %138 = vector.extract_strided_slice %14 {offsets = [0, 5, 128], sizes = [2, 1, 128], strides = [1, 1, 1]} : vector<2x8x256xf32> to vector<2x1x128xf32>
    %139 = vector.shape_cast %138 : vector<2x1x128xf32> to vector<2x128xf32>
    %140 = arith.truncf %110 : vector<2x32xf32> to vector<2x32xbf16>
    %cst_31 = arith.constant dense<0.000000e+00> : vector<2x128xf32>
    %141 = tpu.matmul %140, %16, %cst_31 {dimension_numbers = #tpu.dot_dimension_numbers<[1], [0], [0], [1], [0, 0, 1, 1], [], []>} : vector<2x32xbf16>, vector<32x128xbf16>, vector<2x128xf32> -> vector<2x128xf32>
    %142 = arith.addf %139, %141 : vector<2x128xf32>
    %143 = vector.extract_strided_slice %142 {offsets = [0, 0], sizes = [2, 96], strides = [1, 1]} : vector<2x128xf32> to vector<2x96xf32>
    %144 = arith.negf %143 : vector<2x96xf32>
    %145 = math.exp %144 : vector<2x96xf32>
    %cst_32 = arith.constant 1.000000e+00 : f32
    %146 = vector.broadcast %cst_32 : f32 to vector<2x96xf32>
    %147 = arith.addf %146, %145 : vector<2x96xf32>
    %148 = arith.divf %146, %147 : vector<2x96xf32>
    %149 = vector.extract_strided_slice %148 {offsets = [0, 0], sizes = [2, 32], strides = [1, 1]} : vector<2x96xf32> to vector<2x32xf32>
    %150 = vector.extract_strided_slice %148 {offsets = [0, 32], sizes = [2, 32], strides = [1, 1]} : vector<2x96xf32> to vector<2x32xf32>
    %151 = vector.extract_strided_slice %148 {offsets = [0, 64], sizes = [2, 32], strides = [1, 1]} : vector<2x96xf32> to vector<2x32xf32>
    %152 = vector.extract_strided_slice %142 {offsets = [0, 96], sizes = [2, 32], strides = [1, 1]} : vector<2x128xf32> to vector<2x32xf32>
    %153 = math.tanh %152 : vector<2x32xf32>
    %154 = arith.mulf %150, %108 : vector<2x32xf32>
    %155 = arith.mulf %149, %153 : vector<2x32xf32>
    %156 = arith.addf %154, %155 : vector<2x32xf32>
    %157 = math.tanh %156 : vector<2x32xf32>
    %158 = arith.mulf %151, %157 : vector<2x32xf32>
    %c0_33 = arith.constant 0 : index
    %c2 = arith.constant 2 : index
    %c0_34 = arith.constant 0 : index
    %159 = vector.load %arg14[%c0_33, %c2, %c0_34] : memref<2x8x64xf32, #tpu.memory_space<vmem>>, vector<2x1x32xf32>
    %160 = vector.shape_cast %159 : vector<2x1x32xf32> to vector<2x32xf32>
    %161 = vector.shape_cast %137 : vector<2x32xf32> to vector<2x1x32xf32>
    tpu.vector_store %arg14[%c0_33, %c2, %c0_34], %161 {strides = array<i32>} : memref<2x8x64xf32, #tpu.memory_space<vmem>>, vector<2x1x32xf32>,
    %c0_35 = arith.constant 0 : index
    %c5 = arith.constant 5 : index
    %c32_36 = arith.constant 32 : index
    %162 = vector.load %arg14[%c0_35, %c5, %c32_36] : memref<2x8x64xf32, #tpu.memory_space<vmem>>, vector<2x1x32xf32>
    %163 = vector.shape_cast %162 : vector<2x1x32xf32> to vector<2x32xf32>
    %164 = vector.shape_cast %158 : vector<2x32xf32> to vector<2x1x32xf32>
    tpu.vector_store %arg14[%c0_35, %c5, %c32_36], %164 {strides = array<i32>} : memref<2x8x64xf32, #tpu.memory_space<vmem>>, vector<2x1x32xf32>,
    %165 = vector.extract_strided_slice %14 {offsets = [0, 3, 0], sizes = [2, 1, 128], strides = [1, 1, 1]} : vector<2x8x256xf32> to vector<2x1x128xf32>
    %166 = vector.shape_cast %165 : vector<2x1x128xf32> to vector<2x128xf32>
    %167 = arith.truncf %137 : vector<2x32xf32> to vector<2x32xbf16>
    %cst_37 = arith.constant dense<0.000000e+00> : vector<2x128xf32>
    %168 = tpu.matmul %167, %15, %cst_37 {dimension_numbers = #tpu.dot_dimension_numbers<[1], [0], [0], [1], [0, 0, 1, 1], [], []>} : vector<2x32xbf16>, vector<32x128xbf16>, vector<2x128xf32> -> vector<2x128xf32>
    %169 = arith.addf %166, %168 : vector<2x128xf32>
    %170 = vector.extract_strided_slice %169 {offsets = [0, 0], sizes = [2, 96], strides = [1, 1]} : vector<2x128xf32> to vector<2x96xf32>
    %171 = arith.negf %170 : vector<2x96xf32>
    %172 = math.exp %171 : vector<2x96xf32>
    %cst_38 = arith.constant 1.000000e+00 : f32
    %173 = vector.broadcast %cst_38 : f32 to vector<2x96xf32>
    %174 = arith.addf %173, %172 : vector<2x96xf32>
    %175 = arith.divf %173, %174 : vector<2x96xf32>
    %176 = vector.extract_strided_slice %175 {offsets = [0, 0], sizes = [2, 32], strides = [1, 1]} : vector<2x96xf32> to vector<2x32xf32>
    %177 = vector.extract_strided_slice %175 {offsets = [0, 32], sizes = [2, 32], strides = [1, 1]} : vector<2x96xf32> to vector<2x32xf32>
    %178 = vector.extract_strided_slice %175 {offsets = [0, 64], sizes = [2, 32], strides = [1, 1]} : vector<2x96xf32> to vector<2x32xf32>
    %179 = vector.extract_strided_slice %169 {offsets = [0, 96], sizes = [2, 32], strides = [1, 1]} : vector<2x128xf32> to vector<2x32xf32>
    %180 = math.tanh %179 : vector<2x32xf32>
    %181 = arith.mulf %177, %135 : vector<2x32xf32>
    %182 = arith.mulf %176, %180 : vector<2x32xf32>
    %183 = arith.addf %181, %182 : vector<2x32xf32>
    %184 = math.tanh %183 : vector<2x32xf32>
    %185 = arith.mulf %178, %184 : vector<2x32xf32>
    %186 = vector.extract_strided_slice %14 {offsets = [0, 4, 128], sizes = [2, 1, 128], strides = [1, 1, 1]} : vector<2x8x256xf32> to vector<2x1x128xf32>
    %187 = vector.shape_cast %186 : vector<2x1x128xf32> to vector<2x128xf32>
    %188 = arith.truncf %158 : vector<2x32xf32> to vector<2x32xbf16>
    %cst_39 = arith.constant dense<0.000000e+00> : vector<2x128xf32>
    %189 = tpu.matmul %188, %16, %cst_39 {dimension_numbers = #tpu.dot_dimension_numbers<[1], [0], [0], [1], [0, 0, 1, 1], [], []>} : vector<2x32xbf16>, vector<32x128xbf16>, vector<2x128xf32> -> vector<2x128xf32>
    %190 = arith.addf %187, %189 : vector<2x128xf32>
    %191 = vector.extract_strided_slice %190 {offsets = [0, 0], sizes = [2, 96], strides = [1, 1]} : vector<2x128xf32> to vector<2x96xf32>
    %192 = arith.negf %191 : vector<2x96xf32>
    %193 = math.exp %192 : vector<2x96xf32>
    %cst_40 = arith.constant 1.000000e+00 : f32
    %194 = vector.broadcast %cst_40 : f32 to vector<2x96xf32>
    %195 = arith.addf %194, %193 : vector<2x96xf32>
    %196 = arith.divf %194, %195 : vector<2x96xf32>
    %197 = vector.extract_strided_slice %196 {offsets = [0, 0], sizes = [2, 32], strides = [1, 1]} : vector<2x96xf32> to vector<2x32xf32>
    %198 = vector.extract_strided_slice %196 {offsets = [0, 32], sizes = [2, 32], strides = [1, 1]} : vector<2x96xf32> to vector<2x32xf32>
    %199 = vector.extract_strided_slice %196 {offsets = [0, 64], sizes = [2, 32], strides = [1, 1]} : vector<2x96xf32> to vector<2x32xf32>
    %200 = vector.extract_strided_slice %190 {offsets = [0, 96], sizes = [2, 32], strides = [1, 1]} : vector<2x128xf32> to vector<2x32xf32>
    %201 = math.tanh %200 : vector<2x32xf32>
    %202 = arith.mulf %198, %156 : vector<2x32xf32>
    %203 = arith.mulf %197, %201 : vector<2x32xf32>
    %204 = arith.addf %202, %203 : vector<2x32xf32>
    %205 = math.tanh %204 : vector<2x32xf32>
    %206 = arith.mulf %199, %205 : vector<2x32xf32>
    %c0_41 = arith.constant 0 : index
    %c3 = arith.constant 3 : index
    %c0_42 = arith.constant 0 : index
    %207 = vector.load %arg14[%c0_41, %c3, %c0_42] : memref<2x8x64xf32, #tpu.memory_space<vmem>>, vector<2x1x32xf32>
    %208 = vector.shape_cast %207 : vector<2x1x32xf32> to vector<2x32xf32>
    %209 = vector.shape_cast %185 : vector<2x32xf32> to vector<2x1x32xf32>
    tpu.vector_store %arg14[%c0_41, %c3, %c0_42], %209 {strides = array<i32>} : memref<2x8x64xf32, #tpu.memory_space<vmem>>, vector<2x1x32xf32>,
    %c0_43 = arith.constant 0 : index
    %c4 = arith.constant 4 : index
    %c32_44 = arith.constant 32 : index
    %210 = vector.load %arg14[%c0_43, %c4, %c32_44] : memref<2x8x64xf32, #tpu.memory_space<vmem>>, vector<2x1x32xf32>
    %211 = vector.shape_cast %210 : vector<2x1x32xf32> to vector<2x32xf32>
    %212 = vector.shape_cast %206 : vector<2x32xf32> to vector<2x1x32xf32>
    tpu.vector_store %arg14[%c0_43, %c4, %c32_44], %212 {strides = array<i32>} : memref<2x8x64xf32, #tpu.memory_space<vmem>>, vector<2x1x32xf32>,
    %213 = vector.extract_strided_slice %14 {offsets = [0, 4, 0], sizes = [2, 1, 128], strides = [1, 1, 1]} : vector<2x8x256xf32> to vector<2x1x128xf32>
    %214 = vector.shape_cast %213 : vector<2x1x128xf32> to vector<2x128xf32>
    %215 = arith.truncf %185 : vector<2x32xf32> to vector<2x32xbf16>
    %cst_45 = arith.constant dense<0.000000e+00> : vector<2x128xf32>
    %216 = tpu.matmul %215, %15, %cst_45 {dimension_numbers = #tpu.dot_dimension_numbers<[1], [0], [0], [1], [0, 0, 1, 1], [], []>} : vector<2x32xbf16>, vector<32x128xbf16>, vector<2x128xf32> -> vector<2x128xf32>
    %217 = arith.addf %214, %216 : vector<2x128xf32>
    %218 = vector.extract_strided_slice %217 {offsets = [0, 0], sizes = [2, 96], strides = [1, 1]} : vector<2x128xf32> to vector<2x96xf32>
    %219 = arith.negf %218 : vector<2x96xf32>
    %220 = math.exp %219 : vector<2x96xf32>
    %cst_46 = arith.constant 1.000000e+00 : f32
    %221 = vector.broadcast %cst_46 : f32 to vector<2x96xf32>
    %222 = arith.addf %221, %220 : vector<2x96xf32>
    %223 = arith.divf %221, %222 : vector<2x96xf32>
    %224 = vector.extract_strided_slice %223 {offsets = [0, 0], sizes = [2, 32], strides = [1, 1]} : vector<2x96xf32> to vector<2x32xf32>
    %225 = vector.extract_strided_slice %223 {offsets = [0, 32], sizes = [2, 32], strides = [1, 1]} : vector<2x96xf32> to vector<2x32xf32>
    %226 = vector.extract_strided_slice %223 {offsets = [0, 64], sizes = [2, 32], strides = [1, 1]} : vector<2x96xf32> to vector<2x32xf32>
    %227 = vector.extract_strided_slice %217 {offsets = [0, 96], sizes = [2, 32], strides = [1, 1]} : vector<2x128xf32> to vector<2x32xf32>
    %228 = math.tanh %227 : vector<2x32xf32>
    %229 = arith.mulf %225, %183 : vector<2x32xf32>
    %230 = arith.mulf %224, %228 : vector<2x32xf32>
    %231 = arith.addf %229, %230 : vector<2x32xf32>
    %232 = math.tanh %231 : vector<2x32xf32>
    %233 = arith.mulf %226, %232 : vector<2x32xf32>
    %234 = vector.extract_strided_slice %14 {offsets = [0, 3, 128], sizes = [2, 1, 128], strides = [1, 1, 1]} : vector<2x8x256xf32> to vector<2x1x128xf32>
    %235 = vector.shape_cast %234 : vector<2x1x128xf32> to vector<2x128xf32>
    %236 = arith.truncf %206 : vector<2x32xf32> to vector<2x32xbf16>
    %cst_47 = arith.constant dense<0.000000e+00> : vector<2x128xf32>
    %237 = tpu.matmul %236, %16, %cst_47 {dimension_numbers = #tpu.dot_dimension_numbers<[1], [0], [0], [1], [0, 0, 1, 1], [], []>} : vector<2x32xbf16>, vector<32x128xbf16>, vector<2x128xf32> -> vector<2x128xf32>
    %238 = arith.addf %235, %237 : vector<2x128xf32>
    %239 = vector.extract_strided_slice %238 {offsets = [0, 0], sizes = [2, 96], strides = [1, 1]} : vector<2x128xf32> to vector<2x96xf32>
    %240 = arith.negf %239 : vector<2x96xf32>
    %241 = math.exp %240 : vector<2x96xf32>
    %cst_48 = arith.constant 1.000000e+00 : f32
    %242 = vector.broadcast %cst_48 : f32 to vector<2x96xf32>
    %243 = arith.addf %242, %241 : vector<2x96xf32>
    %244 = arith.divf %242, %243 : vector<2x96xf32>
    %245 = vector.extract_strided_slice %244 {offsets = [0, 0], sizes = [2, 32], strides = [1, 1]} : vector<2x96xf32> to vector<2x32xf32>
    %246 = vector.extract_strided_slice %244 {offsets = [0, 32], sizes = [2, 32], strides = [1, 1]} : vector<2x96xf32> to vector<2x32xf32>
    %247 = vector.extract_strided_slice %244 {offsets = [0, 64], sizes = [2, 32], strides = [1, 1]} : vector<2x96xf32> to vector<2x32xf32>
    %248 = vector.extract_strided_slice %238 {offsets = [0, 96], sizes = [2, 32], strides = [1, 1]} : vector<2x128xf32> to vector<2x32xf32>
    %249 = math.tanh %248 : vector<2x32xf32>
    %250 = arith.mulf %246, %204 : vector<2x32xf32>
    %251 = arith.mulf %245, %249 : vector<2x32xf32>
    %252 = arith.addf %250, %251 : vector<2x32xf32>
    %253 = math.tanh %252 : vector<2x32xf32>
    %254 = arith.mulf %247, %253 : vector<2x32xf32>
    %c0_49 = arith.constant 0 : index
    %c4_50 = arith.constant 4 : index
    %c0_51 = arith.constant 0 : index
    %255 = vector.load %arg14[%c0_49, %c4_50, %c0_51] : memref<2x8x64xf32, #tpu.memory_space<vmem>>, vector<2x1x32xf32>
    %256 = vector.shape_cast %255 : vector<2x1x32xf32> to vector<2x32xf32>
    %257 = vector.shape_cast %233 : vector<2x32xf32> to vector<2x1x32xf32>
    tpu.vector_store %arg14[%c0_49, %c4_50, %c0_51], %257 {strides = array<i32>} : memref<2x8x64xf32, #tpu.memory_space<vmem>>, vector<2x1x32xf32>,
    %c0_52 = arith.constant 0 : index
    %c3_53 = arith.constant 3 : index
    %c32_54 = arith.constant 32 : index
    %258 = vector.load %arg14[%c0_52, %c3_53, %c32_54] : memref<2x8x64xf32, #tpu.memory_space<vmem>>, vector<2x1x32xf32>
    %259 = vector.shape_cast %258 : vector<2x1x32xf32> to vector<2x32xf32>
    %260 = vector.shape_cast %254 : vector<2x32xf32> to vector<2x1x32xf32>
    tpu.vector_store %arg14[%c0_52, %c3_53, %c32_54], %260 {strides = array<i32>} : memref<2x8x64xf32, #tpu.memory_space<vmem>>, vector<2x1x32xf32>,
    %261 = vector.extract_strided_slice %14 {offsets = [0, 5, 0], sizes = [2, 1, 128], strides = [1, 1, 1]} : vector<2x8x256xf32> to vector<2x1x128xf32>
    %262 = vector.shape_cast %261 : vector<2x1x128xf32> to vector<2x128xf32>
    %263 = arith.truncf %233 : vector<2x32xf32> to vector<2x32xbf16>
    %cst_55 = arith.constant dense<0.000000e+00> : vector<2x128xf32>
    %264 = tpu.matmul %263, %15, %cst_55 {dimension_numbers = #tpu.dot_dimension_numbers<[1], [0], [0], [1], [0, 0, 1, 1], [], []>} : vector<2x32xbf16>, vector<32x128xbf16>, vector<2x128xf32> -> vector<2x128xf32>
    %265 = arith.addf %262, %264 : vector<2x128xf32>
    %266 = vector.extract_strided_slice %265 {offsets = [0, 0], sizes = [2, 96], strides = [1, 1]} : vector<2x128xf32> to vector<2x96xf32>
    %267 = arith.negf %266 : vector<2x96xf32>
    %268 = math.exp %267 : vector<2x96xf32>
    %cst_56 = arith.constant 1.000000e+00 : f32
    %269 = vector.broadcast %cst_56 : f32 to vector<2x96xf32>
    %270 = arith.addf %269, %268 : vector<2x96xf32>
    %271 = arith.divf %269, %270 : vector<2x96xf32>
    %272 = vector.extract_strided_slice %271 {offsets = [0, 0], sizes = [2, 32], strides = [1, 1]} : vector<2x96xf32> to vector<2x32xf32>
    %273 = vector.extract_strided_slice %271 {offsets = [0, 32], sizes = [2, 32], strides = [1, 1]} : vector<2x96xf32> to vector<2x32xf32>
    %274 = vector.extract_strided_slice %271 {offsets = [0, 64], sizes = [2, 32], strides = [1, 1]} : vector<2x96xf32> to vector<2x32xf32>
    %275 = vector.extract_strided_slice %265 {offsets = [0, 96], sizes = [2, 32], strides = [1, 1]} : vector<2x128xf32> to vector<2x32xf32>
    %276 = math.tanh %275 : vector<2x32xf32>
    %277 = arith.mulf %273, %231 : vector<2x32xf32>
    %278 = arith.mulf %272, %276 : vector<2x32xf32>
    %279 = arith.addf %277, %278 : vector<2x32xf32>
    %280 = math.tanh %279 : vector<2x32xf32>
    %281 = arith.mulf %274, %280 : vector<2x32xf32>
    %282 = vector.extract_strided_slice %14 {offsets = [0, 2, 128], sizes = [2, 1, 128], strides = [1, 1, 1]} : vector<2x8x256xf32> to vector<2x1x128xf32>
    %283 = vector.shape_cast %282 : vector<2x1x128xf32> to vector<2x128xf32>
    %284 = arith.truncf %254 : vector<2x32xf32> to vector<2x32xbf16>
    %cst_57 = arith.constant dense<0.000000e+00> : vector<2x128xf32>
    %285 = tpu.matmul %284, %16, %cst_57 {dimension_numbers = #tpu.dot_dimension_numbers<[1], [0], [0], [1], [0, 0, 1, 1], [], []>} : vector<2x32xbf16>, vector<32x128xbf16>, vector<2x128xf32> -> vector<2x128xf32>
    %286 = arith.addf %283, %285 : vector<2x128xf32>
    %287 = vector.extract_strided_slice %286 {offsets = [0, 0], sizes = [2, 96], strides = [1, 1]} : vector<2x128xf32> to vector<2x96xf32>
    %288 = arith.negf %287 : vector<2x96xf32>
    %289 = math.exp %288 : vector<2x96xf32>
    %cst_58 = arith.constant 1.000000e+00 : f32
    %290 = vector.broadcast %cst_58 : f32 to vector<2x96xf32>
    %291 = arith.addf %290, %289 : vector<2x96xf32>
    %292 = arith.divf %290, %291 : vector<2x96xf32>
    %293 = vector.extract_strided_slice %292 {offsets = [0, 0], sizes = [2, 32], strides = [1, 1]} : vector<2x96xf32> to vector<2x32xf32>
    %294 = vector.extract_strided_slice %292 {offsets = [0, 32], sizes = [2, 32], strides = [1, 1]} : vector<2x96xf32> to vector<2x32xf32>
    %295 = vector.extract_strided_slice %292 {offsets = [0, 64], sizes = [2, 32], strides = [1, 1]} : vector<2x96xf32> to vector<2x32xf32>
    %296 = vector.extract_strided_slice %286 {offsets = [0, 96], sizes = [2, 32], strides = [1, 1]} : vector<2x128xf32> to vector<2x32xf32>
    %297 = math.tanh %296 : vector<2x32xf32>
    %298 = arith.mulf %294, %252 : vector<2x32xf32>
    %299 = arith.mulf %293, %297 : vector<2x32xf32>
    %300 = arith.addf %298, %299 : vector<2x32xf32>
    %301 = math.tanh %300 : vector<2x32xf32>
    %302 = arith.mulf %295, %301 : vector<2x32xf32>
    %c0_59 = arith.constant 0 : index
    %c5_60 = arith.constant 5 : index
    %c0_61 = arith.constant 0 : index
    %303 = vector.load %arg14[%c0_59, %c5_60, %c0_61] : memref<2x8x64xf32, #tpu.memory_space<vmem>>, vector<2x1x32xf32>
    %304 = vector.shape_cast %303 : vector<2x1x32xf32> to vector<2x32xf32>
    %305 = vector.shape_cast %281 : vector<2x32xf32> to vector<2x1x32xf32>
    tpu.vector_store %arg14[%c0_59, %c5_60, %c0_61], %305 {strides = array<i32>} : memref<2x8x64xf32, #tpu.memory_space<vmem>>, vector<2x1x32xf32>,
    %c0_62 = arith.constant 0 : index
    %c2_63 = arith.constant 2 : index
    %c32_64 = arith.constant 32 : index
    %306 = vector.load %arg14[%c0_62, %c2_63, %c32_64] : memref<2x8x64xf32, #tpu.memory_space<vmem>>, vector<2x1x32xf32>
    %307 = vector.shape_cast %306 : vector<2x1x32xf32> to vector<2x32xf32>
    %308 = vector.shape_cast %302 : vector<2x32xf32> to vector<2x1x32xf32>
    tpu.vector_store %arg14[%c0_62, %c2_63, %c32_64], %308 {strides = array<i32>} : memref<2x8x64xf32, #tpu.memory_space<vmem>>, vector<2x1x32xf32>,
    %309 = vector.extract_strided_slice %14 {offsets = [0, 6, 0], sizes = [2, 1, 128], strides = [1, 1, 1]} : vector<2x8x256xf32> to vector<2x1x128xf32>
    %310 = vector.shape_cast %309 : vector<2x1x128xf32> to vector<2x128xf32>
    %311 = arith.truncf %281 : vector<2x32xf32> to vector<2x32xbf16>
    %cst_65 = arith.constant dense<0.000000e+00> : vector<2x128xf32>
    %312 = tpu.matmul %311, %15, %cst_65 {dimension_numbers = #tpu.dot_dimension_numbers<[1], [0], [0], [1], [0, 0, 1, 1], [], []>} : vector<2x32xbf16>, vector<32x128xbf16>, vector<2x128xf32> -> vector<2x128xf32>
    %313 = arith.addf %310, %312 : vector<2x128xf32>
    %314 = vector.extract_strided_slice %313 {offsets = [0, 0], sizes = [2, 96], strides = [1, 1]} : vector<2x128xf32> to vector<2x96xf32>
    %315 = arith.negf %314 : vector<2x96xf32>
    %316 = math.exp %315 : vector<2x96xf32>
    %cst_66 = arith.constant 1.000000e+00 : f32
    %317 = vector.broadcast %cst_66 : f32 to vector<2x96xf32>
    %318 = arith.addf %317, %316 : vector<2x96xf32>
    %319 = arith.divf %317, %318 : vector<2x96xf32>
    %320 = vector.extract_strided_slice %319 {offsets = [0, 0], sizes = [2, 32], strides = [1, 1]} : vector<2x96xf32> to vector<2x32xf32>
    %321 = vector.extract_strided_slice %319 {offsets = [0, 32], sizes = [2, 32], strides = [1, 1]} : vector<2x96xf32> to vector<2x32xf32>
    %322 = vector.extract_strided_slice %319 {offsets = [0, 64], sizes = [2, 32], strides = [1, 1]} : vector<2x96xf32> to vector<2x32xf32>
    %323 = vector.extract_strided_slice %313 {offsets = [0, 96], sizes = [2, 32], strides = [1, 1]} : vector<2x128xf32> to vector<2x32xf32>
    %324 = math.tanh %323 : vector<2x32xf32>
    %325 = arith.mulf %321, %279 : vector<2x32xf32>
    %326 = arith.mulf %320, %324 : vector<2x32xf32>
    %327 = arith.addf %325, %326 : vector<2x32xf32>
    %328 = math.tanh %327 : vector<2x32xf32>
    %329 = arith.mulf %322, %328 : vector<2x32xf32>
    %330 = vector.extract_strided_slice %14 {offsets = [0, 1, 128], sizes = [2, 1, 128], strides = [1, 1, 1]} : vector<2x8x256xf32> to vector<2x1x128xf32>
    %331 = vector.shape_cast %330 : vector<2x1x128xf32> to vector<2x128xf32>
    %332 = arith.truncf %302 : vector<2x32xf32> to vector<2x32xbf16>
    %cst_67 = arith.constant dense<0.000000e+00> : vector<2x128xf32>
    %333 = tpu.matmul %332, %16, %cst_67 {dimension_numbers = #tpu.dot_dimension_numbers<[1], [0], [0], [1], [0, 0, 1, 1], [], []>} : vector<2x32xbf16>, vector<32x128xbf16>, vector<2x128xf32> -> vector<2x128xf32>
    %334 = arith.addf %331, %333 : vector<2x128xf32>
    %335 = vector.extract_strided_slice %334 {offsets = [0, 0], sizes = [2, 96], strides = [1, 1]} : vector<2x128xf32> to vector<2x96xf32>
    %336 = arith.negf %335 : vector<2x96xf32>
    %337 = math.exp %336 : vector<2x96xf32>
    %cst_68 = arith.constant 1.000000e+00 : f32
    %338 = vector.broadcast %cst_68 : f32 to vector<2x96xf32>
    %339 = arith.addf %338, %337 : vector<2x96xf32>
    %340 = arith.divf %338, %339 : vector<2x96xf32>
    %341 = vector.extract_strided_slice %340 {offsets = [0, 0], sizes = [2, 32], strides = [1, 1]} : vector<2x96xf32> to vector<2x32xf32>
    %342 = vector.extract_strided_slice %340 {offsets = [0, 32], sizes = [2, 32], strides = [1, 1]} : vector<2x96xf32> to vector<2x32xf32>
    %343 = vector.extract_strided_slice %340 {offsets = [0, 64], sizes = [2, 32], strides = [1, 1]} : vector<2x96xf32> to vector<2x32xf32>
    %344 = vector.extract_strided_slice %334 {offsets = [0, 96], sizes = [2, 32], strides = [1, 1]} : vector<2x128xf32> to vector<2x32xf32>
    %345 = math.tanh %344 : vector<2x32xf32>
    %346 = arith.mulf %342, %300 : vector<2x32xf32>
    %347 = arith.mulf %341, %345 : vector<2x32xf32>
    %348 = arith.addf %346, %347 : vector<2x32xf32>
    %349 = math.tanh %348 : vector<2x32xf32>
    %350 = arith.mulf %343, %349 : vector<2x32xf32>
    %c0_69 = arith.constant 0 : index
    %c6_70 = arith.constant 6 : index
    %c0_71 = arith.constant 0 : index
    %351 = vector.load %arg14[%c0_69, %c6_70, %c0_71] : memref<2x8x64xf32, #tpu.memory_space<vmem>>, vector<2x1x32xf32>
    %352 = vector.shape_cast %351 : vector<2x1x32xf32> to vector<2x32xf32>
    %353 = vector.shape_cast %329 : vector<2x32xf32> to vector<2x1x32xf32>
    tpu.vector_store %arg14[%c0_69, %c6_70, %c0_71], %353 {strides = array<i32>} : memref<2x8x64xf32, #tpu.memory_space<vmem>>, vector<2x1x32xf32>,
    %c0_72 = arith.constant 0 : index
    %c1_73 = arith.constant 1 : index
    %c32_74 = arith.constant 32 : index
    %354 = vector.load %arg14[%c0_72, %c1_73, %c32_74] : memref<2x8x64xf32, #tpu.memory_space<vmem>>, vector<2x1x32xf32>
    %355 = vector.shape_cast %354 : vector<2x1x32xf32> to vector<2x32xf32>
    %356 = vector.shape_cast %350 : vector<2x32xf32> to vector<2x1x32xf32>
    tpu.vector_store %arg14[%c0_72, %c1_73, %c32_74], %356 {strides = array<i32>} : memref<2x8x64xf32, #tpu.memory_space<vmem>>, vector<2x1x32xf32>,
    %357 = vector.extract_strided_slice %14 {offsets = [0, 7, 0], sizes = [2, 1, 128], strides = [1, 1, 1]} : vector<2x8x256xf32> to vector<2x1x128xf32>
    %358 = vector.shape_cast %357 : vector<2x1x128xf32> to vector<2x128xf32>
    %359 = arith.truncf %329 : vector<2x32xf32> to vector<2x32xbf16>
    %cst_75 = arith.constant dense<0.000000e+00> : vector<2x128xf32>
    %360 = tpu.matmul %359, %15, %cst_75 {dimension_numbers = #tpu.dot_dimension_numbers<[1], [0], [0], [1], [0, 0, 1, 1], [], []>} : vector<2x32xbf16>, vector<32x128xbf16>, vector<2x128xf32> -> vector<2x128xf32>
    %361 = arith.addf %358, %360 : vector<2x128xf32>
    %362 = vector.extract_strided_slice %361 {offsets = [0, 0], sizes = [2, 96], strides = [1, 1]} : vector<2x128xf32> to vector<2x96xf32>
    %363 = arith.negf %362 : vector<2x96xf32>
    %364 = math.exp %363 : vector<2x96xf32>
    %cst_76 = arith.constant 1.000000e+00 : f32
    %365 = vector.broadcast %cst_76 : f32 to vector<2x96xf32>
    %366 = arith.addf %365, %364 : vector<2x96xf32>
    %367 = arith.divf %365, %366 : vector<2x96xf32>
    %368 = vector.extract_strided_slice %367 {offsets = [0, 0], sizes = [2, 32], strides = [1, 1]} : vector<2x96xf32> to vector<2x32xf32>
    %369 = vector.extract_strided_slice %367 {offsets = [0, 32], sizes = [2, 32], strides = [1, 1]} : vector<2x96xf32> to vector<2x32xf32>
    %370 = vector.extract_strided_slice %367 {offsets = [0, 64], sizes = [2, 32], strides = [1, 1]} : vector<2x96xf32> to vector<2x32xf32>
    %371 = vector.extract_strided_slice %361 {offsets = [0, 96], sizes = [2, 32], strides = [1, 1]} : vector<2x128xf32> to vector<2x32xf32>
    %372 = math.tanh %371 : vector<2x32xf32>
    %373 = arith.mulf %369, %327 : vector<2x32xf32>
    %374 = arith.mulf %368, %372 : vector<2x32xf32>
    %375 = arith.addf %373, %374 : vector<2x32xf32>
    %376 = math.tanh %375 : vector<2x32xf32>
    %377 = arith.mulf %370, %376 : vector<2x32xf32>
    %378 = vector.extract_strided_slice %14 {offsets = [0, 0, 128], sizes = [2, 1, 128], strides = [1, 1, 1]} : vector<2x8x256xf32> to vector<2x1x128xf32>
    %379 = vector.shape_cast %378 : vector<2x1x128xf32> to vector<2x128xf32>
    %380 = arith.truncf %350 : vector<2x32xf32> to vector<2x32xbf16>
    %cst_77 = arith.constant dense<0.000000e+00> : vector<2x128xf32>
    %381 = tpu.matmul %380, %16, %cst_77 {dimension_numbers = #tpu.dot_dimension_numbers<[1], [0], [0], [1], [0, 0, 1, 1], [], []>} : vector<2x32xbf16>, vector<32x128xbf16>, vector<2x128xf32> -> vector<2x128xf32>
    %382 = arith.addf %379, %381 : vector<2x128xf32>
    %383 = vector.extract_strided_slice %382 {offsets = [0, 0], sizes = [2, 96], strides = [1, 1]} : vector<2x128xf32> to vector<2x96xf32>
    %384 = arith.negf %383 : vector<2x96xf32>
    %385 = math.exp %384 : vector<2x96xf32>
    %cst_78 = arith.constant 1.000000e+00 : f32
    %386 = vector.broadcast %cst_78 : f32 to vector<2x96xf32>
    %387 = arith.addf %386, %385 : vector<2x96xf32>
    %388 = arith.divf %386, %387 : vector<2x96xf32>
    %389 = vector.extract_strided_slice %388 {offsets = [0, 0], sizes = [2, 32], strides = [1, 1]} : vector<2x96xf32> to vector<2x32xf32>
    %390 = vector.extract_strided_slice %388 {offsets = [0, 32], sizes = [2, 32], strides = [1, 1]} : vector<2x96xf32> to vector<2x32xf32>
    %391 = vector.extract_strided_slice %388 {offsets = [0, 64], sizes = [2, 32], strides = [1, 1]} : vector<2x96xf32> to vector<2x32xf32>
    %392 = vector.extract_strided_slice %382 {offsets = [0, 96], sizes = [2, 32], strides = [1, 1]} : vector<2x128xf32> to vector<2x32xf32>
    %393 = math.tanh %392 : vector<2x32xf32>
    %394 = arith.mulf %390, %348 : vector<2x32xf32>
    %395 = arith.mulf %389, %393 : vector<2x32xf32>
    %396 = arith.addf %394, %395 : vector<2x32xf32>
    %397 = math.tanh %396 : vector<2x32xf32>
    %398 = arith.mulf %391, %397 : vector<2x32xf32>
    %c0_79 = arith.constant 0 : index
    %c7_80 = arith.constant 7 : index
    %c0_81 = arith.constant 0 : index
    %399 = vector.load %arg14[%c0_79, %c7_80, %c0_81] : memref<2x8x64xf32, #tpu.memory_space<vmem>>, vector<2x1x32xf32>
    %400 = vector.shape_cast %399 : vector<2x1x32xf32> to vector<2x32xf32>
    %401 = vector.shape_cast %377 : vector<2x32xf32> to vector<2x1x32xf32>
    tpu.vector_store %arg14[%c0_79, %c7_80, %c0_81], %401 {strides = array<i32>} : memref<2x8x64xf32, #tpu.memory_space<vmem>>, vector<2x1x32xf32>,
    %c0_82 = arith.constant 0 : index
    %c0_83 = arith.constant 0 : index
    %c32_84 = arith.constant 32 : index
    %402 = vector.load %arg14[%c0_82, %c0_83, %c32_84] : memref<2x8x64xf32, #tpu.memory_space<vmem>>, vector<2x1x32xf32>
    %403 = vector.shape_cast %402 : vector<2x1x32xf32> to vector<2x32xf32>
    %404 = vector.shape_cast %398 : vector<2x32xf32> to vector<2x1x32xf32>
    tpu.vector_store %arg14[%c0_82, %c0_83, %c32_84], %404 {strides = array<i32>} : memref<2x8x64xf32, #tpu.memory_space<vmem>>, vector<2x1x32xf32>,
    %c0_85 = arith.constant 0 : index
    %c0_86 = arith.constant 0 : index
    %c0_87 = arith.constant 0 : index
    %405 = vector.load %arg14[%c0_85, %c0_86, %c0_87] : memref<2x8x64xf32, #tpu.memory_space<vmem>>, vector<2x8x64xf32>
    %406 = vector.shape_cast %405 : vector<2x8x64xf32> to vector<16x64xf32>
    %407 = arith.truncf %406 : vector<16x64xf32> to vector<16x64xbf16>
    %c0_88 = arith.constant 0 : index
    %c0_89 = arith.constant 0 : index
    %408 = vector.load %arg7[%c0_88, %c0_89] : memref<64x8xbf16, #tpu.memory_space<vmem>>, vector<64x8xbf16>
    %cst_90 = arith.constant dense<0.000000e+00> : vector<16x8xf32>
    %409 = tpu.matmul %407, %408, %cst_90 {dimension_numbers = #tpu.dot_dimension_numbers<[1], [0], [0], [1], [0, 0, 1, 1], [], []>} : vector<16x64xbf16>, vector<64x8xbf16>, vector<16x8xf32> -> vector<16x8xf32>
    %c0_91 = arith.constant 0 : index
    %c0_92 = arith.constant 0 : index
    %410 = vector.load %arg8[%c0_91, %c0_92] : memref<1x8xf32, #tpu.memory_space<vmem>>, vector<1x8xf32>
    %411 = vector.broadcast %410 : vector<1x8xf32> to vector<16x8xf32>
    %412 = arith.addf %409, %411 : vector<16x8xf32>
    %413 = vector.shape_cast %412 : vector<16x8xf32> to vector<2x8x8xf32>
    %c0_93 = arith.constant 0 : index
    %c0_94 = arith.constant 0 : index
    %414 = vector.load %arg9[%c0_93, %c0_94] : memref<8x8xf32, #tpu.memory_space<vmem>>, vector<8x8xf32>
    %c0_95 = arith.constant 0 : index
    %c0_96 = arith.constant 0 : index
    %415 = vector.load %arg10[%c0_95, %c0_96] : memref<1x8xf32, #tpu.memory_space<vmem>>, vector<1x8xf32>
    %c0_97 = arith.constant 0 : index
    %c0_98 = arith.constant 0 : index
    %416 = vector.load %arg11[%c0_97, %c0_98] : memref<1x8xf32, #tpu.memory_space<vmem>>, vector<1x8xf32>
    %c0_99 = arith.constant 0 : index
    %c0_100 = arith.constant 0 : index
    %417 = vector.load %arg2[%c0_99, %c0_100] : memref<2x8xf32, #tpu.memory_space<vmem>>, vector<2x8xf32>
    %c0_101 = arith.constant 0 : index
    %c0_102 = arith.constant 0 : index
    %418 = vector.load %arg1[%c0_101, %c0_102] : memref<2x8xi32, #tpu.memory_space<vmem>>, vector<2x8xi32>
    %419 = tpu.iota {dimensions = array<i32: 2>} : vector<2x8x8xi32>
    %420 = tpu.iota {dimensions = array<i32: 1>} : vector<2x8x8xi32>
    %421 = tpu.iota {dimensions = array<i32: 1>} : vector<2x8xi32>
    %422 = tpu.iota {dimensions = array<i32: 1>} : vector<2x8xi32>
    %423 = tpu.iota {dimensions = array<i32: 1>} : vector<2x8x8xi32>
    %424 = vector.shape_cast %414 : vector<8x8xf32> to vector<1x8x8xf32>
    %cst_103 = arith.constant dense<0.000000e+00> : vector<2xf32>
    %425 = vector.multi_reduction <add>, %417, %cst_103 [1] : vector<2x8xf32> to vector<2xf32>
    %426 = vector.shape_cast %425 : vector<2xf32> to vector<2x1xf32>
    %427 = arith.fptosi %426 : vector<2x1xf32> to vector<2x1xi32>
    %c1_i32 = arith.constant 1 : i32
    %428 = vector.broadcast %c1_i32 : i32 to vector<2x1xi32>
    %429 = arith.subi %427, %428 : vector<2x1xi32>
    %430 = vector.shape_cast %418 : vector<2x8xi32> to vector<2x8x1xi32>
    %431 = vector.broadcast %430 : vector<2x8x1xi32> to vector<2x8x8xi32>
    %432 = arith.cmpi eq, %419, %431 : vector<2x8x8xi32>
    %433 = arith.extui %432 : vector<2x8x8xi1> to vector<2x8x8xi32>
    %434 = arith.sitofp %433 : vector<2x8x8xi32> to vector<2x8x8xf32>
    %435 = vector.extract_strided_slice %418 {offsets = [0, 0], sizes = [2, 1], strides = [1, 1]} : vector<2x8xi32> to vector<2x1xi32>
    %436 = vector.extract_strided_slice %418 {offsets = [0, 0], sizes = [2, 7], strides = [1, 1]} : vector<2x8xi32> to vector<2x7xi32>
    %437 = tpu.concatenate %435, %436 in 1 : vector<2x1xi32>, vector<2x7xi32> -> vector<2x8xi32>
    %438 = vector.shape_cast %437 : vector<2x8xi32> to vector<2x8x1xi32>
    %439 = vector.broadcast %438 : vector<2x8x1xi32> to vector<2x8x8xi32>
    %440 = arith.cmpi eq, %419, %439 : vector<2x8x8xi32>
    %c0_i32 = arith.constant 0 : i32
    %441 = vector.broadcast %c0_i32 : i32 to vector<2x8x8xi32>
    %442 = arith.cmpi sgt, %420, %441 : vector<2x8x8xi32>
    %443 = arith.andi %440, %442 : vector<2x8x8xi1>
    %444 = arith.extui %443 : vector<2x8x8xi1> to vector<2x8x8xi32>
    %445 = arith.sitofp %444 : vector<2x8x8xi32> to vector<2x8x8xf32>
    %446 = arith.mulf %434, %413 : vector<2x8x8xf32>
    %447 = vector.shape_cast %417 : vector<2x8xf32> to vector<2x8x1xf32>
    %448 = vector.broadcast %447 : vector<2x8x1xf32> to vector<2x8x8xf32>
    %449 = arith.mulf %446, %448 : vector<2x8x8xf32>
    %cst_104 = arith.constant dense<0.000000e+00> : vector<2x8xf32>
    %450 = vector.multi_reduction <add>, %449, %cst_104 [1] : vector<2x8x8xf32> to vector<2x8xf32>
    %cst_105 = arith.constant dense<0.000000e+00> : vector<2xf32>
    %451 = vector.multi_reduction <add>, %450, %cst_105 [1] : vector<2x8xf32> to vector<2xf32>
    %452 = vector.shape_cast %451 : vector<2xf32> to vector<2x1xf32>
    %453 = vector.shape_cast %445 : vector<2x8x8xf32> to vector<16x8xf32>
    %454 = vector.shape_cast %453 : vector<16x8xf32> to vector<16x8x1xf32>
    %455 = vector.shape_cast %414 : vector<8x8xf32> to vector<1x8x8xf32>
    %456 = vector.broadcast %454 : vector<16x8x1xf32> to vector<16x8x8xf32>
    %457 = vector.broadcast %455 : vector<1x8x8xf32> to vector<16x8x8xf32>
    %458 = arith.mulf %456, %457 : vector<16x8x8xf32>
    %cst_106 = arith.constant dense<0.000000e+00> : vector<16x8xf32>
    %459 = vector.multi_reduction <add>, %458, %cst_106 [1] : vector<16x8x8xf32> to vector<16x8xf32>
    %460 = vector.shape_cast %434 : vector<2x8x8xf32> to vector<16x8xf32>
    %461 = arith.mulf %459, %460 : vector<16x8xf32>
    %462 = vector.shape_cast %461 : vector<16x8xf32> to vector<2x8x8xf32>
    %463 = vector.shape_cast %417 : vector<2x8xf32> to vector<2x8x1xf32>
    %464 = vector.broadcast %463 : vector<2x8x1xf32> to vector<2x8x8xf32>
    %465 = arith.mulf %462, %464 : vector<2x8x8xf32>
    %cst_107 = arith.constant dense<0.000000e+00> : vector<2x8xf32>
    %466 = vector.multi_reduction <add>, %465, %cst_107 [1] : vector<2x8x8xf32> to vector<2x8xf32>
    %cst_108 = arith.constant dense<0.000000e+00> : vector<2xf32>
    %467 = vector.multi_reduction <add>, %466, %cst_108 [1] : vector<2x8xf32> to vector<2xf32>
    %468 = vector.shape_cast %467 : vector<2xf32> to vector<2x1xf32>
    %469 = vector.extract_strided_slice %434 {offsets = [0, 0, 0], sizes = [2, 1, 8], strides = [1, 1, 1]} : vector<2x8x8xf32> to vector<2x1x8xf32>
    %470 = vector.shape_cast %469 : vector<2x1x8xf32> to vector<2x8xf32>
    %471 = vector.broadcast %415 : vector<1x8xf32> to vector<2x8xf32>
    %472 = arith.mulf %470, %471 : vector<2x8xf32>
    %cst_109 = arith.constant dense<0.000000e+00> : vector<2xf32>
    %473 = vector.multi_reduction <add>, %472, %cst_109 [1] : vector<2x8xf32> to vector<2xf32>
    %474 = vector.shape_cast %473 : vector<2xf32> to vector<2x1xf32>
    %475 = vector.broadcast %429 : vector<2x1xi32> to vector<2x8xi32>
    %476 = arith.cmpi eq, %422, %475 : vector<2x8xi32>
    %477 = arith.extui %476 : vector<2x8xi1> to vector<2x8xi32>
    %478 = arith.sitofp %477 : vector<2x8xi32> to vector<2x8xf32>
    %479 = vector.shape_cast %478 : vector<2x8xf32> to vector<2x8x1xf32>
    %480 = vector.broadcast %479 : vector<2x8x1xf32> to vector<2x8x8xf32>
    %481 = arith.mulf %434, %480 : vector<2x8x8xf32>
    %cst_110 = arith.constant dense<0.000000e+00> : vector<2x8xf32>
    %482 = vector.multi_reduction <add>, %481, %cst_110 [1] : vector<2x8x8xf32> to vector<2x8xf32>
    %483 = vector.broadcast %416 : vector<1x8xf32> to vector<2x8xf32>
    %484 = arith.mulf %482, %483 : vector<2x8xf32>
    %cst_111 = arith.constant dense<0.000000e+00> : vector<2xf32>
    %485 = vector.multi_reduction <add>, %484, %cst_111 [1] : vector<2x8xf32> to vector<2xf32>
    %486 = vector.shape_cast %485 : vector<2xf32> to vector<2x1xf32>
    %487 = arith.addf %474, %452 : vector<2x1xf32>
    %488 = arith.addf %487, %468 : vector<2x1xf32>
    %489 = arith.addf %488, %486 : vector<2x1xf32>
    %490 = vector.extract_strided_slice %413 {offsets = [0, 0, 0], sizes = [2, 1, 8], strides = [1, 1, 1]} : vector<2x8x8xf32> to vector<2x1x8xf32>
    %491 = vector.shape_cast %490 : vector<2x1x8xf32> to vector<2x8xf32>
    %492 = vector.broadcast %415 : vector<1x8xf32> to vector<2x8xf32>
    %493 = arith.addf %492, %491 : vector<2x8xf32>
    %494 = vector.extract_strided_slice %413 {offsets = [0, 1, 0], sizes = [2, 1, 8], strides = [1, 1, 1]} : vector<2x8x8xf32> to vector<2x1x8xf32>
    %495 = vector.shape_cast %494 : vector<2x1x8xf32> to vector<2x8xf32>
    %496 = vector.extract_strided_slice %417 {offsets = [0, 1], sizes = [2, 1], strides = [1, 1]} : vector<2x8xf32> to vector<2x1xf32>
    %cst_112 = arith.constant 5.000000e-01 : f32
    %497 = vector.broadcast %cst_112 : f32 to vector<2x1xf32>
    %498 = arith.cmpf ogt, %496, %497 : vector<2x1xf32>
    %499 = vector.shape_cast %493 : vector<2x8xf32> to vector<2x8x1xf32>
    %500 = vector.broadcast %499 : vector<2x8x1xf32> to vector<2x8x8xf32>
    %501 = vector.broadcast %424 : vector<1x8x8xf32> to vector<2x8x8xf32>
    %502 = arith.addf %500, %501 : vector<2x8x8xf32>
    %cst_113 = arith.constant dense<0xFF800000> : vector<2x8xf32>
    %503 = vector.multi_reduction <maximumf>, %502, %cst_113 [1] : vector<2x8x8xf32> to vector<2x8xf32>
    %504 = vector.shape_cast %503 : vector<2x8xf32> to vector<2x1x8xf32>
    %505 = vector.broadcast %504 : vector<2x1x8xf32> to vector<2x8x8xf32>
    %506 = arith.subf %502, %505 : vector<2x8x8xf32>
    %507 = math.exp %506 : vector<2x8x8xf32>
    %cst_114 = arith.constant dense<0.000000e+00> : vector<2x8xf32>
    %508 = vector.multi_reduction <add>, %507, %cst_114 [1] : vector<2x8x8xf32> to vector<2x8xf32>
    %509 = math.log %508 : vector<2x8xf32>
    %510 = arith.addf %503, %509 : vector<2x8xf32>
    %511 = arith.addf %510, %495 : vector<2x8xf32>
    %512 = vector.shape_cast %498 : vector<2x1xi1> to vector<2x1xi1>
    %513 = vector.broadcast %512 : vector<2x1xi1> to vector<2x8xi1>
    %514 = arith.select %513, %511, %493 : vector<2x8xi1>, vector<2x8xf32>
    %515 = vector.shape_cast %493 : vector<2x8xf32> to vector<2x8x1xf32>
    %516 = vector.broadcast %515 : vector<2x8x1xf32> to vector<2x8x8xf32>
    %517 = vector.broadcast %424 : vector<1x8x8xf32> to vector<2x8x8xf32>
    %518 = arith.addf %516, %517 : vector<2x8x8xf32>
    %cst_115 = arith.constant dense<0xFF800000> : vector<2x8xf32>
    %519 = vector.multi_reduction <maximumf>, %518, %cst_115 [1] : vector<2x8x8xf32> to vector<2x8xf32>
    %520 = vector.shape_cast %519 : vector<2x8xf32> to vector<2x1x8xf32>
    %521 = vector.broadcast %520 : vector<2x1x8xf32> to vector<2x8x8xf32>
    %522 = arith.cmpf oeq, %518, %521 : vector<2x8x8xf32>
    %c8_i32 = arith.constant 8 : i32
    %523 = vector.broadcast %c8_i32 : i32 to vector<2x8x8xi32>
    %524 = arith.select %522, %423, %523 : vector<2x8x8xi1>, vector<2x8x8xi32>
    %cst_116 = arith.constant dense<2147483647> : vector<2x8xi32>
    %525 = vector.multi_reduction <minsi>, %524, %cst_116 [1] : vector<2x8x8xi32> to vector<2x8xi32>
    %526 = arith.addf %519, %495 : vector<2x8xf32>
    %527 = vector.shape_cast %498 : vector<2x1xi1> to vector<2x1xi1>
    %528 = vector.broadcast %527 : vector<2x1xi1> to vector<2x8xi1>
    %529 = arith.select %528, %526, %493 : vector<2x8xi1>, vector<2x8xf32>
    %530 = vector.extract_strided_slice %413 {offsets = [0, 2, 0], sizes = [2, 1, 8], strides = [1, 1, 1]} : vector<2x8x8xf32> to vector<2x1x8xf32>
    %531 = vector.shape_cast %530 : vector<2x1x8xf32> to vector<2x8xf32>
    %532 = vector.extract_strided_slice %417 {offsets = [0, 2], sizes = [2, 1], strides = [1, 1]} : vector<2x8xf32> to vector<2x1xf32>
    %cst_117 = arith.constant 5.000000e-01 : f32
    %533 = vector.broadcast %cst_117 : f32 to vector<2x1xf32>
    %534 = arith.cmpf ogt, %532, %533 : vector<2x1xf32>
    %535 = vector.shape_cast %514 : vector<2x8xf32> to vector<2x8x1xf32>
    %536 = vector.broadcast %535 : vector<2x8x1xf32> to vector<2x8x8xf32>
    %537 = vector.broadcast %424 : vector<1x8x8xf32> to vector<2x8x8xf32>
    %538 = arith.addf %536, %537 : vector<2x8x8xf32>
    %cst_118 = arith.constant dense<0xFF800000> : vector<2x8xf32>
    %539 = vector.multi_reduction <maximumf>, %538, %cst_118 [1] : vector<2x8x8xf32> to vector<2x8xf32>
    %540 = vector.shape_cast %539 : vector<2x8xf32> to vector<2x1x8xf32>
    %541 = vector.broadcast %540 : vector<2x1x8xf32> to vector<2x8x8xf32>
    %542 = arith.subf %538, %541 : vector<2x8x8xf32>
    %543 = math.exp %542 : vector<2x8x8xf32>
    %cst_119 = arith.constant dense<0.000000e+00> : vector<2x8xf32>
    %544 = vector.multi_reduction <add>, %543, %cst_119 [1] : vector<2x8x8xf32> to vector<2x8xf32>
    %545 = math.log %544 : vector<2x8xf32>
    %546 = arith.addf %539, %545 : vector<2x8xf32>
    %547 = arith.addf %546, %531 : vector<2x8xf32>
    %548 = vector.shape_cast %534 : vector<2x1xi1> to vector<2x1xi1>
    %549 = vector.broadcast %548 : vector<2x1xi1> to vector<2x8xi1>
    %550 = arith.select %549, %547, %514 : vector<2x8xi1>, vector<2x8xf32>
    %551 = vector.shape_cast %529 : vector<2x8xf32> to vector<2x8x1xf32>
    %552 = vector.broadcast %551 : vector<2x8x1xf32> to vector<2x8x8xf32>
    %553 = vector.broadcast %424 : vector<1x8x8xf32> to vector<2x8x8xf32>
    %554 = arith.addf %552, %553 : vector<2x8x8xf32>
    %cst_120 = arith.constant dense<0xFF800000> : vector<2x8xf32>
    %555 = vector.multi_reduction <maximumf>, %554, %cst_120 [1] : vector<2x8x8xf32> to vector<2x8xf32>
    %556 = vector.shape_cast %555 : vector<2x8xf32> to vector<2x1x8xf32>
    %557 = vector.broadcast %556 : vector<2x1x8xf32> to vector<2x8x8xf32>
    %558 = arith.cmpf oeq, %554, %557 : vector<2x8x8xf32>
    %c8_i32_121 = arith.constant 8 : i32
    %559 = vector.broadcast %c8_i32_121 : i32 to vector<2x8x8xi32>
    %560 = arith.select %558, %423, %559 : vector<2x8x8xi1>, vector<2x8x8xi32>
    %cst_122 = arith.constant dense<2147483647> : vector<2x8xi32>
    %561 = vector.multi_reduction <minsi>, %560, %cst_122 [1] : vector<2x8x8xi32> to vector<2x8xi32>
    %562 = arith.addf %555, %531 : vector<2x8xf32>
    %563 = vector.shape_cast %534 : vector<2x1xi1> to vector<2x1xi1>
    %564 = vector.broadcast %563 : vector<2x1xi1> to vector<2x8xi1>
    %565 = arith.select %564, %562, %529 : vector<2x8xi1>, vector<2x8xf32>
    %566 = vector.extract_strided_slice %413 {offsets = [0, 3, 0], sizes = [2, 1, 8], strides = [1, 1, 1]} : vector<2x8x8xf32> to vector<2x1x8xf32>
    %567 = vector.shape_cast %566 : vector<2x1x8xf32> to vector<2x8xf32>
    %568 = vector.extract_strided_slice %417 {offsets = [0, 3], sizes = [2, 1], strides = [1, 1]} : vector<2x8xf32> to vector<2x1xf32>
    %cst_123 = arith.constant 5.000000e-01 : f32
    %569 = vector.broadcast %cst_123 : f32 to vector<2x1xf32>
    %570 = arith.cmpf ogt, %568, %569 : vector<2x1xf32>
    %571 = vector.shape_cast %550 : vector<2x8xf32> to vector<2x8x1xf32>
    %572 = vector.broadcast %571 : vector<2x8x1xf32> to vector<2x8x8xf32>
    %573 = vector.broadcast %424 : vector<1x8x8xf32> to vector<2x8x8xf32>
    %574 = arith.addf %572, %573 : vector<2x8x8xf32>
    %cst_124 = arith.constant dense<0xFF800000> : vector<2x8xf32>
    %575 = vector.multi_reduction <maximumf>, %574, %cst_124 [1] : vector<2x8x8xf32> to vector<2x8xf32>
    %576 = vector.shape_cast %575 : vector<2x8xf32> to vector<2x1x8xf32>
    %577 = vector.broadcast %576 : vector<2x1x8xf32> to vector<2x8x8xf32>
    %578 = arith.subf %574, %577 : vector<2x8x8xf32>
    %579 = math.exp %578 : vector<2x8x8xf32>
    %cst_125 = arith.constant dense<0.000000e+00> : vector<2x8xf32>
    %580 = vector.multi_reduction <add>, %579, %cst_125 [1] : vector<2x8x8xf32> to vector<2x8xf32>
    %581 = math.log %580 : vector<2x8xf32>
    %582 = arith.addf %575, %581 : vector<2x8xf32>
    %583 = arith.addf %582, %567 : vector<2x8xf32>
    %584 = vector.shape_cast %570 : vector<2x1xi1> to vector<2x1xi1>
    %585 = vector.broadcast %584 : vector<2x1xi1> to vector<2x8xi1>
    %586 = arith.select %585, %583, %550 : vector<2x8xi1>, vector<2x8xf32>
    %587 = vector.shape_cast %565 : vector<2x8xf32> to vector<2x8x1xf32>
    %588 = vector.broadcast %587 : vector<2x8x1xf32> to vector<2x8x8xf32>
    %589 = vector.broadcast %424 : vector<1x8x8xf32> to vector<2x8x8xf32>
    %590 = arith.addf %588, %589 : vector<2x8x8xf32>
    %cst_126 = arith.constant dense<0xFF800000> : vector<2x8xf32>
    %591 = vector.multi_reduction <maximumf>, %590, %cst_126 [1] : vector<2x8x8xf32> to vector<2x8xf32>
    %592 = vector.shape_cast %591 : vector<2x8xf32> to vector<2x1x8xf32>
    %593 = vector.broadcast %592 : vector<2x1x8xf32> to vector<2x8x8xf32>
    %594 = arith.cmpf oeq, %590, %593 : vector<2x8x8xf32>
    %c8_i32_127 = arith.constant 8 : i32
    %595 = vector.broadcast %c8_i32_127 : i32 to vector<2x8x8xi32>
    %596 = arith.select %594, %423, %595 : vector<2x8x8xi1>, vector<2x8x8xi32>
    %cst_128 = arith.constant dense<2147483647> : vector<2x8xi32>
    %597 = vector.multi_reduction <minsi>, %596, %cst_128 [1] : vector<2x8x8xi32> to vector<2x8xi32>
    %598 = arith.addf %591, %567 : vector<2x8xf32>
    %599 = vector.shape_cast %570 : vector<2x1xi1> to vector<2x1xi1>
    %600 = vector.broadcast %599 : vector<2x1xi1> to vector<2x8xi1>
    %601 = arith.select %600, %598, %565 : vector<2x8xi1>, vector<2x8xf32>
    %602 = vector.extract_strided_slice %413 {offsets = [0, 4, 0], sizes = [2, 1, 8], strides = [1, 1, 1]} : vector<2x8x8xf32> to vector<2x1x8xf32>
    %603 = vector.shape_cast %602 : vector<2x1x8xf32> to vector<2x8xf32>
    %604 = vector.extract_strided_slice %417 {offsets = [0, 4], sizes = [2, 1], strides = [1, 1]} : vector<2x8xf32> to vector<2x1xf32>
    %cst_129 = arith.constant 5.000000e-01 : f32
    %605 = vector.broadcast %cst_129 : f32 to vector<2x1xf32>
    %606 = arith.cmpf ogt, %604, %605 : vector<2x1xf32>
    %607 = vector.shape_cast %586 : vector<2x8xf32> to vector<2x8x1xf32>
    %608 = vector.broadcast %607 : vector<2x8x1xf32> to vector<2x8x8xf32>
    %609 = vector.broadcast %424 : vector<1x8x8xf32> to vector<2x8x8xf32>
    %610 = arith.addf %608, %609 : vector<2x8x8xf32>
    %cst_130 = arith.constant dense<0xFF800000> : vector<2x8xf32>
    %611 = vector.multi_reduction <maximumf>, %610, %cst_130 [1] : vector<2x8x8xf32> to vector<2x8xf32>
    %612 = vector.shape_cast %611 : vector<2x8xf32> to vector<2x1x8xf32>
    %613 = vector.broadcast %612 : vector<2x1x8xf32> to vector<2x8x8xf32>
    %614 = arith.subf %610, %613 : vector<2x8x8xf32>
    %615 = math.exp %614 : vector<2x8x8xf32>
    %cst_131 = arith.constant dense<0.000000e+00> : vector<2x8xf32>
    %616 = vector.multi_reduction <add>, %615, %cst_131 [1] : vector<2x8x8xf32> to vector<2x8xf32>
    %617 = math.log %616 : vector<2x8xf32>
    %618 = arith.addf %611, %617 : vector<2x8xf32>
    %619 = arith.addf %618, %603 : vector<2x8xf32>
    %620 = vector.shape_cast %606 : vector<2x1xi1> to vector<2x1xi1>
    %621 = vector.broadcast %620 : vector<2x1xi1> to vector<2x8xi1>
    %622 = arith.select %621, %619, %586 : vector<2x8xi1>, vector<2x8xf32>
    %623 = vector.shape_cast %601 : vector<2x8xf32> to vector<2x8x1xf32>
    %624 = vector.broadcast %623 : vector<2x8x1xf32> to vector<2x8x8xf32>
    %625 = vector.broadcast %424 : vector<1x8x8xf32> to vector<2x8x8xf32>
    %626 = arith.addf %624, %625 : vector<2x8x8xf32>
    %cst_132 = arith.constant dense<0xFF800000> : vector<2x8xf32>
    %627 = vector.multi_reduction <maximumf>, %626, %cst_132 [1] : vector<2x8x8xf32> to vector<2x8xf32>
    %628 = vector.shape_cast %627 : vector<2x8xf32> to vector<2x1x8xf32>
    %629 = vector.broadcast %628 : vector<2x1x8xf32> to vector<2x8x8xf32>
    %630 = arith.cmpf oeq, %626, %629 : vector<2x8x8xf32>
    %c8_i32_133 = arith.constant 8 : i32
    %631 = vector.broadcast %c8_i32_133 : i32 to vector<2x8x8xi32>
    %632 = arith.select %630, %423, %631 : vector<2x8x8xi1>, vector<2x8x8xi32>
    %cst_134 = arith.constant dense<2147483647> : vector<2x8xi32>
    %633 = vector.multi_reduction <minsi>, %632, %cst_134 [1] : vector<2x8x8xi32> to vector<2x8xi32>
    %634 = arith.addf %627, %603 : vector<2x8xf32>
    %635 = vector.shape_cast %606 : vector<2x1xi1> to vector<2x1xi1>
    %636 = vector.broadcast %635 : vector<2x1xi1> to vector<2x8xi1>
    %637 = arith.select %636, %634, %601 : vector<2x8xi1>, vector<2x8xf32>
    %638 = vector.extract_strided_slice %413 {offsets = [0, 5, 0], sizes = [2, 1, 8], strides = [1, 1, 1]} : vector<2x8x8xf32> to vector<2x1x8xf32>
    %639 = vector.shape_cast %638 : vector<2x1x8xf32> to vector<2x8xf32>
    %640 = vector.extract_strided_slice %417 {offsets = [0, 5], sizes = [2, 1], strides = [1, 1]} : vector<2x8xf32> to vector<2x1xf32>
    %cst_135 = arith.constant 5.000000e-01 : f32
    %641 = vector.broadcast %cst_135 : f32 to vector<2x1xf32>
    %642 = arith.cmpf ogt, %640, %641 : vector<2x1xf32>
    %643 = vector.shape_cast %622 : vector<2x8xf32> to vector<2x8x1xf32>
    %644 = vector.broadcast %643 : vector<2x8x1xf32> to vector<2x8x8xf32>
    %645 = vector.broadcast %424 : vector<1x8x8xf32> to vector<2x8x8xf32>
    %646 = arith.addf %644, %645 : vector<2x8x8xf32>
    %cst_136 = arith.constant dense<0xFF800000> : vector<2x8xf32>
    %647 = vector.multi_reduction <maximumf>, %646, %cst_136 [1] : vector<2x8x8xf32> to vector<2x8xf32>
    %648 = vector.shape_cast %647 : vector<2x8xf32> to vector<2x1x8xf32>
    %649 = vector.broadcast %648 : vector<2x1x8xf32> to vector<2x8x8xf32>
    %650 = arith.subf %646, %649 : vector<2x8x8xf32>
    %651 = math.exp %650 : vector<2x8x8xf32>
    %cst_137 = arith.constant dense<0.000000e+00> : vector<2x8xf32>
    %652 = vector.multi_reduction <add>, %651, %cst_137 [1] : vector<2x8x8xf32> to vector<2x8xf32>
    %653 = math.log %652 : vector<2x8xf32>
    %654 = arith.addf %647, %653 : vector<2x8xf32>
    %655 = arith.addf %654, %639 : vector<2x8xf32>
    %656 = vector.shape_cast %642 : vector<2x1xi1> to vector<2x1xi1>
    %657 = vector.broadcast %656 : vector<2x1xi1> to vector<2x8xi1>
    %658 = arith.select %657, %655, %622 : vector<2x8xi1>, vector<2x8xf32>
    %659 = vector.shape_cast %637 : vector<2x8xf32> to vector<2x8x1xf32>
    %660 = vector.broadcast %659 : vector<2x8x1xf32> to vector<2x8x8xf32>
    %661 = vector.broadcast %424 : vector<1x8x8xf32> to vector<2x8x8xf32>
    %662 = arith.addf %660, %661 : vector<2x8x8xf32>
    %cst_138 = arith.constant dense<0xFF800000> : vector<2x8xf32>
    %663 = vector.multi_reduction <maximumf>, %662, %cst_138 [1] : vector<2x8x8xf32> to vector<2x8xf32>
    %664 = vector.shape_cast %663 : vector<2x8xf32> to vector<2x1x8xf32>
    %665 = vector.broadcast %664 : vector<2x1x8xf32> to vector<2x8x8xf32>
    %666 = arith.cmpf oeq, %662, %665 : vector<2x8x8xf32>
    %c8_i32_139 = arith.constant 8 : i32
    %667 = vector.broadcast %c8_i32_139 : i32 to vector<2x8x8xi32>
    %668 = arith.select %666, %423, %667 : vector<2x8x8xi1>, vector<2x8x8xi32>
    %cst_140 = arith.constant dense<2147483647> : vector<2x8xi32>
    %669 = vector.multi_reduction <minsi>, %668, %cst_140 [1] : vector<2x8x8xi32> to vector<2x8xi32>
    %670 = arith.addf %663, %639 : vector<2x8xf32>
    %671 = vector.shape_cast %642 : vector<2x1xi1> to vector<2x1xi1>
    %672 = vector.broadcast %671 : vector<2x1xi1> to vector<2x8xi1>
    %673 = arith.select %672, %670, %637 : vector<2x8xi1>, vector<2x8xf32>
    %674 = vector.extract_strided_slice %413 {offsets = [0, 6, 0], sizes = [2, 1, 8], strides = [1, 1, 1]} : vector<2x8x8xf32> to vector<2x1x8xf32>
    %675 = vector.shape_cast %674 : vector<2x1x8xf32> to vector<2x8xf32>
    %676 = vector.extract_strided_slice %417 {offsets = [0, 6], sizes = [2, 1], strides = [1, 1]} : vector<2x8xf32> to vector<2x1xf32>
    %cst_141 = arith.constant 5.000000e-01 : f32
    %677 = vector.broadcast %cst_141 : f32 to vector<2x1xf32>
    %678 = arith.cmpf ogt, %676, %677 : vector<2x1xf32>
    %679 = vector.shape_cast %658 : vector<2x8xf32> to vector<2x8x1xf32>
    %680 = vector.broadcast %679 : vector<2x8x1xf32> to vector<2x8x8xf32>
    %681 = vector.broadcast %424 : vector<1x8x8xf32> to vector<2x8x8xf32>
    %682 = arith.addf %680, %681 : vector<2x8x8xf32>
    %cst_142 = arith.constant dense<0xFF800000> : vector<2x8xf32>
    %683 = vector.multi_reduction <maximumf>, %682, %cst_142 [1] : vector<2x8x8xf32> to vector<2x8xf32>
    %684 = vector.shape_cast %683 : vector<2x8xf32> to vector<2x1x8xf32>
    %685 = vector.broadcast %684 : vector<2x1x8xf32> to vector<2x8x8xf32>
    %686 = arith.subf %682, %685 : vector<2x8x8xf32>
    %687 = math.exp %686 : vector<2x8x8xf32>
    %cst_143 = arith.constant dense<0.000000e+00> : vector<2x8xf32>
    %688 = vector.multi_reduction <add>, %687, %cst_143 [1] : vector<2x8x8xf32> to vector<2x8xf32>
    %689 = math.log %688 : vector<2x8xf32>
    %690 = arith.addf %683, %689 : vector<2x8xf32>
    %691 = arith.addf %690, %675 : vector<2x8xf32>
    %692 = vector.shape_cast %678 : vector<2x1xi1> to vector<2x1xi1>
    %693 = vector.broadcast %692 : vector<2x1xi1> to vector<2x8xi1>
    %694 = arith.select %693, %691, %658 : vector<2x8xi1>, vector<2x8xf32>
    %695 = vector.shape_cast %673 : vector<2x8xf32> to vector<2x8x1xf32>
    %696 = vector.broadcast %695 : vector<2x8x1xf32> to vector<2x8x8xf32>
    %697 = vector.broadcast %424 : vector<1x8x8xf32> to vector<2x8x8xf32>
    %698 = arith.addf %696, %697 : vector<2x8x8xf32>
    %cst_144 = arith.constant dense<0xFF800000> : vector<2x8xf32>
    %699 = vector.multi_reduction <maximumf>, %698, %cst_144 [1] : vector<2x8x8xf32> to vector<2x8xf32>
    %700 = vector.shape_cast %699 : vector<2x8xf32> to vector<2x1x8xf32>
    %701 = vector.broadcast %700 : vector<2x1x8xf32> to vector<2x8x8xf32>
    %702 = arith.cmpf oeq, %698, %701 : vector<2x8x8xf32>
    %c8_i32_145 = arith.constant 8 : i32
    %703 = vector.broadcast %c8_i32_145 : i32 to vector<2x8x8xi32>
    %704 = arith.select %702, %423, %703 : vector<2x8x8xi1>, vector<2x8x8xi32>
    %cst_146 = arith.constant dense<2147483647> : vector<2x8xi32>
    %705 = vector.multi_reduction <minsi>, %704, %cst_146 [1] : vector<2x8x8xi32> to vector<2x8xi32>
    %706 = arith.addf %699, %675 : vector<2x8xf32>
    %707 = vector.shape_cast %678 : vector<2x1xi1> to vector<2x1xi1>
    %708 = vector.broadcast %707 : vector<2x1xi1> to vector<2x8xi1>
    %709 = arith.select %708, %706, %673 : vector<2x8xi1>, vector<2x8xf32>
    %710 = vector.extract_strided_slice %413 {offsets = [0, 7, 0], sizes = [2, 1, 8], strides = [1, 1, 1]} : vector<2x8x8xf32> to vector<2x1x8xf32>
    %711 = vector.shape_cast %710 : vector<2x1x8xf32> to vector<2x8xf32>
    %712 = vector.extract_strided_slice %417 {offsets = [0, 7], sizes = [2, 1], strides = [1, 1]} : vector<2x8xf32> to vector<2x1xf32>
    %cst_147 = arith.constant 5.000000e-01 : f32
    %713 = vector.broadcast %cst_147 : f32 to vector<2x1xf32>
    %714 = arith.cmpf ogt, %712, %713 : vector<2x1xf32>
    %715 = vector.shape_cast %694 : vector<2x8xf32> to vector<2x8x1xf32>
    %716 = vector.broadcast %715 : vector<2x8x1xf32> to vector<2x8x8xf32>
    %717 = vector.broadcast %424 : vector<1x8x8xf32> to vector<2x8x8xf32>
    %718 = arith.addf %716, %717 : vector<2x8x8xf32>
    %cst_148 = arith.constant dense<0xFF800000> : vector<2x8xf32>
    %719 = vector.multi_reduction <maximumf>, %718, %cst_148 [1] : vector<2x8x8xf32> to vector<2x8xf32>
    %720 = vector.shape_cast %719 : vector<2x8xf32> to vector<2x1x8xf32>
    %721 = vector.broadcast %720 : vector<2x1x8xf32> to vector<2x8x8xf32>
    %722 = arith.subf %718, %721 : vector<2x8x8xf32>
    %723 = math.exp %722 : vector<2x8x8xf32>
    %cst_149 = arith.constant dense<0.000000e+00> : vector<2x8xf32>
    %724 = vector.multi_reduction <add>, %723, %cst_149 [1] : vector<2x8x8xf32> to vector<2x8xf32>
    %725 = math.log %724 : vector<2x8xf32>
    %726 = arith.addf %719, %725 : vector<2x8xf32>
    %727 = arith.addf %726, %711 : vector<2x8xf32>
    %728 = vector.shape_cast %714 : vector<2x1xi1> to vector<2x1xi1>
    %729 = vector.broadcast %728 : vector<2x1xi1> to vector<2x8xi1>
    %730 = arith.select %729, %727, %694 : vector<2x8xi1>, vector<2x8xf32>
    %731 = vector.shape_cast %709 : vector<2x8xf32> to vector<2x8x1xf32>
    %732 = vector.broadcast %731 : vector<2x8x1xf32> to vector<2x8x8xf32>
    %733 = vector.broadcast %424 : vector<1x8x8xf32> to vector<2x8x8xf32>
    %734 = arith.addf %732, %733 : vector<2x8x8xf32>
    %cst_150 = arith.constant dense<0xFF800000> : vector<2x8xf32>
    %735 = vector.multi_reduction <maximumf>, %734, %cst_150 [1] : vector<2x8x8xf32> to vector<2x8xf32>
    %736 = vector.shape_cast %735 : vector<2x8xf32> to vector<2x1x8xf32>
    %737 = vector.broadcast %736 : vector<2x1x8xf32> to vector<2x8x8xf32>
    %738 = arith.cmpf oeq, %734, %737 : vector<2x8x8xf32>
    %c8_i32_151 = arith.constant 8 : i32
    %739 = vector.broadcast %c8_i32_151 : i32 to vector<2x8x8xi32>
    %740 = arith.select %738, %423, %739 : vector<2x8x8xi1>, vector<2x8x8xi32>
    %cst_152 = arith.constant dense<2147483647> : vector<2x8xi32>
    %741 = vector.multi_reduction <minsi>, %740, %cst_152 [1] : vector<2x8x8xi32> to vector<2x8xi32>
    %742 = arith.addf %735, %711 : vector<2x8xf32>
    %743 = vector.shape_cast %714 : vector<2x1xi1> to vector<2x1xi1>
    %744 = vector.broadcast %743 : vector<2x1xi1> to vector<2x8xi1>
    %745 = arith.select %744, %742, %709 : vector<2x8xi1>, vector<2x8xf32>
    %746 = vector.broadcast %416 : vector<1x8xf32> to vector<2x8xf32>
    %747 = arith.addf %730, %746 : vector<2x8xf32>
    %cst_153 = arith.constant dense<0xFF800000> : vector<2xf32>
    %748 = vector.multi_reduction <maximumf>, %747, %cst_153 [1] : vector<2x8xf32> to vector<2xf32>
    %749 = vector.shape_cast %748 : vector<2xf32> to vector<2x1xf32>
    %750 = vector.broadcast %749 : vector<2x1xf32> to vector<2x8xf32>
    %751 = arith.subf %747, %750 : vector<2x8xf32>
    %752 = math.exp %751 : vector<2x8xf32>
    %cst_154 = arith.constant dense<0.000000e+00> : vector<2xf32>
    %753 = vector.multi_reduction <add>, %752, %cst_154 [1] : vector<2x8xf32> to vector<2xf32>
    %754 = vector.shape_cast %753 : vector<2xf32> to vector<2x1xf32>
    %755 = math.log %754 : vector<2x1xf32>
    %756 = arith.addf %749, %755 : vector<2x1xf32>
    %757 = arith.subf %489, %756 : vector<2x1xf32>
    %cst_155 = arith.constant dense<0.000000e+00> : vector<1xf32>
    %758 = vector.multi_reduction <add>, %757, %cst_155 [0] : vector<2x1xf32> to vector<1xf32>
    %759 = vector.shape_cast %758 : vector<1xf32> to vector<1x1xf32>
    %cst_156 = arith.constant 5.000000e-01 : f32
    %760 = vector.broadcast %cst_156 : f32 to vector<1x1xf32>
    %761 = arith.mulf %759, %760 : vector<1x1xf32>
    %c0_157 = arith.constant 0 : index
    %c0_158 = arith.constant 0 : index
    %762 = vector.load %arg12[%c0_157, %c0_158] : memref<1x1xf32, #tpu.memory_space<vmem>>, vector<1x1xf32>
    tpu.vector_store %arg12[%c0_157, %c0_158], %761 {strides = array<i32>} : memref<1x1xf32, #tpu.memory_space<vmem>>, vector<1x1xf32>,
    %763 = vector.broadcast %416 : vector<1x8xf32> to vector<2x8xf32>
    %764 = arith.addf %745, %763 : vector<2x8xf32>
    %cst_159 = arith.constant dense<0xFF800000> : vector<2xf32>
    %765 = vector.multi_reduction <maximumf>, %764, %cst_159 [1] : vector<2x8xf32> to vector<2xf32>
    %766 = vector.shape_cast %765 : vector<2xf32> to vector<2x1xf32>
    %767 = vector.broadcast %766 : vector<2x1xf32> to vector<2x8xf32>
    %768 = arith.cmpf oeq, %764, %767 : vector<2x8xf32>
    %c8_i32_160 = arith.constant 8 : i32
    %769 = vector.broadcast %c8_i32_160 : i32 to vector<2x8xi32>
    %770 = arith.select %768, %421, %769 : vector<2x8xi1>, vector<2x8xi32>
    %cst_161 = arith.constant dense<2147483647> : vector<2xi32>
    %771 = vector.multi_reduction <minsi>, %770, %cst_161 [1] : vector<2x8xi32> to vector<2xi32>
    %772 = vector.shape_cast %771 : vector<2xi32> to vector<2x1xi32>
    %773 = vector.broadcast %772 : vector<2x1xi32> to vector<2x8xi32>
    %774 = arith.cmpi eq, %421, %773 : vector<2x8xi32>
    %c0_i32_162 = arith.constant 0 : i32
    %775 = vector.broadcast %c0_i32_162 : i32 to vector<2x8xi32>
    %776 = arith.select %774, %741, %775 : vector<2x8xi1>, vector<2x8xi32>
    %cst_163 = arith.constant dense<0> : vector<2xi32>
    %777 = vector.multi_reduction <add>, %776, %cst_163 [1] : vector<2x8xi32> to vector<2xi32>
    %778 = vector.shape_cast %777 : vector<2xi32> to vector<2x1xi32>
    %c7_i32 = arith.constant 7 : i32
    %779 = vector.broadcast %c7_i32 : i32 to vector<2x1xi32>
    %780 = arith.cmpi sge, %429, %779 : vector<2x1xi32>
    %781 = arith.select %780, %778, %772 : vector<2x1xi1>, vector<2x1xi32>
    %782 = vector.broadcast %781 : vector<2x1xi32> to vector<2x8xi32>
    %783 = arith.cmpi eq, %421, %782 : vector<2x8xi32>
    %c0_i32_164 = arith.constant 0 : i32
    %784 = vector.broadcast %c0_i32_164 : i32 to vector<2x8xi32>
    %785 = arith.select %783, %705, %784 : vector<2x8xi1>, vector<2x8xi32>
    %cst_165 = arith.constant dense<0> : vector<2xi32>
    %786 = vector.multi_reduction <add>, %785, %cst_165 [1] : vector<2x8xi32> to vector<2xi32>
    %787 = vector.shape_cast %786 : vector<2xi32> to vector<2x1xi32>
    %c6_i32 = arith.constant 6 : i32
    %788 = vector.broadcast %c6_i32 : i32 to vector<2x1xi32>
    %789 = arith.cmpi sge, %429, %788 : vector<2x1xi32>
    %790 = arith.select %789, %787, %781 : vector<2x1xi1>, vector<2x1xi32>
    %791 = vector.broadcast %790 : vector<2x1xi32> to vector<2x8xi32>
    %792 = arith.cmpi eq, %421, %791 : vector<2x8xi32>
    %c0_i32_166 = arith.constant 0 : i32
    %793 = vector.broadcast %c0_i32_166 : i32 to vector<2x8xi32>
    %794 = arith.select %792, %669, %793 : vector<2x8xi1>, vector<2x8xi32>
    %cst_167 = arith.constant dense<0> : vector<2xi32>
    %795 = vector.multi_reduction <add>, %794, %cst_167 [1] : vector<2x8xi32> to vector<2xi32>
    %796 = vector.shape_cast %795 : vector<2xi32> to vector<2x1xi32>
    %c5_i32 = arith.constant 5 : i32
    %797 = vector.broadcast %c5_i32 : i32 to vector<2x1xi32>
    %798 = arith.cmpi sge, %429, %797 : vector<2x1xi32>
    %799 = arith.select %798, %796, %790 : vector<2x1xi1>, vector<2x1xi32>
    %800 = vector.broadcast %799 : vector<2x1xi32> to vector<2x8xi32>
    %801 = arith.cmpi eq, %421, %800 : vector<2x8xi32>
    %c0_i32_168 = arith.constant 0 : i32
    %802 = vector.broadcast %c0_i32_168 : i32 to vector<2x8xi32>
    %803 = arith.select %801, %633, %802 : vector<2x8xi1>, vector<2x8xi32>
    %cst_169 = arith.constant dense<0> : vector<2xi32>
    %804 = vector.multi_reduction <add>, %803, %cst_169 [1] : vector<2x8xi32> to vector<2xi32>
    %805 = vector.shape_cast %804 : vector<2xi32> to vector<2x1xi32>
    %c4_i32 = arith.constant 4 : i32
    %806 = vector.broadcast %c4_i32 : i32 to vector<2x1xi32>
    %807 = arith.cmpi sge, %429, %806 : vector<2x1xi32>
    %808 = arith.select %807, %805, %799 : vector<2x1xi1>, vector<2x1xi32>
    %809 = vector.broadcast %808 : vector<2x1xi32> to vector<2x8xi32>
    %810 = arith.cmpi eq, %421, %809 : vector<2x8xi32>
    %c0_i32_170 = arith.constant 0 : i32
    %811 = vector.broadcast %c0_i32_170 : i32 to vector<2x8xi32>
    %812 = arith.select %810, %597, %811 : vector<2x8xi1>, vector<2x8xi32>
    %cst_171 = arith.constant dense<0> : vector<2xi32>
    %813 = vector.multi_reduction <add>, %812, %cst_171 [1] : vector<2x8xi32> to vector<2xi32>
    %814 = vector.shape_cast %813 : vector<2xi32> to vector<2x1xi32>
    %c3_i32 = arith.constant 3 : i32
    %815 = vector.broadcast %c3_i32 : i32 to vector<2x1xi32>
    %816 = arith.cmpi sge, %429, %815 : vector<2x1xi32>
    %817 = arith.select %816, %814, %808 : vector<2x1xi1>, vector<2x1xi32>
    %818 = vector.broadcast %817 : vector<2x1xi32> to vector<2x8xi32>
    %819 = arith.cmpi eq, %421, %818 : vector<2x8xi32>
    %c0_i32_172 = arith.constant 0 : i32
    %820 = vector.broadcast %c0_i32_172 : i32 to vector<2x8xi32>
    %821 = arith.select %819, %561, %820 : vector<2x8xi1>, vector<2x8xi32>
    %cst_173 = arith.constant dense<0> : vector<2xi32>
    %822 = vector.multi_reduction <add>, %821, %cst_173 [1] : vector<2x8xi32> to vector<2xi32>
    %823 = vector.shape_cast %822 : vector<2xi32> to vector<2x1xi32>
    %c2_i32 = arith.constant 2 : i32
    %824 = vector.broadcast %c2_i32 : i32 to vector<2x1xi32>
    %825 = arith.cmpi sge, %429, %824 : vector<2x1xi32>
    %826 = arith.select %825, %823, %817 : vector<2x1xi1>, vector<2x1xi32>
    %827 = vector.broadcast %826 : vector<2x1xi32> to vector<2x8xi32>
    %828 = arith.cmpi eq, %421, %827 : vector<2x8xi32>
    %c0_i32_174 = arith.constant 0 : i32
    %829 = vector.broadcast %c0_i32_174 : i32 to vector<2x8xi32>
    %830 = arith.select %828, %525, %829 : vector<2x8xi1>, vector<2x8xi32>
    %cst_175 = arith.constant dense<0> : vector<2xi32>
    %831 = vector.multi_reduction <add>, %830, %cst_175 [1] : vector<2x8xi32> to vector<2xi32>
    %832 = vector.shape_cast %831 : vector<2xi32> to vector<2x1xi32>
    %c1_i32_176 = arith.constant 1 : i32
    %833 = vector.broadcast %c1_i32_176 : i32 to vector<2x1xi32>
    %834 = arith.cmpi sge, %429, %833 : vector<2x1xi32>
    %835 = arith.select %834, %832, %826 : vector<2x1xi1>, vector<2x1xi32>
    %836 = tpu.concatenate %835, %826, %817, %808, %799, %790, %781, %772 in 1 : vector<2x1xi32>, vector<2x1xi32>, vector<2x1xi32>, vector<2x1xi32>, vector<2x1xi32>, vector<2x1xi32>, vector<2x1xi32>, vector<2x1xi32> -> vector<2x8xi32>
    %837 = vector.broadcast %429 : vector<2x1xi32> to vector<2x8xi32>
    %838 = arith.cmpi sle, %422, %837 : vector<2x8xi32>
    %c0_i32_177 = arith.constant 0 : i32
    %839 = vector.broadcast %c0_i32_177 : i32 to vector<2x8xi32>
    %840 = arith.select %838, %836, %839 : vector<2x8xi1>, vector<2x8xi32>
    %c0_178 = arith.constant 0 : index
    %c0_179 = arith.constant 0 : index
    %841 = vector.load %arg13[%c0_178, %c0_179] : memref<2x8xi32, #tpu.memory_space<vmem>>, vector<2x8xi32>
    tpu.vector_store %arg13[%c0_178, %c0_179], %840 {strides = array<i32>} : memref<2x8xi32, #tpu.memory_space<vmem>>, vector<2x8xi32>,
    return
  }
}

</mosaic_0001>

<bundles_post_ra>
// kernel: bilstm_crf_forward.1
= control target key start
LH: loop header
LB: loop body
LE: loop exit
PB: predicated region body
PF: predicated region fallthrough
CT: control target
= control target key end

     0   :  { %19 = vsyncpa [#allocation4], 0  ;;  %s6198_s0 = inlined_call_operand.vmem [shape: s32[2,8], index: 0, kind: input, shape index: {}]   ;;  %s6199_s1 = inlined_call_operand.vmem [shape: s32[2,8], index: 1, kind: input, shape index: {}]   ;;  %s6200_s2 = inlined_call_operand.vmem [shape: f32[2,8], index: 2, kind: input, shape index: {}]   ;;  %s6201_s3 = inlined_call_operand.hbm [shape: bf16[50,256], index: 3, kind: input, shape index: {}]   ;;  %s6202_s4 = inlined_call_operand.hbm [shape: f32[1,256], index: 4, kind: input, shape index: {}]   ;;  %s6203_s5 = inlined_call_operand.vmem [shape: bf16[32,128], index: 5, kind: input, shape index: {}]   ;;  %s6204_s6 = inlined_call_operand.vmem [shape: bf16[32,128], index: 6, kind: input, shape index: {}]   ;;  %s6205_s7 = inlined_call_operand.vmem [shape: bf16[64,8], index: 7, kind: input, shape index: {}]   ;;  %s6206_s8 = inlined_call_operand.vmem [shape: f32[1,8], index: 8, kind: input, shape index: {}]   ;;  %s6207_s9 = inlined_call_operand.vmem [shape: f32[8,8], index: 9, kind: input, shape index: {}]   ;;  %s6208_s10 = inlined_call_operand.vmem [shape: f32[1,8], index: 10, kind: input, shape index: {}]   ;;  %s6209_s11 = inlined_call_operand.vmem [shape: f32[1,8], index: 11, kind: input, shape index: {}]   ;;  %s6210_s12 = inlined_call_operand.hbm [shape: f32[1,1], index: 12, kind: output, shape index: {0}]   ;;  %s6211_s13 = inlined_call_operand.hbm [shape: s32[2,8], index: 13, kind: output, shape index: {1}]  }
   0x1   :  { %20 = vsyncpa [#allocation7], 0 }
   0x2   :  { %21 = vsyncpa [#allocation5], 0 }
   0x3   :  { %22 = vsyncpa [#allocation10], 0  ;;  %s4744_s25 = smov [#allocation3]   ;;  %s4648_s29 = scalar_lea.hbm %s6201_s3, 896 }
   0x4   :  { %s34_s26 = sshll.u32 %s4744_s25, 4  ;;  %p4649_p0 = scmp.ne.s32.totalorder %s6201_s3, %s4648_s29  ;;  %s35_s26 = int_to_ptr.vmem [resolvable:$true] %s34_s26 }
   0x5   :  { %p4652_p1 = scmp.lt.u32.totalorder %s4648_s29, %s6201_s3 }
   0x7   :  { %p4654_p2 = pnand %p4652_p1, %p4649_p0 }
   0x9   :  { %4657 = shalt.err (!%p4654_p2)
}
   0xa   :  { %s4658_s17 = scalar_lea.vmem %s35_s26, 896  ;;  %p4663_p4 = scmp.lt.s32.totalorder %s35_s26, %s35_s26 }
   0xb   :  { %p4659_p3 = scmp.ne.s32.totalorder %s35_s26, %s4658_s17  ;;  %p4664_p5 = scmp.lt.s32.totalorder %s4658_s17, %s4658_s17 }
   0xd   :  { %p4665_p6 = por %p4664_p5, %p4663_p4 }
   0xf   :  { %p4666_p7 = pnand %p4665_p6, %p4659_p3 }
  0x11   :  { %4669 = shalt.err (!%p4666_p7)
}
  0x12   :  { %s4745_s18 = smov 128   ;;  %s4746_s19 = smov 8  }
  0x13   :  { %40 = dma.hbm_to_vmem [thread:$0]  %s6201_s3, 896, %s35_s26, [#allocation4], %s4745_s18, %s4745_s18, %s4746_s19  }
  0x14   :  { %s4747_s22 = smov [#allocation6]   ;;  %s4670_s27 = scalar_lea.hbm %s6202_s4, 32 }
  0x15   :  { %s47_s23 = sshll.u32 %s4747_s22, 4  ;;  %p4671_p8 = scmp.ne.s32.totalorder %s6202_s4, %s4670_s27  ;;  %s48_s23 = int_to_ptr.vmem [resolvable:$true] %s47_s23 }
  0x16   :  { %p4674_p9 = scmp.lt.u32.totalorder %s4670_s27, %s6202_s4 }
  0x18   :  { %p4676_p10 = pnand %p4674_p9, %p4671_p8 }
  0x1a   :  { %4679 = shalt.err (!%p4676_p10)
}
  0x1b   :  { %s4680_s15 = scalar_lea.vmem %s48_s23, 32  ;;  %p4685_p12 = scmp.lt.s32.totalorder %s48_s23, %s48_s23 }
  0x1c   :  { %p4681_p11 = scmp.ne.s32.totalorder %s48_s23, %s4680_s15  ;;  %p4686_p13 = scmp.lt.s32.totalorder %s4680_s15, %s4680_s15 }
  0x1e   :  { %p4687_p0 = por %p4686_p13, %p4685_p12 }
  0x20   :  { %p4688_p1 = pnand %p4687_p0, %p4681_p11 }
  0x22   :  { %4691 = shalt.err (!%p4688_p1)
}
  0x23   :  { %50 = dma.hbm_to_vmem [thread:$0]  %s6202_s4, 32, %s48_s23, [#allocation7]  }
  0x24   :  { %4736 = dma.done.wait [#allocation4], 896  }
  0x25   :  { %4737 = vsyncadd [#allocation4], 4294966400 }
  0x26   :  { %4738 = dma.done.wait [#allocation7], 32  }
  0x27   :  { %4739 = vsyncadd [#allocation7], 4294967264  ;;  %v73_v0 = vlaneseq  ;;  %v6212_v1 = vmov 0.0   ;;  %vm4749_vm0 = vmmov 0   ;;  %v4750_v3 = vmov 0   ;;  %v4877_v10 = vld [vmem:[%s6203_s5] sm:$0xff]  }
  0x28   :  { %4136 = vmatprep.subr.bf16.mxu1 %v6212_v1  ;;  %4140 = vmatprep.mubr.msk.bf16.mxu1 %vm4749_vm0, %v6212_v1  ;;  %v72_v6 = vld [vmem:[%s6198_s0] sm:$0x3]  ;;  %v4305_v8 = vld [vmem:[#allocation3 + $0x4] ss:$8 sps:$4 sm:$0xff]   ;;  %v4307_v9 = vld [vmem:[#allocation3] ss:$8 sps:$4 sm:$0xff]  }
  0x29   :  { %v4861_v2 = vshrl.u32 %v73_v0, 7  ;;  %193 = vmatprep.mubr.bf16.mxu0 %v4750_v3  ;;  %161 = vmatprep.subr.bf16.mxu0 %v4305_v8  ;;  %v4309_v12 = vld [vmem:[#allocation3 + $0x14] ss:$8 sps:$4 sm:$0xff]   ;;  %v4311_v13 = vld [vmem:[#allocation3 + $0x10] ss:$8 sps:$4 sm:$0xff]   ;;  %vm154_vm1 = vcmask 1040384  }
  0x2a   :  { %162 = vmatpush1.bf16.msra.mxu0 %v4307_v9  ;;  %4137 = vmatpush3.bf16.msra.mxu1 %v4877_v10  ;;  %v4884_v14 = vld [vmem:[%s6203_s5 + $0x8] sm:$0xff]   ;;  %v4313_v15 = vld [vmem:[#allocation3 + $0x24] ss:$8 sps:$4 sm:$0xff]   ;;  %v4315_v16 = vld [vmem:[#allocation3 + $0x20] ss:$8 sps:$4 sm:$0xff]   ;;  %v4914_v23 = vand.u32 127, %v73_v0 }
  0x2b   :  { %v4865_v4 = vsub.s32 0, %v4861_v2  ;;  %v4868_v5 = vsub.s32 1, %v4861_v2  ;;  %163 = vmatprep.subr.bf16.mxu0 %v4309_v12  ;;  %4138 = vmatprep.subr.bf16.mxu1 %v6212_v1  ;;  %v4891_v17 = vld [vmem:[%s6204_s6] sm:$0xff]   ;;  %v4899_v21 = vld [vmem:[%s6204_s6 + $0x8] sm:$0xff]   ;;  %vm150_vm4 = vcmask 408576   ;;  %s4751_s24 = smov 32  }
  0x2c   :  { %v102_v18 = vld [vmem:[#allocation3 + $0x30] sm:$0x11]  ;;  %v103_v37 = vld [vmem:[#allocation6] sm:$0x3]  ;;  %vm458_vm5 = vcmask 1041409   ;;  %s4752_s25 = smov 64  }
  0x2d   :  { %v78_v7 = vrot.slane %v72_v6, %v4865_v4  ;;  %v85_v11 = vrot.slane %v72_v6, %v4868_v5  ;;  %v4016_v19 = vcombine.high %v102_v18, %v102_v18  ;;  %v4015_v20 = vcombine.low %v102_v18, %v102_v18  ;;  %s4761_s26 = smov 1   ;;  %s4763_s16 = smov [#allocation9]  }
  0x2e   :  { %164 = vmatpush1.bf16.msra.mxu0 %v4311_v13  ;;  %4139 = vmatpush3.bf16.msra.mxu1 %v4884_v14  ;;  %v112_v38 = vrot.slane %v103_v37, %v4868_v5  ;;  %v108_v39 = vrot.slane %v103_v37, %v4865_v4  ;;  %vm224_vm6 = vcmask 261120   ;;  %vm437_vm7 = vcmask 253952   ;;  %s3993_s17 = sshll.u32 %s4763_s16, 4  ;;  %s6163_s17 = int_to_ptr.vmem [resolvable:$true] %s3993_s17 }
  0x2f   :  { %80 = vbcast.lane.b32.xlu0 %v78_v7, 256  ;;  %165 = vmatprep.subr.bf16.mxu0 %v4313_v15  ;;  %v156_v22 = vsel %vm154_vm1, %v4015_v20, 0  ;;  %vm448_vm8 = vcmask 523527   ;;  %vm690_vm9 = vcmask 254977   ;;  %vm701_vm10 = vcmask 522502  }
  0x30   :  { %4144 = vmatprep.subr.bf16.mxu1 %v6212_v1  ;;  %vm943_vm11 = vcmask 256002   ;;  %vm954_vm12 = vcmask 521477   ;;  %vm1197_vm13 = vcmask 257027   ;;  %vm1208_vm14 = vcmask 520452  }
  0x31   :  { %4141 = vmatmul.mubr.bf16.vlgmr.msra.gmra.mrb[0].mxu1 %v4750_v3  ;;  %vm1451_vm15 = vcmask 258052  }
  0x32   :  { %166 = vmatpush1.bf16.msra.mxu0 %v4315_v16  ;;  %4145 = vmatpush3.bf16.msra.mxu1 %v4891_v17 }
  0x33   :  { %87 = vbcast.lane.b32.xlu0 %v85_v11, 256  ;;  %4017 = vmatprep.subr.msk.bf16.mxu0 %vm154_vm1, %v4016_v19  ;;  %vm1705_vm1 = vcmask 259077  }
  0x34   :  { %4146 = vmatprep.subr.bf16.mxu1 %v6212_v1  ;;  %4148 = vmatprep.mubr.msk.bf16.mxu1 %vm4749_vm0, %v6212_v1 }
  0x36   :  { %168 = vmatpush1.bf16.msra.mxu0 %v156_v22  ;;  %4147 = vmatpush3.bf16.msra.mxu1 %v4899_v21 }
  0x37   :  { %4152 = vmatprep.subr.bf16.mxu1 %v6212_v1  ;;  %4168 = vmatprep.subr.bf16.mxu0 %v6212_v1 }
  0x39   :  { %4149 = vmatmul.mubr.bf16.vlgmr.msra.gmra.mrb[4].mxu1 %v4750_v3 }
  0x3a   :  { %4153 = vmatpush3.bf16.msra.mxu1 %v4877_v10  ;;  %4156 = vmatprep.mubr.msk.bf16.mxu1 %vm4749_vm0, %v6212_v1 }
  0x3b   :  { %4154 = vmatprep.subr.bf16.mxu1 %v6212_v1 }
  0x3e   :  { %4155 = vmatpush3.bf16.msra.mxu1 %v4884_v14 }
  0x3f   :  { %4160 = vmatprep.subr.bf16.mxu1 %v6212_v1 }
  0xa1   :  { %v81_v24 = vpop.permute.xlu0 %80 }
  0xa2   :  { %vm89_vm2 = vcmp.eq.s32.totalorder %v4914_v23, %v81_v24 }
  0xa3   :  { %v4007_v26 = vsel %vm89_vm2, 1.0, %v6212_v1  ;;  %vm1716_vm2 = vcmask 518402  }
  0xa5   :  { %v88_v25 = vpop.permute.xlu0 %87 }
  0xa6   :  { %vm90_vm3 = vcmp.eq.s32.totalorder %v4914_v23, %v88_v25 }
  0xa7   :  { %v4008_v27 = vsel %vm90_vm3, 1.0, %v6212_v1  ;;  %vm1958_vm3 = vcmask 260102  }
  0xa8   :  { %v95_v28 = vpack.c.bf16 %v4008_v27, %v4007_v26 }
  0xaa   :  { %4018 = vmatmul.mubr.msk.bf16.vlgmr.msra.gmra.mrb[0].mxu0 %vm150_vm4, %v95_v28  ;;  %vm1969_vm4 = vcmask 517377  }
  0xab   :  { %4169 = vmatpush3.bf16.msra.mxu0 %v4877_v10  ;;  %4172 = vmatprep.mubr.msk.bf16.mxu0 %vm4749_vm0, %v6212_v1 }
  0xac   :  { %4170 = vmatprep.subr.bf16.mxu0 %v6212_v1 }
  0xaf   :  { %4171 = vmatpush3.bf16.msra.mxu0 %v4884_v14 }
  0xb0   :  { %4184 = vmatprep.subr.bf16.mxu0 %v6212_v1 }
 0x104   :  { %v262_v29 = vpop.f32.mrb[0].mxu1 }
 0x105   :  { %v4142_v30 = vpop.f32.mrb[1].mxu1  ;;  %v269_v42 = vrot.slane %v262_v29, 1 }
 0x106   :  { %v265_v31 = vpop.f32.mrb[2].mxu1 }
 0x107   :  { %v4143_v32 = vpop.f32.mrb[3].mxu1 }
 0x10c   :  { %v368_v33 = vpop.f32.mrb[4].mxu1 }
 0x10d   :  { %v4150_v34 = vpop.f32.mrb[5].mxu1  ;;  %v375_v41 = vrot.slane %v368_v33, 1  ;;  %v376_v51 = vrot.slane %v368_v33, 2 }
 0x10e   :  { %v371_v35 = vpop.f32.mrb[6].mxu1 }
 0x10f   :  { %v4151_v36 = vpop.f32.mrb[7].mxu1 }
 0x17d   :  { %v195_v40 = vpop.f32.mrb[0].mxu0 }
 0x17e   :  { %v197_v43 = vpop.f32.mrb[1].mxu0  ;;  %v4930_v46 = vadd.f32 %v195_v40, %v108_v39 }
 0x17f   :  { %v4928_v44 = vadd.f32 %v197_v43, %v112_v38  ;;  %v199_v45 = vpop.f32.mrb[2].mxu0 }
 0x180   :  { %v4932_v47 = vadd.f32 %v199_v45, %v108_v39  ;;  %v201_v48 = vpop.f32.mrb[3].mxu0  ;;  %v272_v53 = vadd.f32 %v262_v29, %v4930_v46 }
 0x181   :  { %v379_v49 = vadd.f32 %v375_v41, %v4928_v44  ;;  %v4936_v52 = vadd.f32 %v201_v48, %v112_v38 }
 0x182   :  { %v273_v50 = vadd.f32 %v269_v42, %v4932_v47  ;;  %v4021_v61 = vmul.f32 -1.442695, %v272_v53 }
 0x183   :  { %4324 = vtanh.f32 %v379_v49  ;;  %v380_v54 = vadd.f32 %v376_v51, %v4936_v52  ;;  %v4025_v60 = vmul.f32 -1.442695, %v379_v49 }
 0x184   :  { %4326 = vtanh.f32 %v273_v50  ;;  %v4022_v59 = vmul.f32 -1.442695, %v273_v50 }
 0x185   :  { %4328 = vtanh.f32 %v272_v53  ;;  %v4026_v62 = vmul.f32 -1.442695, %v380_v54 }
 0x186   :  { %4330 = vtanh.f32 %v380_v54 }
 0x187   :  { %4332 = vpow2.f32 %v4022_v59 }
 0x188   :  { %4334 = vpow2.f32 %v4025_v60 }
 0x189   :  { %4336 = vpow2.f32 %v4021_v61 }
 0x18a   :  { %4338 = vpow2.f32 %v4026_v62 }
 0x18d   :  { %v4325_v55 = vpop.eup %4324 }
 0x18e   :  { %v4327_v56 = vpop.eup %4326  ;;  %399 = vrot.lane.b32.xlu0 %v4325_v55, %s4751_s24 }
 0x18f   :  { %294 = vrot.lane.b32.xlu1 %v4327_v56, %s4751_s24  ;;  %v4329_v57 = vpop.eup %4328 }
 0x190   :  { %v4331_v58 = vpop.eup %4330 }
 0x191   :  { %v4333_v63 = vpop.eup %4332 }
 0x192   :  { %v4335_v0 = vpop.eup %4334  ;;  %v281_v6 = vadd.f32 1.0, %v4333_v63 }
 0x193   :  { %292 = vrot.lane.b32.xlu1 %v4329_v57, %s4751_s24  ;;  %v4337_v7 = vpop.eup %4336  ;;  %v387_v8 = vadd.f32 1.0, %v4335_v0 }
 0x194   :  { %4340 = vrcp.f32 %v281_v6  ;;  %v280_v9 = vadd.f32 1.0, %v4337_v7  ;;  %v4339_v11 = vpop.eup %4338 }
 0x195   :  { %4342 = vrcp.f32 %v387_v8  ;;  %v388_v12 = vadd.f32 1.0, %v4339_v11 }
 0x196   :  { %4344 = vrcp.f32 %v280_v9 }
 0x197   :  { %401 = vrot.lane.b32.xlu1 %v4331_v58, %s4751_s24  ;;  %4346 = vrcp.f32 %v388_v12 }
 0x19e   :  { %v4341_v13 = vpop.eup %4340 }
 0x19f   :  { %v4343_v19 = vpop.eup %4342  ;;  %v289_v29 = vmul.f32 0.0, %v4341_v13 }
 0x1a0   :  { %v4345_v20 = vpop.eup %4344  ;;  %v395_v32 = vmul.f32 0.0, %v4343_v19 }
 0x1a1   :  { %v4347_v26 = vpop.eup %4346  ;;  %v288_v33 = vmul.f32 0.0, %v4345_v20 }
 0x1a2   :  { %v396_v38 = vmul.f32 0.0, %v4347_v26 }
 0x200   :  { %v400_v18 = vpop.permute.xlu0 %399 }
 0x201   :  { %v295_v15 = vpop.permute.xlu1 %294  ;;  %v405_v24 = vmul.f32 %v4343_v19, %v400_v18 }
 0x202   :  { %v299_v16 = vmul.f32 %v4341_v13, %v295_v15 }
 0x204   :  { %304 = vrot.lane.b32.xlu0 %v299_v16, %s4751_s24 }
 0x205   :  { %v293_v22 = vpop.permute.xlu1 %292 }
 0x206   :  { %v298_v25 = vmul.f32 %v4345_v20, %v293_v22 }
 0x208   :  { %409 = vrot.lane.b32.xlu0 %v405_v24, %s4751_s24  ;;  %302 = vrot.lane.b32.xlu1 %v298_v25, %s4751_s24 }
 0x209   :  { %v402_v27 = vpop.permute.xlu1 %401 }
 0x20a   :  { %v406_v28 = vmul.f32 %v4347_v26, %v402_v27 }
 0x20c   :  { %411 = vrot.lane.b32.xlu1 %v406_v28, %s4751_s24 }
 0x276   :  { %v305_v30 = vpop.permute.xlu0 %304 }
 0x277   :  { %v4948_v31 = vadd.f32 %v305_v30, %v289_v29 }
 0x279   :  { %4348 = vtanh.f32 %v4948_v31 }
 0x27a   :  { %v410_v34 = vpop.permute.xlu0 %409  ;;  %v303_v35 = vpop.permute.xlu1 %302 }
 0x27b   :  { %v4951_v36 = vadd.f32 %v410_v34, %v395_v32  ;;  %v4953_v37 = vadd.f32 %v303_v35, %v288_v33 }
 0x27d   :  { %4350 = vtanh.f32 %v4951_v36 }
 0x27e   :  { %4352 = vtanh.f32 %v4953_v37  ;;  %v412_v39 = vpop.permute.xlu1 %411 }
 0x27f   :  { %v4957_v40 = vadd.f32 %v412_v39, %v396_v38 }
 0x281   :  { %4354 = vtanh.f32 %v4957_v40 }
 0x283   :  { %v4349_v41 = vpop.eup %4348 }
 0x284   :  { %316 = vrot.lane.b32.xlu0 %v4349_v41, %s4751_s24 }
 0x287   :  { %v4351_v42 = vpop.eup %4350 }
 0x288   :  { %v4353_v43 = vpop.eup %4352  ;;  %421 = vrot.lane.b32.xlu0 %v4351_v42, %s4751_s24 }
 0x289   :  { %314 = vrot.lane.b32.xlu1 %v4353_v43, %s4751_s24 }
 0x28b   :  { %v4355_v45 = vpop.eup %4354 }
 0x28d   :  { %423 = vrot.lane.b32.xlu1 %v4355_v45, %s4751_s24 }
 0x2f6   :  { %v317_v48 = vpop.permute.xlu0 %316 }
 0x2f7   :  { %v4964_v49 = vmul.f32 %v4341_v13, %v317_v48 }
 0x2f9   :  { %v452_v50 = vpack.c.bf16 %v4964_v49, %v4964_v49 }
 0x2fa   :  { %v422_v51 = vpop.permute.xlu0 %421 }
 0x2fb   :  { %v4968_v53 = vmul.f32 %v4343_v19, %v422_v51  ;;  %v315_v54 = vpop.permute.xlu1 %314  ;;  %v456_v55 = vunpack.c.l.b16 %v452_v50 }
 0x2fc   :  { %v4970_v56 = vmul.f32 %v4345_v20, %v315_v54 }
 0x2fd   :  { %v566_v57 = vpack.c.bf16 %v4968_v53, %v4968_v53  ;;  %v457_v60 = vrot.slane %v456_v55, 7 }
 0x2fe   :  { %v451_v58 = vpack.c.bf16 %v4970_v56, %v4970_v56 }
 0x2ff   :  { %v424_v59 = vpop.permute.xlu1 %423  ;;  %v570_v63 = vunpack.c.l.b16 %v566_v57 }
 0x300   :  { %v455_v61 = vunpack.c.l.b16 %v451_v58  ;;  %v4976_v62 = vmul.f32 %v4347_v26, %v424_v59 }
 0x301   :  { %v572_v9 = vrot.slane %v570_v63, 7 }
 0x302   :  { %v567_v0 = vpack.c.bf16 %v4976_v62, %v4976_v62  ;;  %v459_v6 = vsel %vm458_vm5, %v457_v60, %v455_v61 }
 0x303   :  { %v460_v7 = vpack.c.b16 %v459_v6, %v459_v6 }
 0x304   :  { %v571_v8 = vunpack.c.l.b16 %v567_v0 }
 0x305   :  { %461 = vrot.lane.b32.xlu0 %v460_v7, %s4752_s25 }
 0x306   :  { %v573_v11 = vrot.slane %v571_v8, 6 }
 0x308   :  { %v574_v12 = vsel %vm458_vm5, %v573_v11, %v572_v9 }
 0x309   :  { %v575_v13 = vpack.c.b16 %v574_v12, %v574_v12 }
 0x30b   :  { %576 = vrot.lane.b32.xlu1 %v575_v13, %s4752_s25 }
 0x377   :  { %v462_v15 = vpop.permute.xlu0 %461 }
 0x378   :  { %4157 = vmatmul.mubr.msk.bf16.vlgmr.msra.gmra.mrb[8].mxu1 %vm224_vm6, %v462_v15 }
 0x379   :  { %4161 = vmatpush3.bf16.msra.mxu1 %v4891_v17  ;;  %4164 = vmatprep.mubr.msk.bf16.mxu1 %vm4749_vm0, %v6212_v1 }
 0x37a   :  { %4162 = vmatprep.subr.bf16.mxu1 %v6212_v1 }
 0x37d   :  { %4163 = vmatpush3.bf16.msra.mxu1 %v4899_v21  ;;  %v577_v16 = vpop.permute.xlu1 %576 }
 0x37e   :  { %4176 = vmatprep.subr.bf16.mxu1 %v6212_v1 }
 0x380   :  { %4165 = vmatmul.mubr.msk.bf16.vlgmr.msra.gmra.mrb[12].mxu1 %vm224_vm6, %v577_v16 }
 0x381   :  { %4177 = vmatpush3.bf16.msra.mxu1 %v4891_v17  ;;  %4180 = vmatprep.mubr.msk.bf16.mxu1 %vm4749_vm0, %v6212_v1 }
 0x382   :  { %4178 = vmatprep.subr.bf16.mxu1 %v6212_v1 }
 0x385   :  { %4179 = vmatpush3.bf16.msra.mxu1 %v4899_v21 }
 0x386   :  { %4192 = vmatprep.subr.bf16.mxu1 %v6212_v1 }
 0x44b   :  { %v500_v18 = vpop.f32.mrb[8].mxu1 }
 0x44c   :  { %v507_v19 = vrot.slane %v500_v18, 7  ;;  %v4158_v20 = vpop.f32.mrb[9].mxu1  ;;  %v511_v35 = vadd.f32 %v500_v18, %v4932_v47 }
 0x44d   :  { %v503_v22 = vpop.f32.mrb[10].mxu1 }
 0x44e   :  { %v510_v24 = vadd.f32 %v507_v19, %v4930_v46  ;;  %v4159_v25 = vpop.f32.mrb[11].mxu1  ;;  %v4029_v50 = vmul.f32 -1.442695, %v511_v35  ;;  %v528_v19 = vrot.slane %v4953_v37, 7 }
 0x44f   :  { %v644_v25 = vrot.slane %v4951_v36, 1 }
 0x450   :  { %4356 = vtanh.f32 %v510_v24  ;;  %v4028_v43 = vmul.f32 -1.442695, %v510_v24 }
 0x453   :  { %v615_v26 = vpop.f32.mrb[12].mxu1 }
 0x454   :  { %v622_v27 = vrot.slane %v615_v26, 2  ;;  %v623_v28 = vrot.slane %v615_v26, 3  ;;  %v4166_v29 = vpop.f32.mrb[13].mxu1  ;;  %v645_v26 = vrot.slane %v4957_v40, 1 }
 0x455   :  { %v618_v30 = vpop.f32.mrb[14].mxu1 }
 0x456   :  { %v626_v32 = vadd.f32 %v622_v27, %v4928_v44  ;;  %v627_v33 = vadd.f32 %v623_v28, %v4936_v52  ;;  %v4167_v34 = vpop.f32.mrb[15].mxu1  ;;  %v529_v30 = vrot.slane %v4948_v31, 7 }
 0x458   :  { %4358 = vtanh.f32 %v626_v32  ;;  %v4031_v45 = vmul.f32 -1.442695, %v626_v32  ;;  %v4032_v48 = vmul.f32 -1.442695, %v627_v33 }
 0x459   :  { %4360 = vtanh.f32 %v627_v33 }
 0x45a   :  { %v4357_v38 = vpop.eup %4356  ;;  %4362 = vtanh.f32 %v511_v35 }
 0x45b   :  { %536 = vrot.lane.b32.xlu0 %v4357_v38, %s4751_s24  ;;  %4364 = vpow2.f32 %v4028_v43 }
 0x45c   :  { %4366 = vpow2.f32 %v4031_v45 }
 0x45d   :  { %4368 = vpow2.f32 %v4032_v48 }
 0x45e   :  { %4370 = vpow2.f32 %v4029_v50 }
 0x462   :  { %v4359_v39 = vpop.eup %4358 }
 0x463   :  { %v4361_v41 = vpop.eup %4360  ;;  %652 = vrot.lane.b32.xlu1 %v4359_v39, %s4751_s24 }
 0x464   :  { %654 = vrot.lane.b32.xlu0 %v4361_v41, %s4751_s24  ;;  %v4363_v42 = vpop.eup %4362 }
 0x465   :  { %v4365_v51 = vpop.eup %4364 }
 0x466   :  { %v518_v54 = vadd.f32 1.0, %v4365_v51  ;;  %v4367_v55 = vpop.eup %4366 }
 0x467   :  { %538 = vrot.lane.b32.xlu1 %v4363_v42, %s4751_s24  ;;  %v4369_v57 = vpop.eup %4368  ;;  %v634_v58 = vadd.f32 1.0, %v4367_v55 }
 0x468   :  { %4372 = vrcp.f32 %v518_v54  ;;  %v4371_v59 = vpop.eup %4370  ;;  %v635_v60 = vadd.f32 1.0, %v4369_v57 }
 0x469   :  { %v519_v61 = vadd.f32 1.0, %v4371_v59  ;;  %4374 = vrcp.f32 %v634_v58 }
 0x46a   :  { %4376 = vrcp.f32 %v635_v60 }
 0x46b   :  { %4378 = vrcp.f32 %v519_v61 }
 0x472   :  { %v4373_v63 = vpop.eup %4372 }
 0x473   :  { %v4375_v7 = vpop.eup %4374  ;;  %v532_v20 = vmul.f32 %v4373_v63, %v528_v19 }
 0x474   :  { %v4377_v9 = vpop.eup %4376  ;;  %v648_v27 = vmul.f32 %v4375_v7, %v644_v25 }
 0x475   :  { %v4379_v15 = vpop.eup %4378  ;;  %v649_v28 = vmul.f32 %v4377_v9, %v645_v26 }
 0x476   :  { %v533_v37 = vmul.f32 %v4379_v15, %v529_v30 }
 0x4cd   :  { %v537_v0 = vpop.permute.xlu0 %536 }
 0x4ce   :  { %v542_v6 = vmul.f32 %v4373_v63, %v537_v0 }
 0x4d0   :  { %546 = vrot.lane.b32.xlu0 %v542_v6, %s4751_s24 }
 0x4d5   :  { %v653_v8 = vpop.permute.xlu1 %652 }
 0x4d6   :  { %v655_v11 = vpop.permute.xlu0 %654  ;;  %v658_v12 = vmul.f32 %v4375_v7, %v653_v8 }
 0x4d7   :  { %v659_v13 = vmul.f32 %v4377_v9, %v655_v11 }
 0x4d8   :  { %662 = vrot.lane.b32.xlu1 %v658_v12, %s4751_s24 }
 0x4d9   :  { %664 = vrot.lane.b32.xlu0 %v659_v13, %s4751_s24  ;;  %v539_v16 = vpop.permute.xlu1 %538 }
 0x4da   :  { %v543_v18 = vmul.f32 %v4379_v15, %v539_v16 }
 0x4dc   :  { %548 = vrot.lane.b32.xlu1 %v543_v18, %s4751_s24 }
 0x542   :  { %v547_v22 = vpop.permute.xlu0 %546 }
 0x543   :  { %v5011_v24 = vadd.f32 %v547_v22, %v532_v20 }
 0x545   :  { %4380 = vtanh.f32 %v5011_v24 }
 0x54a   :  { %v663_v29 = vpop.permute.xlu1 %662 }
 0x54b   :  { %v665_v32 = vpop.permute.xlu0 %664  ;;  %v5017_v33 = vadd.f32 %v663_v29, %v648_v27 }
 0x54c   :  { %v5019_v34 = vadd.f32 %v665_v32, %v649_v28 }
 0x54d   :  { %4382 = vtanh.f32 %v5017_v33 }
 0x54e   :  { %4384 = vtanh.f32 %v5019_v34  ;;  %v549_v35 = vpop.permute.xlu1 %548 }
 0x54f   :  { %v5023_v38 = vadd.f32 %v549_v35, %v533_v37  ;;  %v4381_v36 = vpop.eup %4380 }
 0x550   :  { %558 = vrot.lane.b32.xlu0 %v4381_v36, %s4751_s24 }
 0x551   :  { %4386 = vtanh.f32 %v5023_v38 }
 0x557   :  { %v4383_v40 = vpop.eup %4382 }
 0x558   :  { %v4385_v31 = vpop.eup %4384  ;;  %674 = vrot.lane.b32.xlu1 %v4383_v40, %s4751_s24 }
 0x559   :  { %676 = vrot.lane.b32.xlu0 %v4385_v31, %s4751_s24 }
 0x55b   :  { %v4387_v39 = vpop.eup %4386 }
 0x55c   :  { %560 = vrot.lane.b32.xlu1 %v4387_v39, %s4751_s24 }
 0x5c2   :  { %v559_v41 = vpop.permute.xlu0 %558 }
 0x5c3   :  { %v5030_v42 = vmul.f32 %v4373_v63, %v559_v41 }
 0x5c5   :  { %v704_v45 = vpack.c.bf16 %v5030_v42, %v5030_v42 }
 0x5c7   :  { %v708_v58 = vunpack.c.l.b16 %v704_v45 }
 0x5ca   :  { %v675_v43 = vpop.permute.xlu1 %674 }
 0x5cb   :  { %v677_v48 = vpop.permute.xlu0 %676  ;;  %v5034_v50 = vmul.f32 %v4375_v7, %v675_v43  ;;  %v710_v7 = vrot.slane %v708_v58, 1 }
 0x5cc   :  { %v5036_v51 = vmul.f32 %v4377_v9, %v677_v48 }
 0x5cd   :  { %v819_v54 = vpack.c.bf16 %v5034_v50, %v5034_v50 }
 0x5ce   :  { %v820_v55 = vpack.c.bf16 %v5036_v51, %v5036_v51  ;;  %v561_v57 = vpop.permute.xlu1 %560 }
 0x5cf   :  { %v823_v59 = vunpack.c.l.b16 %v819_v54  ;;  %v5042_v60 = vmul.f32 %v4379_v15, %v561_v57 }
 0x5d0   :  { %v824_v61 = vunpack.c.l.b16 %v820_v55 }
 0x5d1   :  { %v825_v63 = vrot.slane %v823_v59, 6  ;;  %v705_v0 = vpack.c.bf16 %v5042_v60, %v5042_v60 }
 0x5d2   :  { %v826_v6 = vrot.slane %v824_v61, 5 }
 0x5d3   :  { %v709_v8 = vunpack.c.l.b16 %v705_v0 }
 0x5d4   :  { %v827_v9 = vsel %vm458_vm5, %v826_v6, %v825_v63 }
 0x5d5   :  { %v828_v11 = vpack.c.b16 %v827_v9, %v827_v9  ;;  %v711_v12 = vsel %vm458_vm5, %v709_v8, %v710_v7 }
 0x5d6   :  { %v712_v13 = vpack.c.b16 %v711_v12, %v711_v12 }
 0x5d7   :  { %829 = vrot.lane.b32.xlu1 %v828_v11, %s4752_s25 }
 0x5d8   :  { %713 = vrot.lane.b32.xlu0 %v712_v13, %s4752_s25 }
 0x649   :  { %v830_v15 = vpop.permute.xlu1 %829 }
 0x64a   :  { %4181 = vmatmul.mubr.msk.bf16.vlgmr.msra.gmra.mrb[16].mxu1 %vm224_vm6, %v830_v15  ;;  %v714_v16 = vpop.permute.xlu0 %713 }
 0x64b   :  { %4173 = vmatmul.mubr.msk.bf16.vlgmr.msra.gmra.mrb[4].mxu0 %vm224_vm6, %v714_v16  ;;  %4193 = vmatpush3.bf16.msra.mxu1 %v4891_v17 }
 0x64c   :  { %4185 = vmatpush3.bf16.msra.mxu0 %v4877_v10  ;;  %4188 = vmatprep.mubr.msk.bf16.mxu0 %vm4749_vm0, %v6212_v1 }
 0x64d   :  { %4186 = vmatprep.subr.bf16.mxu0 %v6212_v1  ;;  %4194 = vmatprep.subr.bf16.mxu1 %v6212_v1 }
 0x64e   :  { %4196 = vmatprep.mubr.msk.bf16.mxu1 %vm4749_vm0, %v6212_v1 }
 0x64f   :  { %4195 = vmatpush3.bf16.msra.mxu1 %v4899_v21 }
 0x650   :  { %4187 = vmatpush3.bf16.msra.mxu0 %v4884_v14  ;;  %4208 = vmatprep.subr.bf16.mxu1 %v6212_v1 }
 0x651   :  { %4200 = vmatprep.subr.bf16.mxu0 %v6212_v1 }
 0x71d   :  { %v868_v18 = vpop.f32.mrb[16].mxu1 }
 0x71e   :  { %v4182_v19 = vpop.f32.mrb[17].mxu1  ;;  %v752_v20 = vpop.f32.mrb[4].mxu0  ;;  %v875_v32 = vrot.slane %v868_v18, 3  ;;  %v876_v35 = vrot.slane %v868_v18, 4 }
 0x71f   :  { %v871_v22 = vpop.f32.mrb[18].mxu1  ;;  %v4174_v25 = vpop.f32.mrb[5].mxu0  ;;  %v759_v26 = vrot.slane %v752_v20, 6  ;;  %v760_v29 = vrot.slane %v752_v20, 7 }
 0x720   :  { %v4183_v27 = vpop.f32.mrb[19].mxu1  ;;  %v755_v28 = vpop.f32.mrb[6].mxu0  ;;  %v879_v40 = vadd.f32 %v875_v32, %v4928_v44  ;;  %v880_v31 = vadd.f32 %v876_v35, %v4936_v52 }
 0x721   :  { %v4175_v30 = vpop.f32.mrb[7].mxu0  ;;  %v763_v37 = vadd.f32 %v759_v26, %v4930_v46  ;;  %v764_v36 = vadd.f32 %v760_v29, %v4932_v47  ;;  %v781_v27 = vrot.slane %v5011_v24, 7  ;;  %v782_v28 = vrot.slane %v5023_v38, 7 }
 0x722   :  { %v4037_v55 = vmul.f32 -1.442695, %v879_v40  ;;  %v4038_v57 = vmul.f32 -1.442695, %v880_v31 }
 0x723   :  { %4388 = vtanh.f32 %v763_v37  ;;  %v4034_v48 = vmul.f32 -1.442695, %v763_v37  ;;  %v4035_v54 = vmul.f32 -1.442695, %v764_v36  ;;  %v897_v37 = vrot.slane %v5017_v33, 1 }
 0x724   :  { %4390 = vtanh.f32 %v764_v36 }
 0x725   :  { %4392 = vtanh.f32 %v879_v40  ;;  %v898_v40 = vrot.slane %v5019_v34, 1 }
 0x726   :  { %4394 = vtanh.f32 %v880_v31 }
 0x727   :  { %4396 = vpow2.f32 %v4034_v48 }
 0x728   :  { %4398 = vpow2.f32 %v4035_v54 }
 0x729   :  { %4400 = vpow2.f32 %v4037_v55 }
 0x72a   :  { %4402 = vpow2.f32 %v4038_v57 }
 0x72d   :  { %v4389_v39 = vpop.eup %4388 }
 0x72e   :  { %v4391_v41 = vpop.eup %4390  ;;  %789 = vrot.lane.b32.xlu0 %v4389_v39, %s4751_s24 }
 0x72f   :  { %791 = vrot.lane.b32.xlu1 %v4391_v41, %s4751_s24  ;;  %v4393_v43 = vpop.eup %4392 }
 0x730   :  { %v4395_v45 = vpop.eup %4394 }
 0x731   :  { %v4397_v58 = vpop.eup %4396 }
 0x732   :  { %905 = vrot.lane.b32.xlu0 %v4393_v43, %s4751_s24  ;;  %v4399_v59 = vpop.eup %4398  ;;  %v771_v61 = vadd.f32 1.0, %v4397_v58 }
 0x733   :  { %907 = vrot.lane.b32.xlu1 %v4395_v45, %s4751_s24  ;;  %v4401_v63 = vpop.eup %4400  ;;  %v772_v0 = vadd.f32 1.0, %v4399_v59 }
 0x734   :  { %v4403_v6 = vpop.eup %4402  ;;  %v887_v7 = vadd.f32 1.0, %v4401_v63  ;;  %4404 = vrcp.f32 %v771_v61 }
 0x735   :  { %v888_v8 = vadd.f32 1.0, %v4403_v6  ;;  %4406 = vrcp.f32 %v772_v0 }
 0x736   :  { %4408 = vrcp.f32 %v887_v7 }
 0x737   :  { %4410 = vrcp.f32 %v888_v8 }
 0x73e   :  { %v4405_v9 = vpop.eup %4404 }
 0x73f   :  { %v4407_v12 = vpop.eup %4406  ;;  %v785_v29 = vmul.f32 %v4405_v9, %v781_v27 }
 0x740   :  { %v4409_v18 = vpop.eup %4408  ;;  %v786_v30 = vmul.f32 %v4407_v12, %v782_v28 }
 0x741   :  { %v4411_v20 = vpop.eup %4410  ;;  %v901_v39 = vmul.f32 %v4409_v18, %v897_v37 }
 0x742   :  { %v902_v24 = vmul.f32 %v4411_v20, %v898_v40 }
 0x7a0   :  { %v790_v11 = vpop.permute.xlu0 %789 }
 0x7a1   :  { %v795_v13 = vmul.f32 %v4405_v9, %v790_v11  ;;  %v792_v15 = vpop.permute.xlu1 %791 }
 0x7a2   :  { %v796_v16 = vmul.f32 %v4407_v12, %v792_v15 }
 0x7a3   :  { %799 = vrot.lane.b32.xlu0 %v795_v13, %s4751_s24 }
 0x7a4   :  { %801 = vrot.lane.b32.xlu1 %v796_v16, %s4751_s24  ;;  %v906_v19 = vpop.permute.xlu0 %905 }
 0x7a5   :  { %v908_v22 = vpop.permute.xlu1 %907  ;;  %v911_v25 = vmul.f32 %v4409_v18, %v906_v19 }
 0x7a6   :  { %v912_v26 = vmul.f32 %v4411_v20, %v908_v22 }
 0x7a7   :  { %915 = vrot.lane.b32.xlu0 %v911_v25, %s4751_s24 }
 0x7a8   :  { %917 = vrot.lane.b32.xlu1 %v912_v26, %s4751_s24 }
 0x815   :  { %v800_v32 = vpop.permute.xlu0 %799 }
 0x816   :  { %v802_v35 = vpop.permute.xlu1 %801  ;;  %v5079_v36 = vadd.f32 %v800_v32, %v785_v29 }
 0x817   :  { %v5082_v31 = vadd.f32 %v802_v35, %v786_v30 }
 0x818   :  { %4412 = vtanh.f32 %v5079_v36 }
 0x819   :  { %4414 = vtanh.f32 %v5082_v31  ;;  %v916_v41 = vpop.permute.xlu0 %915 }
 0x81a   :  { %v918_v38 = vpop.permute.xlu1 %917  ;;  %v5086_v43 = vadd.f32 %v916_v41, %v901_v39 }
 0x81b   :  { %v5088_v45 = vadd.f32 %v918_v38, %v902_v24 }
 0x81c   :  { %4416 = vtanh.f32 %v5086_v43 }
 0x81d   :  { %4418 = vtanh.f32 %v5088_v45 }
 0x822   :  { %v4413_v33 = vpop.eup %4412 }
 0x823   :  { %v4415_v34 = vpop.eup %4414  ;;  %811 = vrot.lane.b32.xlu0 %v4413_v33, %s4751_s24 }
 0x824   :  { %813 = vrot.lane.b32.xlu1 %v4415_v34, %s4751_s24 }
 0x826   :  { %v4417_v48 = vpop.eup %4416 }
 0x827   :  { %v4419_v54 = vpop.eup %4418  ;;  %927 = vrot.lane.b32.xlu0 %v4417_v48, %s4751_s24 }
 0x828   :  { %929 = vrot.lane.b32.xlu1 %v4419_v54, %s4751_s24 }
 0x895   :  { %v812_v55 = vpop.permute.xlu0 %811 }
 0x896   :  { %v814_v57 = vpop.permute.xlu1 %813  ;;  %v5096_v58 = vmul.f32 %v4405_v9, %v812_v55 }
 0x897   :  { %v5098_v59 = vmul.f32 %v4407_v12, %v814_v57 }
 0x898   :  { %v957_v61 = vpack.c.bf16 %v5096_v58, %v5096_v58 }
 0x899   :  { %v958_v63 = vpack.c.bf16 %v5098_v59, %v5098_v59  ;;  %v928_v0 = vpop.permute.xlu0 %927 }
 0x89a   :  { %v961_v6 = vunpack.c.l.b16 %v957_v61  ;;  %v930_v7 = vpop.permute.xlu1 %929  ;;  %v5104_v8 = vmul.f32 %v4409_v18, %v928_v0 }
 0x89b   :  { %v962_v11 = vunpack.c.l.b16 %v958_v63  ;;  %v5106_v13 = vmul.f32 %v4411_v20, %v930_v7 }
 0x89c   :  { %v963_v15 = vrot.slane %v961_v6, 2  ;;  %v1073_v9 = vpack.c.bf16 %v5104_v8, %v5104_v8 }
 0x89d   :  { %v964_v12 = vrot.slane %v962_v11, 1  ;;  %v1074_v16 = vpack.c.bf16 %v5106_v13, %v5106_v13 }
 0x89e   :  { %v1077_v19 = vunpack.c.l.b16 %v1073_v9 }
 0x89f   :  { %v1078_v22 = vunpack.c.l.b16 %v1074_v16  ;;  %v965_v25 = vsel %vm458_vm5, %v964_v12, %v963_v15 }
 0x8a0   :  { %v1079_v26 = vrot.slane %v1077_v19, 5  ;;  %v966_v27 = vpack.c.b16 %v965_v25, %v965_v25 }
 0x8a1   :  { %v1080_v28 = vrot.slane %v1078_v22, 4 }
 0x8a2   :  { %967 = vrot.lane.b32.xlu0 %v966_v27, %s4752_s25 }
 0x8a3   :  { %v1081_v18 = vsel %vm458_vm5, %v1080_v28, %v1079_v26 }
 0x8a4   :  { %v1082_v20 = vpack.c.b16 %v1081_v18, %v1081_v18 }
 0x8a6   :  { %1083 = vrot.lane.b32.xlu1 %v1082_v20, %s4752_s25 }
 0x914   :  { %v968_v29 = vpop.permute.xlu0 %967 }
 0x915   :  { %4189 = vmatmul.mubr.msk.bf16.vlgmr.msra.gmra.mrb[8].mxu0 %vm224_vm6, %v968_v29 }
 0x916   :  { %4201 = vmatpush3.bf16.msra.mxu0 %v4877_v10  ;;  %4204 = vmatprep.mubr.msk.bf16.mxu0 %vm4749_vm0, %v6212_v1 }
 0x917   :  { %4202 = vmatprep.subr.bf16.mxu0 %v6212_v1 }
 0x918   :  { %v1084_v30 = vpop.permute.xlu1 %1083 }
 0x919   :  { %4197 = vmatmul.mubr.msk.bf16.vlgmr.msra.gmra.mrb[20].mxu1 %vm224_vm6, %v1084_v30 }
 0x91a   :  { %4203 = vmatpush3.bf16.msra.mxu0 %v4884_v14  ;;  %4209 = vmatpush3.bf16.msra.mxu1 %v4891_v17 }
 0x91b   :  { %4210 = vmatprep.subr.bf16.mxu1 %v6212_v1  ;;  %4212 = vmatprep.mubr.msk.bf16.mxu1 %vm4749_vm0, %v6212_v1 }
 0x91c   :  { %4216 = vmatprep.subr.bf16.mxu0 %v6212_v1 }
 0x91e   :  { %4211 = vmatpush3.bf16.msra.mxu1 %v4899_v21 }
 0x91f   :  { %4224 = vmatprep.subr.bf16.mxu1 %v6212_v1 }
 0x9e8   :  { %v1006_v10 = vpop.f32.mrb[8].mxu0 }
 0x9e9   :  { %v1013_v32 = vrot.slane %v1006_v10, 5  ;;  %v1014_v37 = vrot.slane %v1006_v10, 6  ;;  %v4190_v35 = vpop.f32.mrb[9].mxu0 }
 0x9ea   :  { %v1009_v40 = vpop.f32.mrb[10].mxu0 }
 0x9eb   :  { %v1017_v14 = vadd.f32 %v1013_v32, %v4930_v46  ;;  %v1018_v17 = vadd.f32 %v1014_v37, %v4932_v47  ;;  %v4191_v39 = vpop.f32.mrb[11].mxu0 }
 0x9ec   :  { %v1122_v24 = vpop.f32.mrb[20].mxu1  ;;  %v1036_v39 = vrot.slane %v5082_v31, 7 }
 0x9ed   :  { %4420 = vtanh.f32 %v1017_v14  ;;  %v1129_v41 = vrot.slane %v1122_v24, 4  ;;  %v4198_v38 = vpop.f32.mrb[21].mxu1  ;;  %v1130_v33 = vrot.slane %v1122_v24, 5  ;;  %v4040_v0 = vmul.f32 -1.442695, %v1017_v14 }
 0x9ee   :  { %4422 = vtanh.f32 %v1018_v17  ;;  %v1125_v34 = vpop.f32.mrb[22].mxu1  ;;  %v4041_v6 = vmul.f32 -1.442695, %v1018_v17  ;;  %v1035_v17 = vrot.slane %v5079_v36, 7 }
 0x9ef   :  { %v1133_v21 = vadd.f32 %v1129_v41, %v4928_v44  ;;  %v4199_v48 = vpop.f32.mrb[23].mxu1  ;;  %v1134_v54 = vadd.f32 %v1130_v33, %v4936_v52  ;;  %v1151_v33 = vrot.slane %v5086_v43, 1 }
 0x9f0   :  { %v1152_v48 = vrot.slane %v5088_v45, 1 }
 0x9f1   :  { %4424 = vtanh.f32 %v1133_v21  ;;  %v4043_v7 = vmul.f32 -1.442695, %v1133_v21  ;;  %v4044_v11 = vmul.f32 -1.442695, %v1134_v54 }
 0x9f2   :  { %4426 = vtanh.f32 %v1134_v54 }
 0x9f3   :  { %4428 = vpow2.f32 %v4040_v0 }
 0x9f4   :  { %4430 = vpow2.f32 %v4041_v6 }
 0x9f5   :  { %4432 = vpow2.f32 %v4043_v7 }
 0x9f6   :  { %4434 = vpow2.f32 %v4044_v11 }
 0x9f7   :  { %v4421_v55 = vpop.eup %4420 }
 0x9f8   :  { %v4423_v57 = vpop.eup %4422  ;;  %1043 = vrot.lane.b32.xlu0 %v4421_v55, %s4751_s24 }
 0x9f9   :  { %1045 = vrot.lane.b32.xlu1 %v4423_v57, %s4751_s24 }
 0x9fb   :  { %v4425_v61 = vpop.eup %4424 }
 0x9fc   :  { %v4427_v63 = vpop.eup %4426  ;;  %1159 = vrot.lane.b32.xlu0 %v4425_v61, %s4751_s24 }
 0x9fd   :  { %1161 = vrot.lane.b32.xlu1 %v4427_v63, %s4751_s24  ;;  %v4429_v15 = vpop.eup %4428 }
 0x9fe   :  { %v4431_v9 = vpop.eup %4430  ;;  %v1025_v12 = vadd.f32 1.0, %v4429_v15 }
 0x9ff   :  { %v4433_v16 = vpop.eup %4432  ;;  %v1026_v19 = vadd.f32 1.0, %v4431_v9 }
 0xa00   :  { %v4435_v22 = vpop.eup %4434  ;;  %4436 = vrcp.f32 %v1025_v12  ;;  %v1141_v25 = vadd.f32 1.0, %v4433_v16 }
 0xa01   :  { %4438 = vrcp.f32 %v1026_v19  ;;  %v1142_v26 = vadd.f32 1.0, %v4435_v22 }
 0xa02   :  { %4440 = vrcp.f32 %v1141_v25 }
 0xa03   :  { %4442 = vrcp.f32 %v1142_v26 }
 0xa0a   :  { %v4437_v27 = vpop.eup %4436 }
 0xa0b   :  { %v4439_v18 = vpop.eup %4438  ;;  %v1039_v24 = vmul.f32 %v4437_v27, %v1035_v17 }
 0xa0c   :  { %v4441_v10 = vpop.eup %4440  ;;  %v1040_v41 = vmul.f32 %v4439_v18, %v1036_v39 }
 0xa0d   :  { %v4443_v37 = vpop.eup %4442  ;;  %v1155_v55 = vmul.f32 %v4441_v10, %v1151_v33  ;;  %v5196_v33 = vld [vmem:[%s6203_s5 + $0x8] sm:$0xff]  }
 0xa0e   :  { %v1156_v36 = vmul.f32 %v4443_v37, %v1152_v48  ;;  %v5212_v48 = vld [vmem:[%s6204_s6 + $0x8] sm:$0xff]  }
 0xa6a   :  { %v1044_v28 = vpop.permute.xlu0 %1043 }
 0xa6b   :  { %v1046_v20 = vpop.permute.xlu1 %1045  ;;  %v1049_v29 = vmul.f32 %v4437_v27, %v1044_v28 }
 0xa6c   :  { %v1050_v30 = vmul.f32 %v4439_v18, %v1046_v20 }
 0xa6d   :  { %1053 = vrot.lane.b32.xlu0 %v1049_v29, %s4751_s24 }
 0xa6e   :  { %1055 = vrot.lane.b32.xlu1 %v1050_v30, %s4751_s24  ;;  %v1160_v32 = vpop.permute.xlu0 %1159 }
 0xa6f   :  { %v1162_v35 = vpop.permute.xlu1 %1161  ;;  %v1165_v40 = vmul.f32 %v4441_v10, %v1160_v32 }
 0xa70   :  { %v1166_v14 = vmul.f32 %v4443_v37, %v1162_v35 }
 0xa71   :  { %1169 = vrot.lane.b32.xlu0 %v1165_v40, %s4751_s24 }
 0xa72   :  { %1171 = vrot.lane.b32.xlu1 %v1166_v14, %s4751_s24 }
 0xadf   :  { %v1054_v38 = vpop.permute.xlu0 %1053 }
 0xae0   :  { %v1056_v34 = vpop.permute.xlu1 %1055  ;;  %v5145_v21 = vadd.f32 %v1054_v38, %v1039_v24 }
 0xae1   :  { %v5148_v54 = vadd.f32 %v1056_v34, %v1040_v41  ;;  %v5186_v41 = vld [vmem:[%s6203_s5] sm:$0xff]   ;;  %s4753_s5 = smov 96  }
 0xae2   :  { %4444 = vtanh.f32 %v5145_v21  ;;  %v5202_v34 = vld [vmem:[%s6204_s6] sm:$0xff]  }
 0xae3   :  { %4446 = vtanh.f32 %v5148_v54  ;;  %v1170_v57 = vpop.permute.xlu0 %1169 }
 0xae4   :  { %v1172_v31 = vpop.permute.xlu1 %1171  ;;  %v5152_v61 = vadd.f32 %v1170_v57, %v1155_v55 }
 0xae5   :  { %v5154_v63 = vadd.f32 %v1172_v31, %v1156_v36 }
 0xae6   :  { %4448 = vtanh.f32 %v5152_v61 }
 0xae7   :  { %4450 = vtanh.f32 %v5154_v63 }
 0xaec   :  { %v4445_v43 = vpop.eup %4444 }
 0xaed   :  { %v4447_v45 = vpop.eup %4446  ;;  %1065 = vrot.lane.b32.xlu0 %v4445_v43, %s4751_s24 }
 0xaee   :  { %1067 = vrot.lane.b32.xlu1 %v4447_v45, %s4751_s24 }
 0xaf0   :  { %v4449_v0 = vpop.eup %4448 }
 0xaf1   :  { %v4451_v6 = vpop.eup %4450  ;;  %1181 = vrot.lane.b32.xlu0 %v4449_v0, %s4751_s24 }
 0xaf2   :  { %1183 = vrot.lane.b32.xlu1 %v4451_v6, %s4751_s24 }
 0xb5f   :  { %v1066_v7 = vpop.permute.xlu0 %1065 }
 0xb60   :  { %v1068_v11 = vpop.permute.xlu1 %1067  ;;  %v5162_v15 = vmul.f32 %v4437_v27, %v1066_v7 }
 0xb61   :  { %v5164_v9 = vmul.f32 %v4439_v18, %v1068_v11 }
 0xb62   :  { %v1211_v12 = vpack.c.bf16 %v5162_v15, %v5162_v15 }
 0xb63   :  { %v1212_v16 = vpack.c.bf16 %v5164_v9, %v5164_v9  ;;  %v1182_v19 = vpop.permute.xlu0 %1181 }
 0xb64   :  { %v1215_v22 = vunpack.c.l.b16 %v1211_v12  ;;  %v1184_v25 = vpop.permute.xlu1 %1183  ;;  %v5170_v26 = vmul.f32 %v4441_v10, %v1182_v19 }
 0xb65   :  { %v1216_v28 = vunpack.c.l.b16 %v1212_v16  ;;  %v5172_v20 = vmul.f32 %v4443_v37, %v1184_v25 }
 0xb66   :  { %v1217_v29 = vrot.slane %v1215_v22, 3  ;;  %v1327_v27 = vpack.c.bf16 %v5170_v26, %v5170_v26 }
 0xb67   :  { %v1218_v18 = vrot.slane %v1216_v28, 2  ;;  %v1328_v30 = vpack.c.bf16 %v5172_v20, %v5172_v20 }
 0xb68   :  { %v1331_v32 = vunpack.c.l.b16 %v1327_v27 }
 0xb69   :  { %v1332_v35 = vunpack.c.l.b16 %v1328_v30  ;;  %v1219_v40 = vsel %vm458_vm5, %v1218_v18, %v1217_v29 }
 0xb6a   :  { %v1333_v14 = vrot.slane %v1331_v32, 4  ;;  %v1220_v17 = vpack.c.b16 %v1219_v40, %v1219_v40 }
 0xb6b   :  { %v1334_v39 = vrot.slane %v1332_v35, 3 }
 0xb6c   :  { %1221 = vrot.lane.b32.xlu0 %v1220_v17, %s4752_s25 }
 0xb6d   :  { %v1335_v10 = vsel %vm458_vm5, %v1334_v39, %v1333_v14 }
 0xb6e   :  { %v1336_v37 = vpack.c.b16 %v1335_v10, %v1335_v10 }
 0xb70   :  { %1337 = vrot.lane.b32.xlu1 %v1336_v37, %s4752_s25 }
 0xbde   :  { %v1222_v24 = vpop.permute.xlu0 %1221 }
 0xbdf   :  { %4205 = vmatmul.mubr.msk.bf16.vlgmr.msra.gmra.mrb[12].mxu0 %vm224_vm6, %v1222_v24 }
 0xbe0   :  { %4217 = vmatpush3.bf16.msra.mxu0 %v5186_v41  ;;  %4220 = vmatprep.mubr.msk.bf16.mxu0 %vm4749_vm0, %v6212_v1 }
 0xbe1   :  { %4218 = vmatprep.subr.bf16.mxu0 %v6212_v1 }
 0xbe2   :  { %v1338_v38 = vpop.permute.xlu1 %1337 }
 0xbe3   :  { %4213 = vmatmul.mubr.msk.bf16.vlgmr.msra.gmra.mrb[24].mxu1 %vm224_vm6, %v1338_v38 }
 0xbe4   :  { %4219 = vmatpush3.bf16.msra.mxu0 %v5196_v33  ;;  %4225 = vmatpush3.bf16.msra.mxu1 %v5202_v34 }
 0xbe5   :  { %4226 = vmatprep.subr.bf16.mxu1 %v6212_v1  ;;  %4228 = vmatprep.mubr.msk.bf16.mxu1 %vm4749_vm0, %v6212_v1 }
 0xbe6   :  { %4232 = vmatprep.subr.bf16.mxu0 %v6212_v1 }
 0xbe8   :  { %4227 = vmatpush3.bf16.msra.mxu1 %v5212_v48 }
 0xbe9   :  { %4240 = vmatprep.subr.bf16.mxu1 %v6212_v1 }
 0xcb2   :  { %v1260_v55 = vpop.f32.mrb[12].mxu0 }
 0xcb3   :  { %v1267_v36 = vrot.slane %v1260_v55, 4  ;;  %v1268_v57 = vrot.slane %v1260_v55, 5  ;;  %v4206_v31 = vpop.f32.mrb[13].mxu0 }
 0xcb4   :  { %v1263_v43 = vpop.f32.mrb[14].mxu0 }
 0xcb5   :  { %v1271_v45 = vadd.f32 %v1267_v36, %v4930_v46  ;;  %v1272_v0 = vadd.f32 %v1268_v57, %v4932_v47  ;;  %v4207_v6 = vpop.f32.mrb[15].mxu0 }
 0xcb6   :  { %v1376_v7 = vpop.f32.mrb[24].mxu1 }
 0xcb7   :  { %4452 = vtanh.f32 %v1271_v45  ;;  %v1383_v11 = vrot.slane %v1376_v7, 5  ;;  %v4214_v12 = vpop.f32.mrb[25].mxu1  ;;  %v1384_v16 = vrot.slane %v1376_v7, 6  ;;  %v4046_v32 = vmul.f32 -1.442695, %v1271_v45 }
 0xcb8   :  { %4454 = vtanh.f32 %v1272_v0  ;;  %v1379_v19 = vpop.f32.mrb[26].mxu1  ;;  %v4047_v35 = vmul.f32 -1.442695, %v1272_v0 }
 0xcb9   :  { %v1387_v22 = vadd.f32 %v1383_v11, %v4928_v44  ;;  %v4215_v25 = vpop.f32.mrb[27].mxu1  ;;  %v1388_v28 = vadd.f32 %v1384_v16, %v4936_v52 }
 0xcba   :  { %v1289_v25 = vrot.slane %v5145_v21, 7 }
 0xcbb   :  { %4456 = vtanh.f32 %v1387_v22  ;;  %v4049_v40 = vmul.f32 -1.442695, %v1387_v22  ;;  %v4050_v14 = vmul.f32 -1.442695, %v1388_v28 }
 0xcbc   :  { %4458 = vtanh.f32 %v1388_v28  ;;  %v1290_v28 = vrot.slane %v5148_v54, 7 }
 0xcbd   :  { %4460 = vpow2.f32 %v4046_v32 }
 0xcbe   :  { %4462 = vpow2.f32 %v4047_v35 }
 0xcbf   :  { %4464 = vpow2.f32 %v4049_v40  ;;  %v1406_v40 = vrot.slane %v5154_v63, 1 }
 0xcc0   :  { %4466 = vpow2.f32 %v4050_v14 }
 0xcc1   :  { %v4453_v29 = vpop.eup %4452 }
 0xcc2   :  { %v4455_v27 = vpop.eup %4454  ;;  %1297 = vrot.lane.b32.xlu0 %v4453_v29, %s4751_s24 }
 0xcc3   :  { %1299 = vrot.lane.b32.xlu1 %v4455_v27, %s4751_s24 }
 0xcc5   :  { %v4457_v18 = vpop.eup %4456 }
 0xcc6   :  { %v4459_v30 = vpop.eup %4458  ;;  %1413 = vrot.lane.b32.xlu0 %v4457_v18, %s4751_s24 }
 0xcc7   :  { %1415 = vrot.lane.b32.xlu1 %v4459_v30, %s4751_s24  ;;  %v4461_v17 = vpop.eup %4460  ;;  %v1405_v30 = vrot.slane %v5152_v61, 1 }
 0xcc8   :  { %v4463_v39 = vpop.eup %4462  ;;  %v1279_v10 = vadd.f32 1.0, %v4461_v17 }
 0xcc9   :  { %v4465_v37 = vpop.eup %4464  ;;  %v1280_v24 = vadd.f32 1.0, %v4463_v39 }
 0xcca   :  { %v4467_v38 = vpop.eup %4466  ;;  %4468 = vrcp.f32 %v1279_v10  ;;  %v1395_v55 = vadd.f32 1.0, %v4465_v37 }
 0xccb   :  { %4470 = vrcp.f32 %v1280_v24  ;;  %v1396_v36 = vadd.f32 1.0, %v4467_v38 }
 0xccc   :  { %4472 = vrcp.f32 %v1395_v55 }
 0xccd   :  { %4474 = vrcp.f32 %v1396_v36 }
 0xcd4   :  { %v4469_v57 = vpop.eup %4468 }
 0xcd5   :  { %v4471_v43 = vpop.eup %4470  ;;  %v1293_v29 = vmul.f32 %v4469_v57, %v1289_v25 }
 0xcd6   :  { %v4473_v7 = vpop.eup %4472  ;;  %v1294_v27 = vmul.f32 %v4471_v43, %v1290_v28 }
 0xcd7   :  { %v4475_v12 = vpop.eup %4474  ;;  %v1409_v17 = vmul.f32 %v4473_v7, %v1405_v30 }
 0xcd8   :  { %v1410_v21 = vmul.f32 %v4475_v12, %v1406_v40 }
 0xd34   :  { %v1298_v31 = vpop.permute.xlu0 %1297 }
 0xd35   :  { %v1300_v45 = vpop.permute.xlu1 %1299  ;;  %v1303_v0 = vmul.f32 %v4469_v57, %v1298_v31 }
 0xd36   :  { %v1304_v6 = vmul.f32 %v4471_v43, %v1300_v45 }
 0xd37   :  { %1307 = vrot.lane.b32.xlu0 %v1303_v0, %s4751_s24 }
 0xd38   :  { %1309 = vrot.lane.b32.xlu1 %v1304_v6, %s4751_s24  ;;  %v1414_v11 = vpop.permute.xlu0 %1413 }
 0xd39   :  { %v1416_v16 = vpop.permute.xlu1 %1415  ;;  %v1419_v19 = vmul.f32 %v4473_v7, %v1414_v11 }
 0xd3a   :  { %v1420_v22 = vmul.f32 %v4475_v12, %v1416_v16 }
 0xd3b   :  { %1423 = vrot.lane.b32.xlu0 %v1419_v19, %s4751_s24 }
 0xd3c   :  { %1425 = vrot.lane.b32.xlu1 %v1420_v22, %s4751_s24 }
 0xda9   :  { %v1308_v18 = vpop.permute.xlu0 %1307 }
 0xdaa   :  { %v1310_v32 = vpop.permute.xlu1 %1309  ;;  %v5231_v35 = vadd.f32 %v1308_v18, %v1293_v29 }
 0xdab   :  { %v5234_v14 = vadd.f32 %v1310_v32, %v1294_v27 }
 0xdac   :  { %4476 = vtanh.f32 %v5231_v35 }
 0xdad   :  { %4478 = vtanh.f32 %v5234_v14  ;;  %v1424_v39 = vpop.permute.xlu0 %1423 }
 0xdae   :  { %v1426_v54 = vpop.permute.xlu1 %1425  ;;  %v5238_v10 = vadd.f32 %v1424_v39, %v1409_v17 }
 0xdaf   :  { %v5240_v37 = vadd.f32 %v1426_v54, %v1410_v21 }
 0xdb0   :  { %4480 = vtanh.f32 %v5238_v10 }
 0xdb1   :  { %4482 = vtanh.f32 %v5240_v37 }
 0xdb6   :  { %v4477_v61 = vpop.eup %4476 }
 0xdb7   :  { %v4479_v63 = vpop.eup %4478  ;;  %1319 = vrot.lane.b32.xlu0 %v4477_v61, %s4751_s24 }
 0xdb8   :  { %1321 = vrot.lane.b32.xlu1 %v4479_v63, %s4751_s24 }
 0xdba   :  { %v4481_v24 = vpop.eup %4480 }
 0xdbb   :  { %v4483_v38 = vpop.eup %4482  ;;  %1435 = vrot.lane.b32.xlu0 %v4481_v24, %s4751_s24 }
 0xdbc   :  { %1437 = vrot.lane.b32.xlu1 %v4483_v38, %s4751_s24 }
 0xe29   :  { %v1320_v55 = vpop.permute.xlu0 %1319 }
 0xe2a   :  { %v1322_v36 = vpop.permute.xlu1 %1321  ;;  %v5248_v31 = vmul.f32 %v4469_v57, %v1320_v55 }
 0xe2b   :  { %v5250_v45 = vmul.f32 %v4471_v43, %v1322_v36 }
 0xe2c   :  { %v1465_v0 = vpack.c.bf16 %v5248_v31, %v5248_v31 }
 0xe2d   :  { %v1466_v6 = vpack.c.bf16 %v5250_v45, %v5250_v45  ;;  %v1436_v11 = vpop.permute.xlu0 %1435 }
 0xe2e   :  { %v1469_v16 = vunpack.c.l.b16 %v1465_v0  ;;  %v1438_v19 = vpop.permute.xlu1 %1437  ;;  %v5256_v22 = vmul.f32 %v4473_v7, %v1436_v11 }
 0xe2f   :  { %v1470_v25 = vunpack.c.l.b16 %v1466_v6  ;;  %v5258_v28 = vmul.f32 %v4475_v12, %v1438_v19 }
 0xe30   :  { %v1471_v29 = vrot.slane %v1469_v16, 4  ;;  %v1581_v57 = vpack.c.bf16 %v5256_v22, %v5256_v22 }
 0xe31   :  { %v1472_v43 = vrot.slane %v1470_v25, 3  ;;  %v1582_v27 = vpack.c.bf16 %v5258_v28, %v5258_v28 }
 0xe32   :  { %v1585_v18 = vunpack.c.l.b16 %v1581_v57 }
 0xe33   :  { %v1586_v30 = vunpack.c.l.b16 %v1582_v27  ;;  %v1473_v32 = vsel %vm458_vm5, %v1472_v43, %v1471_v29 }
 0xe34   :  { %v1587_v40 = vrot.slane %v1585_v18, 3  ;;  %v1474_v17 = vpack.c.b16 %v1473_v32, %v1473_v32 }
 0xe35   :  { %v1588_v21 = vrot.slane %v1586_v30, 2 }
 0xe36   :  { %1475 = vrot.lane.b32.xlu0 %v1474_v17, %s4752_s25 }
 0xe37   :  { %v1589_v7 = vsel %vm458_vm5, %v1588_v21, %v1587_v40 }
 0xe38   :  { %v1590_v12 = vpack.c.b16 %v1589_v7, %v1589_v7 }
 0xe3a   :  { %1591 = vrot.lane.b32.xlu1 %v1590_v12, %s4752_s25 }
 0xea8   :  { %v1476_v39 = vpop.permute.xlu0 %1475 }
 0xea9   :  { %4221 = vmatmul.mubr.msk.bf16.vlgmr.msra.gmra.mrb[16].mxu0 %vm224_vm6, %v1476_v39 }
 0xeaa   :  { %4233 = vmatpush3.bf16.msra.mxu0 %v5186_v41  ;;  %4236 = vmatprep.mubr.msk.bf16.mxu0 %vm4749_vm0, %v6212_v1 }
 0xeab   :  { %4234 = vmatprep.subr.bf16.mxu0 %v6212_v1 }
 0xeac   :  { %v1592_v54 = vpop.permute.xlu1 %1591 }
 0xead   :  { %4229 = vmatmul.mubr.msk.bf16.vlgmr.msra.gmra.mrb[28].mxu1 %vm224_vm6, %v1592_v54 }
 0xeae   :  { %4235 = vmatpush3.bf16.msra.mxu0 %v5196_v33  ;;  %4241 = vmatpush3.bf16.msra.mxu1 %v5202_v34 }
 0xeaf   :  { %4242 = vmatprep.subr.bf16.mxu1 %v6212_v1  ;;  %4244 = vmatprep.mubr.msk.bf16.mxu1 %vm4749_vm0, %v6212_v1 }
 0xeb0   :  { %4248 = vmatprep.subr.bf16.mxu0 %v6212_v1 }
 0xeb2   :  { %4243 = vmatpush3.bf16.msra.mxu1 %v5212_v48 }
 0xeb3   :  { %4256 = vmatprep.subr.bf16.mxu1 %v6212_v1 }
 0xf7c   :  { %v1514_v61 = vpop.f32.mrb[16].mxu0 }
 0xf7d   :  { %v1521_v63 = vrot.slane %v1514_v61, 3  ;;  %v1522_v24 = vrot.slane %v1514_v61, 4  ;;  %v4222_v38 = vpop.f32.mrb[17].mxu0 }
 0xf7e   :  { %v1517_v55 = vpop.f32.mrb[18].mxu0 }
 0xf7f   :  { %v1525_v36 = vadd.f32 %v1521_v63, %v4930_v46  ;;  %v1526_v0 = vadd.f32 %v1522_v24, %v4932_v47  ;;  %v4223_v6 = vpop.f32.mrb[19].mxu0 }
 0xf80   :  { %v1630_v11 = vpop.f32.mrb[28].mxu1 }
 0xf81   :  { %4484 = vtanh.f32 %v1525_v36  ;;  %v1637_v16 = vrot.slane %v1630_v11, 6  ;;  %v4230_v19 = vpop.f32.mrb[29].mxu1  ;;  %v1638_v25 = vrot.slane %v1630_v11, 7  ;;  %v4052_v17 = vmul.f32 -1.442695, %v1525_v36 }
 0xf82   :  { %4486 = vtanh.f32 %v1526_v0  ;;  %v1633_v29 = vpop.f32.mrb[30].mxu1  ;;  %v4053_v21 = vmul.f32 -1.442695, %v1526_v0 }
 0xf83   :  { %v1641_v57 = vadd.f32 %v1637_v16, %v4928_v44  ;;  %v4231_v43 = vpop.f32.mrb[31].mxu1  ;;  %v1642_v27 = vadd.f32 %v1638_v25, %v4936_v52 }
 0xf85   :  { %4488 = vtanh.f32 %v1641_v57  ;;  %v4055_v7 = vmul.f32 -1.442695, %v1641_v57  ;;  %v4056_v12 = vmul.f32 -1.442695, %v1642_v27 }
 0xf86   :  { %4490 = vtanh.f32 %v1642_v27 }
 0xf87   :  { %4492 = vpow2.f32 %v4052_v17 }
 0xf88   :  { %4494 = vpow2.f32 %v4053_v21 }
 0xf89   :  { %4496 = vpow2.f32 %v4055_v7 }
 0xf8a   :  { %4498 = vpow2.f32 %v4056_v12  ;;  %v1659_v12 = vrot.slane %v5238_v10, 1 }
 0xf8b   :  { %v4485_v18 = vpop.eup %4484 }
 0xf8c   :  { %v4487_v30 = vpop.eup %4486  ;;  %1551 = vrot.lane.b32.xlu0 %v4485_v18, %s4751_s24 }
 0xf8d   :  { %1553 = vrot.lane.b32.xlu1 %v4487_v30, %s4751_s24 }
 0xf8f   :  { %v4489_v32 = vpop.eup %4488 }
 0xf90   :  { %v4491_v40 = vpop.eup %4490  ;;  %1667 = vrot.lane.b32.xlu0 %v4489_v32, %s4751_s24  ;;  %v1543_v32 = vrot.slane %v5231_v35, 7 }
 0xf91   :  { %1669 = vrot.lane.b32.xlu1 %v4491_v40, %s4751_s24  ;;  %v4493_v39 = vpop.eup %4492  ;;  %v1544_v40 = vrot.slane %v5234_v14, 7 }
 0xf92   :  { %v4495_v54 = vpop.eup %4494  ;;  %v1533_v61 = vadd.f32 1.0, %v4493_v39 }
 0xf93   :  { %v4497_v63 = vpop.eup %4496  ;;  %v1534_v24 = vadd.f32 1.0, %v4495_v54 }
 0xf94   :  { %v4499_v38 = vpop.eup %4498  ;;  %4500 = vrcp.f32 %v1533_v61  ;;  %v1649_v55 = vadd.f32 1.0, %v4497_v63  ;;  %v1660_v61 = vrot.slane %v5240_v37, 1 }
 0xf95   :  { %4502 = vrcp.f32 %v1534_v24  ;;  %v1650_v6 = vadd.f32 1.0, %v4499_v38 }
 0xf96   :  { %4504 = vrcp.f32 %v1649_v55 }
 0xf97   :  { %4506 = vrcp.f32 %v1650_v6 }
 0xf9e   :  { %v4501_v36 = vpop.eup %4500 }
 0xf9f   :  { %v4503_v11 = vpop.eup %4502  ;;  %v1547_v17 = vmul.f32 %v4501_v36, %v1543_v32 }
 0xfa0   :  { %v4505_v29 = vpop.eup %4504  ;;  %v1548_v21 = vmul.f32 %v4503_v11, %v1544_v40 }
 0xfa1   :  { %v4507_v43 = vpop.eup %4506  ;;  %v1663_v24 = vmul.f32 %v4505_v29, %v1659_v12 }
 0xfa2   :  { %v1664_v35 = vmul.f32 %v4507_v43, %v1660_v61 }
 0xffe   :  { %v1552_v0 = vpop.permute.xlu0 %1551 }
 0xfff   :  { %v1554_v16 = vpop.permute.xlu1 %1553  ;;  %v1557_v19 = vmul.f32 %v4501_v36, %v1552_v0 }
0x1000   :  { %v1558_v25 = vmul.f32 %v4503_v11, %v1554_v16 }
0x1001   :  { %1561 = vrot.lane.b32.xlu0 %v1557_v19, %s4751_s24 }
0x1002   :  { %1563 = vrot.lane.b32.xlu1 %v1558_v25, %s4751_s24  ;;  %v1668_v57 = vpop.permute.xlu0 %1667 }
0x1003   :  { %v1670_v27 = vpop.permute.xlu1 %1669  ;;  %v1673_v18 = vmul.f32 %v4505_v29, %v1668_v57 }
0x1004   :  { %v1674_v30 = vmul.f32 %v4507_v43, %v1670_v27 }
0x1005   :  { %1677 = vrot.lane.b32.xlu0 %v1673_v18, %s4751_s24 }
0x1006   :  { %1679 = vrot.lane.b32.xlu1 %v1674_v30, %s4751_s24 }
0x1073   :  { %v1562_v7 = vpop.permute.xlu0 %1561 }
0x1074   :  { %v1564_v39 = vpop.permute.xlu1 %1563  ;;  %v5297_v54 = vadd.f32 %v1562_v7, %v1547_v17 }
0x1075   :  { %v5300_v63 = vadd.f32 %v1564_v39, %v1548_v21 }
0x1076   :  { %4508 = vtanh.f32 %v5297_v54 }
0x1077   :  { %4510 = vtanh.f32 %v5300_v63  ;;  %v1678_v38 = vpop.permute.xlu0 %1677 }
0x1078   :  { %v1680_v14 = vpop.permute.xlu1 %1679  ;;  %v5304_v55 = vadd.f32 %v1678_v38, %v1663_v24 }
0x1079   :  { %v5306_v6 = vadd.f32 %v1680_v14, %v1664_v35 }
0x107a   :  { %4512 = vtanh.f32 %v5304_v55 }
0x107b   :  { %4514 = vtanh.f32 %v5306_v6 }
0x1080   :  { %v4509_v10 = vpop.eup %4508 }
0x1081   :  { %v4511_v37 = vpop.eup %4510  ;;  %1573 = vrot.lane.b32.xlu0 %v4509_v10, %s4751_s24 }
0x1082   :  { %1575 = vrot.lane.b32.xlu1 %v4511_v37, %s4751_s24 }
0x1084   :  { %v4513_v0 = vpop.eup %4512 }
0x1085   :  { %v4515_v16 = vpop.eup %4514  ;;  %1689 = vrot.lane.b32.xlu0 %v4513_v0, %s4751_s24 }
0x1086   :  { %1691 = vrot.lane.b32.xlu1 %v4515_v16, %s4751_s24 }
0x10f3   :  { %v1574_v19 = vpop.permute.xlu0 %1573 }
0x10f4   :  { %v1576_v25 = vpop.permute.xlu1 %1575  ;;  %v5314_v57 = vmul.f32 %v4501_v36, %v1574_v19 }
0x10f5   :  { %v5316_v27 = vmul.f32 %v4503_v11, %v1576_v25 }
0x10f6   :  { %v1719_v18 = vpack.c.bf16 %v5314_v57, %v5314_v57 }
0x10f7   :  { %v1720_v30 = vpack.c.bf16 %v5316_v27, %v5316_v27  ;;  %v1690_v32 = vpop.permute.xlu0 %1689 }
0x10f8   :  { %v1723_v40 = vunpack.c.l.b16 %v1719_v18  ;;  %v1692_v17 = vpop.permute.xlu1 %1691  ;;  %v5322_v21 = vmul.f32 %v4505_v29, %v1690_v32 }
0x10f9   :  { %v1724_v7 = vunpack.c.l.b16 %v1720_v30  ;;  %v5324_v12 = vmul.f32 %v4507_v43, %v1692_v17 }
0x10fa   :  { %v1725_v39 = vrot.slane %v1723_v40, 5  ;;  %v1835_v36 = vpack.c.bf16 %v5322_v21, %v5322_v21 }
0x10fb   :  { %v1726_v11 = vrot.slane %v1724_v7, 4  ;;  %v1836_v61 = vpack.c.bf16 %v5324_v12, %v5324_v12 }
0x10fc   :  { %v1839_v24 = vunpack.c.l.b16 %v1835_v36 }
0x10fd   :  { %v1840_v35 = vunpack.c.l.b16 %v1836_v61  ;;  %v1727_v38 = vsel %vm458_vm5, %v1726_v11, %v1725_v39 }
0x10fe   :  { %v1841_v14 = vrot.slane %v1839_v24, 2  ;;  %v1728_v10 = vpack.c.b16 %v1727_v38, %v1727_v38 }
0x10ff   :  { %v1842_v37 = vrot.slane %v1840_v35, 1 }
0x1100   :  { %1729 = vrot.lane.b32.xlu0 %v1728_v10, %s4752_s25 }
0x1101   :  { %v1843_v29 = vsel %vm458_vm5, %v1842_v37, %v1841_v14 }
0x1102   :  { %v1844_v43 = vpack.c.b16 %v1843_v29, %v1843_v29 }
0x1104   :  { %1845 = vrot.lane.b32.xlu1 %v1844_v43, %s4752_s25 }
0x1172   :  { %v1730_v0 = vpop.permute.xlu0 %1729 }
0x1173   :  { %4237 = vmatmul.mubr.msk.bf16.vlgmr.msra.gmra.mrb[20].mxu0 %vm224_vm6, %v1730_v0 }
0x1174   :  { %4249 = vmatpush3.bf16.msra.mxu0 %v5186_v41  ;;  %4252 = vmatprep.mubr.msk.bf16.mxu0 %vm4749_vm0, %v6212_v1 }
0x1175   :  { %4250 = vmatprep.subr.bf16.mxu0 %v6212_v1 }
0x1176   :  { %v1846_v16 = vpop.permute.xlu1 %1845 }
0x1177   :  { %4245 = vmatmul.mubr.msk.bf16.vlgmr.msra.gmra.mrb[32].mxu1 %vm224_vm6, %v1846_v16 }
0x1178   :  { %4251 = vmatpush3.bf16.msra.mxu0 %v5196_v33  ;;  %4257 = vmatpush3.bf16.msra.mxu1 %v5202_v34 }
0x1179   :  { %4258 = vmatprep.subr.bf16.mxu1 %v6212_v1  ;;  %4260 = vmatprep.mubr.msk.bf16.mxu1 %vm4749_vm0, %v6212_v1 }
0x117a   :  { %4264 = vmatprep.subr.bf16.mxu0 %v6212_v1 }
0x117c   :  { %4259 = vmatpush3.bf16.msra.mxu1 %v5212_v48 }
0x1246   :  { %v1768_v41 = vpop.f32.mrb[20].mxu0 }
0x1247   :  { %v1775_v19 = vrot.slane %v1768_v41, 2  ;;  %v1776_v25 = vrot.slane %v1768_v41, 3  ;;  %v4238_v18 = vpop.f32.mrb[21].mxu0 }
0x1248   :  { %v1771_v30 = vpop.f32.mrb[22].mxu0 }
0x1249   :  { %v1779_v32 = vadd.f32 %v1775_v19, %v4930_v46  ;;  %v1780_v33 = vadd.f32 %v1776_v25, %v4932_v47  ;;  %v4239_v40 = vpop.f32.mrb[23].mxu0 }
0x124a   :  { %v1884_v34 = vpop.f32.mrb[32].mxu1 }
0x124b   :  { %4516 = vtanh.f32 %v1779_v32  ;;  %v1891_v17 = vrot.slane %v1884_v34, 7  ;;  %v4246_v7 = vpop.f32.mrb[33].mxu1  ;;  %v1895_v48 = vadd.f32 %v1884_v34, %v4936_v52  ;;  %v4058_v14 = vmul.f32 -1.442695, %v1779_v32 }
0x124c   :  { %4518 = vtanh.f32 %v1780_v33  ;;  %v1887_v39 = vpop.f32.mrb[34].mxu1  ;;  %v4059_v10 = vmul.f32 -1.442695, %v1780_v33 }
0x124d   :  { %v1894_v36 = vadd.f32 %v1891_v17, %v4928_v44  ;;  %v4247_v11 = vpop.f32.mrb[35].mxu1  ;;  %v4062_v29 = vmul.f32 -1.442695, %v1895_v48 }
0x124f   :  { %4520 = vtanh.f32 %v1894_v36  ;;  %v4061_v37 = vmul.f32 -1.442695, %v1894_v36 }
0x1250   :  { %4522 = vtanh.f32 %v1895_v48 }
0x1251   :  { %4524 = vpow2.f32 %v4058_v14 }
0x1252   :  { %4526 = vpow2.f32 %v4059_v10 }
0x1253   :  { %4528 = vpow2.f32 %v4061_v37 }
0x1254   :  { %4530 = vpow2.f32 %v4062_v29  ;;  %v1912_v29 = vrot.slane %v5304_v55, 1 }
0x1255   :  { %v4517_v61 = vpop.eup %4516 }
0x1256   :  { %v4519_v24 = vpop.eup %4518  ;;  %1805 = vrot.lane.b32.xlu0 %v4517_v61, %s4751_s24 }
0x1257   :  { %1807 = vrot.lane.b32.xlu1 %v4519_v24, %s4751_s24 }
0x1259   :  { %v4521_v35 = vpop.eup %4520 }
0x125a   :  { %1920 = vrot.lane.b32.xlu0 %v4521_v35, %s4751_s24  ;;  %v4523_v38 = vpop.eup %4522  ;;  %v1797_v35 = vrot.slane %v5297_v54, 7 }
0x125b   :  { %1922 = vrot.lane.b32.xlu1 %v4523_v38, %s4751_s24  ;;  %v4525_v43 = vpop.eup %4524  ;;  %v1798_v38 = vrot.slane %v5300_v63, 7 }
0x125c   :  { %v4527_v0 = vpop.eup %4526  ;;  %v1787_v16 = vadd.f32 1.0, %v4525_v43 }
0x125d   :  { %v4529_v41 = vpop.eup %4528  ;;  %v1788_v19 = vadd.f32 1.0, %v4527_v0 }
0x125e   :  { %v4531_v25 = vpop.eup %4530  ;;  %4532 = vrcp.f32 %v1787_v16  ;;  %v1902_v18 = vadd.f32 1.0, %v4529_v41 }
0x125f   :  { %4534 = vrcp.f32 %v1788_v19  ;;  %v1903_v30 = vadd.f32 1.0, %v4531_v25  ;;  %v1913_v19 = vrot.slane %v5306_v6, 1 }
0x1260   :  { %4536 = vrcp.f32 %v1902_v18 }
0x1261   :  { %4538 = vrcp.f32 %v1903_v30 }
0x1268   :  { %v4533_v32 = vpop.eup %4532 }
0x1269   :  { %v4535_v40 = vpop.eup %4534  ;;  %v1801_v14 = vmul.f32 %v4533_v32, %v1797_v35 }
0x126a   :  { %v4537_v39 = vpop.eup %4536  ;;  %v1802_v10 = vmul.f32 %v4535_v40, %v1798_v38 }
0x126b   :  { %v4539_v48 = vpop.eup %4538  ;;  %v1916_v41 = vmul.f32 %v4537_v39, %v1912_v29 }
0x126c   :  { %v1917_v63 = vmul.f32 %v4539_v48, %v1913_v19 }
0x12c8   :  { %v1806_v33 = vpop.permute.xlu0 %1805 }
0x12c9   :  { %v1808_v34 = vpop.permute.xlu1 %1807  ;;  %v1811_v17 = vmul.f32 %v4533_v32, %v1806_v33 }
0x12ca   :  { %v1812_v7 = vmul.f32 %v4535_v40, %v1808_v34 }
0x12cb   :  { %1815 = vrot.lane.b32.xlu0 %v1811_v17, %s4751_s24 }
0x12cc   :  { %1817 = vrot.lane.b32.xlu1 %v1812_v7, %s4751_s24  ;;  %v1921_v36 = vpop.permute.xlu0 %1920 }
0x12cd   :  { %v1926_v11 = vmul.f32 %v4537_v39, %v1921_v36  ;;  %v1923_v61 = vpop.permute.xlu1 %1922 }
0x12ce   :  { %v1927_v24 = vmul.f32 %v4539_v48, %v1923_v61 }
0x12cf   :  { %1930 = vrot.lane.b32.xlu0 %v1926_v11, %s4751_s24 }
0x12d0   :  { %1932 = vrot.lane.b32.xlu1 %v1927_v24, %s4751_s24 }
0x133d   :  { %v1816_v37 = vpop.permute.xlu0 %1815 }
0x133e   :  { %v1818_v43 = vpop.permute.xlu1 %1817  ;;  %v5362_v0 = vadd.f32 %v1816_v37, %v1801_v14 }
0x133f   :  { %v5364_v16 = vadd.f32 %v1818_v43, %v1802_v10 }
0x1340   :  { %4540 = vtanh.f32 %v5362_v0 }
0x1341   :  { %4542 = vtanh.f32 %v5364_v16  ;;  %v1931_v54 = vpop.permute.xlu0 %1930 }
0x1342   :  { %v5369_v25 = vadd.f32 %v1931_v54, %v1916_v41  ;;  %v1933_v18 = vpop.permute.xlu1 %1932 }
0x1343   :  { %v5372_v55 = vadd.f32 %v1933_v18, %v1917_v63 }
0x1344   :  { %4544 = vtanh.f32 %v5369_v25 }
0x1345   :  { %4546 = vtanh.f32 %v5372_v55 }
0x134a   :  { %v4541_v30 = vpop.eup %4540 }
0x134b   :  { %v4543_v33 = vpop.eup %4542  ;;  %1827 = vrot.lane.b32.xlu0 %v4541_v30, %s4751_s24 }
0x134c   :  { %1829 = vrot.lane.b32.xlu1 %v4543_v33, %s4751_s24 }
0x134e   :  { %v4545_v6 = vpop.eup %4544 }
0x134f   :  { %1942 = vrot.lane.b32.xlu0 %v4545_v6, %s4751_s24  ;;  %v4547_v34 = vpop.eup %4546 }
0x1350   :  { %1944 = vrot.lane.b32.xlu1 %v4547_v34, %s4751_s24 }
0x13bd   :  { %v1828_v17 = vpop.permute.xlu0 %1827 }
0x13be   :  { %v1830_v7 = vpop.permute.xlu1 %1829  ;;  %v5379_v36 = vmul.f32 %v4533_v32, %v1828_v17 }
0x13bf   :  { %v5381_v11 = vmul.f32 %v4535_v40, %v1830_v7 }
0x13c0   :  { %v1972_v61 = vpack.c.bf16 %v5379_v36, %v5379_v36 }
0x13c1   :  { %v1973_v24 = vpack.c.bf16 %v5381_v11, %v5381_v11  ;;  %v1943_v35 = vpop.permute.xlu0 %1942 }
0x13c2   :  { %v1976_v38 = vunpack.c.l.b16 %v1972_v61  ;;  %v5387_v14 = vmul.f32 %v4537_v39, %v1943_v35  ;;  %v1945_v29 = vpop.permute.xlu1 %1944 }
0x13c3   :  { %v1977_v10 = vunpack.c.l.b16 %v1973_v24  ;;  %v5391_v41 = vmul.f32 %v4539_v48, %v1945_v29 }
0x13c4   :  { %v1978_v37 = vrot.slane %v1976_v38, 6  ;;  %v2088_v43 = vpack.c.bf16 %v5387_v14, %v5387_v14 }
0x13c5   :  { %v1979_v32 = vrot.slane %v1977_v10, 5  ;;  %v2089_v19 = vpack.c.bf16 %v5391_v41, %v5391_v41 }
0x13c6   :  { %v2092_v40 = vunpack.c.l.b16 %v2088_v43 }
0x13c7   :  { %v1980_v54 = vsel %vm458_vm5, %v1979_v32, %v1978_v37  ;;  %v2093_v30 = vunpack.c.l.b16 %v2089_v19 }
0x13c8   :  { %v2094_v63 = vrot.slane %v2092_v40, 1  ;;  %v1981_v18 = vpack.c.b16 %v1980_v54, %v1980_v54 }
0x13ca   :  { %1982 = vrot.lane.b32.xlu0 %v1981_v18, %s4752_s25  ;;  %v2095_v39 = vsel %vm458_vm5, %v2093_v30, %v2094_v63 }
0x13cb   :  { %v2096_v33 = vpack.c.b16 %v2095_v39, %v2095_v39 }
0x13cd   :  { %2097 = vrot.lane.b32.xlu1 %v2096_v33, %s4752_s25 }
0x143c   :  { %v1983_v6 = vpop.permute.xlu0 %1982 }
0x143d   :  { %4253 = vmatmul.mubr.msk.bf16.vlgmr.msra.gmra.mrb[24].mxu0 %vm224_vm6, %v1983_v6 }
0x143e   :  { %4272 = vmatprep.mubr.msk.bf16.mxu0 %vm4749_vm0, %v6212_v1  ;;  %vm1462_vm0 = vcmask 519427  }
0x143f   :  { %v2098_v48 = vpop.permute.xlu1 %2097 }
0x1440   :  { %4261 = vmatmul.mubr.msk.bf16.vlgmr.msra.gmra.mrb[36].mxu1 %vm224_vm6, %v2098_v48  ;;  %vm2210_vm6 = vcmask 261127  }
0x1510   :  { %v2021_v34 = vpop.f32.mrb[24].mxu0 }
0x1511   :  { %v2028_v17 = vrot.slane %v2021_v34, 1  ;;  %v2029_v7 = vrot.slane %v2021_v34, 2  ;;  %v4254_v61 = vpop.f32.mrb[25].mxu0 }
0x1512   :  { %v2024_v24 = vpop.f32.mrb[26].mxu0 }
0x1513   :  { %v2032_v35 = vadd.f32 %v2028_v17, %v4930_v46  ;;  %v2033_v38 = vadd.f32 %v2029_v7, %v4932_v47  ;;  %v4255_v10 = vpop.f32.mrb[27].mxu0  ;;  %v2136_v37 = vpop.f32.mrb[36].mxu1 }
0x1514   :  { %v2143_v29 = vrot.slane %v2136_v37, 1  ;;  %v4262_v43 = vpop.f32.mrb[37].mxu1  ;;  %v2146_v32 = vadd.f32 %v2136_v37, %v4928_v44 }
0x1515   :  { %4548 = vtanh.f32 %v2032_v35  ;;  %v2139_v40 = vpop.f32.mrb[38].mxu1  ;;  %v4064_v30 = vmul.f32 -1.442695, %v2032_v35  ;;  %v4065_v44 = vmul.f32 -1.442695, %v2033_v38 }
0x1516   :  { %4550 = vtanh.f32 %v2033_v38  ;;  %v4263_v19 = vpop.f32.mrb[39].mxu1  ;;  %v2147_v54 = vadd.f32 %v2143_v29, %v4936_v52  ;;  %v4067_v39 = vmul.f32 -1.442695, %v2146_v32 }
0x1517   :  { %4552 = vtanh.f32 %v2146_v32 }
0x1518   :  { %4554 = vtanh.f32 %v2147_v54  ;;  %v4068_v52 = vmul.f32 -1.442695, %v2147_v54 }
0x1519   :  { %4556 = vpow2.f32 %v4064_v30 }
0x151a   :  { %4558 = vpow2.f32 %v4065_v44 }
0x151b   :  { %4560 = vpow2.f32 %v4067_v39 }
0x151c   :  { %4562 = vpow2.f32 %v4068_v52  ;;  %v2164_v52 = vrot.slane %v5369_v25, 1 }
0x151f   :  { %v4549_v63 = vpop.eup %4548 }
0x1520   :  { %v4551_v18 = vpop.eup %4550  ;;  %2058 = vrot.lane.b32.xlu0 %v4549_v63, %s4751_s24 }
0x1521   :  { %2060 = vrot.lane.b32.xlu1 %v4551_v18, %s4751_s24  ;;  %v4553_v46 = vpop.eup %4552 }
0x1522   :  { %v4555_v47 = vpop.eup %4554 }
0x1523   :  { %v4557_v33 = vpop.eup %4556 }
0x1524   :  { %2172 = vrot.lane.b32.xlu0 %v4553_v46, %s4751_s24  ;;  %v4559_v6 = vpop.eup %4558  ;;  %v2040_v48 = vadd.f32 1.0, %v4557_v33  ;;  %v2050_v46 = vrot.slane %v5362_v0, 7 }
0x1525   :  { %2174 = vrot.lane.b32.xlu1 %v4555_v47, %s4751_s24  ;;  %v4561_v34 = vpop.eup %4560  ;;  %v2041_v17 = vadd.f32 1.0, %v4559_v6  ;;  %v2051_v47 = vrot.slane %v5364_v16, 7 }
0x1526   :  { %v4563_v7 = vpop.eup %4562  ;;  %4564 = vrcp.f32 %v2040_v48  ;;  %v2154_v61 = vadd.f32 1.0, %v4561_v34  ;;  %v2165_v34 = vrot.slane %v5372_v55, 1 }
0x1527   :  { %4566 = vrcp.f32 %v2041_v17  ;;  %v2155_v24 = vadd.f32 1.0, %v4563_v7 }
0x1528   :  { %4568 = vrcp.f32 %v2154_v61 }
0x1529   :  { %4570 = vrcp.f32 %v2155_v24 }
0x1530   :  { %v5411_v35 = vpop.eup %4564 }
0x1531   :  { %v5413_v10 = vpop.eup %4566  ;;  %v2054_v30 = vmul.f32 %v5411_v35, %v2050_v46 }
0x1532   :  { %v5418_v32 = vpop.eup %4568  ;;  %v2055_v39 = vmul.f32 %v5413_v10, %v2051_v47 }
0x1533   :  { %v5422_v54 = vpop.eup %4570 }
0x1534   :  { %v2169_v16 = vmul.f32 %v5422_v54, %v2165_v34 }
0x1592   :  { %v2059_v38 = vpop.permute.xlu0 %2058 }
0x1593   :  { %v2061_v37 = vpop.permute.xlu1 %2060  ;;  %v2064_v29 = vmul.f32 %v5411_v35, %v2059_v38 }
0x1594   :  { %v2065_v43 = vmul.f32 %v5413_v10, %v2061_v37 }
0x1595   :  { %2068 = vrot.lane.b32.xlu0 %v2064_v29, %s4751_s24 }
0x1596   :  { %2070 = vrot.lane.b32.xlu1 %v2065_v43, %s4751_s24  ;;  %v2173_v40 = vpop.permute.xlu0 %2172 }
0x1597   :  { %v2178_v19 = vmul.f32 %v5418_v32, %v2173_v40  ;;  %v2175_v63 = vpop.permute.xlu1 %2174 }
0x1598   :  { %v2179_v18 = vmul.f32 %v5422_v54, %v2175_v63 }
0x1599   :  { %2182 = vrot.lane.b32.xlu0 %v2178_v19, %s4751_s24 }
0x159a   :  { %2184 = vrot.lane.b32.xlu1 %v2179_v18, %s4751_s24 }
0x159d   :  { %431 = vrot.lane.b32.xlu0 %v4970_v56, %s4752_s25  ;;  %v2168_v56 = vmul.f32 %v5418_v32, %v2164_v52 }
0x159e   :  { %433 = vrot.lane.b32.xlu1 %v4964_v49, %s4752_s25 }
0x1607   :  { %v2069_v44 = vpop.permute.xlu0 %2068 }
0x1608   :  { %v2074_v33 = vadd.f32 %v2069_v44, %v2054_v30  ;;  %v2071_v6 = vpop.permute.xlu1 %2070 }
0x1609   :  { %v2075_v48 = vadd.f32 %v2071_v6, %v2055_v39 }
0x160a   :  { %4572 = vtanh.f32 %v2074_v33 }
0x160b   :  { %4574 = vtanh.f32 %v2075_v48  ;;  %v2183_v49 = vpop.permute.xlu0 %2182 }
0x160c   :  { %v2188_v0 = vadd.f32 %v2183_v49, %v2168_v56  ;;  %v2185_v17 = vpop.permute.xlu1 %2184  ;;  %v4754_v56 = vmov 1  }
0x160d   :  { %v2189_v7 = vadd.f32 %v2185_v17, %v2169_v16  ;;  %4298 = vset.pattern.permute.xlu0 %v4754_v56 }
0x160e   :  { %4576 = vtanh.f32 %v2188_v0  ;;  %v4069_v0 = vld [vmem:[%s6206_s8] ss:$0 sm:$0xff] }
0x160f   :  { %v432_v61 = vpop.permute.xlu0 %431  ;;  %4578 = vtanh.f32 %v2189_v7 }
0x1610   :  { %438 = vst.msk [vmem:[#allocation2] sm:$0x1] %vm437_vm7, %v432_v61  ;;  %v434_v25 = vpop.permute.xlu1 %433 }
0x1611   :  { %439 = vst.msk [vmem:[#allocation2 + $0x8] sm:$0x1] %vm437_vm7, %v434_v25  ;;  %vm2221_vm7 = vcmask 516352   ;;  %v4080_v25 = vld [vmem:[%s6208_s10] ss:$0 sm:$0xff] }
0x1614   :  { %v4573_v24 = vpop.eup %4572 }
0x1615   :  { %v4575_v38 = vpop.eup %4574  ;;  %2080 = vrot.lane.b32.xlu0 %v4573_v24, %s4751_s24 }
0x1616   :  { %2082 = vrot.lane.b32.xlu1 %v4575_v38, %s4751_s24  ;;  %v2314_v38 = vld [vmem:[%s6200_s2] sm:$0x3] }
0x1618   :  { %v4577_v55 = vpop.eup %4576 }
0x1619   :  { %2194 = vrot.lane.b32.xlu0 %v4577_v55, %s4751_s24  ;;  %v4579_v37 = vpop.eup %4578 }
0x161a   :  { %2196 = vrot.lane.b32.xlu1 %v4579_v37, %s4751_s24 }
0x161d   :  { %442 = vrot.lane.b32.xlu0 %v4968_v53, %s4753_s5  ;;  %v4320_v53 = vld [vmem:[%s6205_s7] sm:$0xff]  }
0x161e   :  { %444 = vrot.lane.b32.xlu1 %v4976_v62, %s4753_s5  ;;  %4265 = vmatpush3.bf16.msra.mxu0 %v4320_v53  ;;  %v4321_v62 = vld [vmem:[%s6205_s7 + $0x8] sm:$0xff]  }
0x161f   :  { %4266 = vmatprep.subr.bf16.mxu0 %v6212_v1 }
0x1621   :  { %684 = vrot.lane.b32.xlu0 %v5030_v42, %s4752_s25  ;;  %v4322_v42 = vld [vmem:[%s6205_s7 + $0x10] sm:$0xff]  }
0x1622   :  { %686 = vrot.lane.b32.xlu1 %v5042_v60, %s4752_s25  ;;  %4267 = vmatpush3.bf16.msra.mxu0 %v4321_v62 }
0x1623   :  { %4268 = vmatprep.subr.bf16.mxu0 %v6212_v1 }
0x1625   :  { %695 = vrot.lane.b32.xlu0 %v5034_v50, %s4753_s5  ;;  %v4323_v50 = vld [vmem:[%s6205_s7 + $0x18] sm:$0xff]  }
0x1626   :  { %697 = vrot.lane.b32.xlu1 %v5036_v51, %s4753_s5  ;;  %4269 = vmatpush3.bf16.msra.mxu0 %v4322_v42 }
0x1627   :  { %4270 = vmatprep.subr.bf16.mxu0 %v6212_v1 }
0x1629   :  { %937 = vrot.lane.b32.xlu0 %v5096_v58, %s4752_s25 }
0x162a   :  { %939 = vrot.lane.b32.xlu1 %v5098_v59, %s4752_s25  ;;  %4271 = vmatpush3.bf16.msra.mxu0 %v4323_v50  ;;  %v4755_v50 = vmov 2  }
0x162d   :  { %948 = vrot.lane.b32.xlu0 %v5104_v8, %s4753_s5 }
0x162e   :  { %950 = vrot.lane.b32.xlu1 %v5106_v13, %s4753_s5 }
0x1631   :  { %1191 = vrot.lane.b32.xlu0 %v5162_v15, %s4752_s25 }
0x1632   :  { %1193 = vrot.lane.b32.xlu1 %v5164_v9, %s4752_s25 }
0x1635   :  { %1202 = vrot.lane.b32.xlu0 %v5170_v26, %s4753_s5 }
0x1636   :  { %1204 = vrot.lane.b32.xlu1 %v5172_v20, %s4753_s5 }
0x1639   :  { %1445 = vrot.lane.b32.xlu0 %v5248_v31, %s4752_s25 }
0x163a   :  { %1447 = vrot.lane.b32.xlu1 %v5250_v45, %s4752_s25 }
0x163d   :  { %1456 = vrot.lane.b32.xlu0 %v5256_v22, %s4753_s5 }
0x163e   :  { %1458 = vrot.lane.b32.xlu1 %v5258_v28, %s4753_s5 }
0x1641   :  { %1699 = vrot.lane.b32.xlu0 %v5314_v57, %s4752_s25 }
0x1642   :  { %1701 = vrot.lane.b32.xlu1 %v5316_v27, %s4752_s25 }
0x1645   :  { %1710 = vrot.lane.b32.xlu0 %v5322_v21, %s4753_s5 }
0x1646   :  { %1712 = vrot.lane.b32.xlu1 %v5324_v12, %s4753_s5 }
0x1649   :  { %1952 = vrot.lane.b32.xlu0 %v5379_v36, %s4752_s25 }
0x164a   :  { %1954 = vrot.lane.b32.xlu1 %v5381_v11, %s4752_s25 }
0x164d   :  { %1963 = vrot.lane.b32.xlu0 %v5387_v14, %s4753_s5 }
0x164e   :  { %1965 = vrot.lane.b32.xlu1 %v5391_v41, %s4753_s5 }
0x1687   :  { %v2081_v51 = vpop.permute.xlu0 %2080 }
0x1688   :  { %v2086_v60 = vmul.f32 %v5411_v35, %v2081_v51  ;;  %v2083_v58 = vpop.permute.xlu1 %2082  ;;  %v5548_v51 = vld [vmem:[%s6207_s9] sm:$0xff] }
0x1689   :  { %v2087_v59 = vmul.f32 %v5413_v10, %v2083_v58 }
0x168a   :  { %2204 = vrot.lane.b32.xlu0 %v2086_v60, %s4752_s25 }
0x168b   :  { %2206 = vrot.lane.b32.xlu1 %v2087_v59, %s4752_s25  ;;  %v2195_v8 = vpop.permute.xlu0 %2194 }
0x168c   :  { %v2200_v13 = vmul.f32 %v5418_v32, %v2195_v8  ;;  %v2197_v15 = vpop.permute.xlu1 %2196 }
0x168d   :  { %v2201_v9 = vmul.f32 %v5422_v54, %v2197_v15 }
0x168e   :  { %2215 = vrot.lane.b32.xlu0 %v2200_v13, %s4753_s5 }
0x168f   :  { %v443_v26 = vpop.permute.xlu0 %442  ;;  %2217 = vrot.lane.b32.xlu1 %v2201_v9, %s4753_s5 }
0x1690   :  { %449 = vst.msk [vmem:[#allocation2] sm:$0x80] %vm448_vm8, %v443_v26  ;;  %v445_v20 = vpop.permute.xlu1 %444 }
0x1691   :  { %450 = vst.msk [vmem:[#allocation2 + $0x8] sm:$0x80] %vm448_vm8, %v445_v20  ;;  %vm2266_vm8 = vcmask 523264  }
0x1693   :  { %v685_v31 = vpop.permute.xlu0 %684 }
0x1694   :  { %691 = vst.msk [vmem:[#allocation2] sm:$0x2] %vm690_vm9, %v685_v31  ;;  %v687_v45 = vpop.permute.xlu1 %686 }
0x1695   :  { %692 = vst.msk [vmem:[#allocation2 + $0x8] sm:$0x2] %vm690_vm9, %v687_v45  ;;  %vm2895_vm9 = vcmp.gt.f32.partialorder %v2314_v38, 0.5 }
0x1696   :  { %v5541_v42 = vsel %vm2895_vm9, 1, %v4750_v3 }
0x1697   :  { %v696_v22 = vpop.permute.xlu0 %695 }
0x1698   :  { %702 = vst.msk [vmem:[#allocation2] sm:$0x40] %vm701_vm10, %v696_v22  ;;  %v698_v28 = vpop.permute.xlu1 %697 }
0x1699   :  { %703 = vst.msk [vmem:[#allocation2 + $0x8] sm:$0x40] %vm701_vm10, %v698_v28  ;;  %vm2389_vm10 = vcmask 64512  }
0x169b   :  { %v938_v57 = vpop.permute.xlu0 %937 }
0x169c   :  { %944 = vst.msk [vmem:[#allocation2] sm:$0x4] %vm943_vm11, %v938_v57  ;;  %v940_v27 = vpop.permute.xlu1 %939 }
0x169d   :  { %945 = vst.msk [vmem:[#allocation2 + $0x8] sm:$0x4] %vm943_vm11, %v940_v27 }
0x169f   :  { %v949_v21 = vpop.permute.xlu0 %948 }
0x16a0   :  { %955 = vst.msk [vmem:[#allocation2] sm:$0x20] %vm954_vm12, %v949_v21  ;;  %v951_v12 = vpop.permute.xlu1 %950 }
0x16a1   :  { %956 = vst.msk [vmem:[#allocation2 + $0x8] sm:$0x20] %vm954_vm12, %v951_v12 }
0x16a3   :  { %v1192_v36 = vpop.permute.xlu0 %1191 }
0x16a4   :  { %1198 = vst.msk [vmem:[#allocation2] sm:$0x8] %vm1197_vm13, %v1192_v36  ;;  %v1194_v11 = vpop.permute.xlu1 %1193 }
0x16a5   :  { %1199 = vst.msk [vmem:[#allocation2 + $0x8] sm:$0x8] %vm1197_vm13, %v1194_v11 }
0x16a7   :  { %v1203_v14 = vpop.permute.xlu0 %1202 }
0x16a8   :  { %1209 = vst.msk [vmem:[#allocation2] sm:$0x10] %vm1208_vm14, %v1203_v14  ;;  %v1205_v41 = vpop.permute.xlu1 %1204 }
0x16a9   :  { %1210 = vst.msk [vmem:[#allocation2 + $0x8] sm:$0x10] %vm1208_vm14, %v1205_v41 }
0x16ab   :  { %v1446_v35 = vpop.permute.xlu0 %1445 }
0x16ac   :  { %1452 = vst.msk [vmem:[#allocation2] sm:$0x10] %vm1451_vm15, %v1446_v35  ;;  %v1448_v10 = vpop.permute.xlu1 %1447 }
0x16ad   :  { %1453 = vst.msk [vmem:[#allocation2 + $0x8] sm:$0x10] %vm1451_vm15, %v1448_v10 }
0x16af   :  { %v1457_v29 = vpop.permute.xlu0 %1456 }
0x16b0   :  { %1463 = vst.msk [vmem:[#allocation2] sm:$0x8] %vm1462_vm0, %v1457_v29  ;;  %v1459_v43 = vpop.permute.xlu1 %1458 }
0x16b1   :  { %1464 = vst.msk [vmem:[#allocation2 + $0x8] sm:$0x8] %vm1462_vm0, %v1459_v43 }
0x16b3   :  { %v1700_v32 = vpop.permute.xlu0 %1699 }
0x16b4   :  { %1706 = vst.msk [vmem:[#allocation2] sm:$0x20] %vm1705_vm1, %v1700_v32  ;;  %v1702_v40 = vpop.permute.xlu1 %1701 }
0x16b5   :  { %1707 = vst.msk [vmem:[#allocation2 + $0x8] sm:$0x20] %vm1705_vm1, %v1702_v40 }
0x16b7   :  { %v1711_v19 = vpop.permute.xlu0 %1710 }
0x16b8   :  { %1717 = vst.msk [vmem:[#allocation2] sm:$0x4] %vm1716_vm2, %v1711_v19  ;;  %v1713_v54 = vpop.permute.xlu1 %1712 }
0x16b9   :  { %1718 = vst.msk [vmem:[#allocation2 + $0x8] sm:$0x4] %vm1716_vm2, %v1713_v54 }
0x16bb   :  { %v1953_v63 = vpop.permute.xlu0 %1952 }
0x16bc   :  { %1959 = vst.msk [vmem:[#allocation2] sm:$0x40] %vm1958_vm3, %v1953_v63  ;;  %v1955_v18 = vpop.permute.xlu1 %1954 }
0x16bd   :  { %1960 = vst.msk [vmem:[#allocation2 + $0x8] sm:$0x40] %vm1958_vm3, %v1955_v18 }
0x16bf   :  { %v1964_v46 = vpop.permute.xlu0 %1963 }
0x16c0   :  { %1970 = vst.msk [vmem:[#allocation2] sm:$0x2] %vm1969_vm4, %v1964_v46  ;;  %v1966_v47 = vpop.permute.xlu1 %1965 }
0x16c1   :  { %1971 = vst.msk [vmem:[#allocation2 + $0x8] sm:$0x2] %vm1969_vm4, %v1966_v47 }
0x16fc   :  { %v2205_v30 = vpop.permute.xlu0 %2204 }
0x16fd   :  { %2211 = vst.msk [vmem:[#allocation2] sm:$0x80] %vm2210_vm6, %v2205_v30  ;;  %v2207_v44 = vpop.permute.xlu1 %2206 }
0x16fe   :  { %2212 = vst.msk [vmem:[#allocation2 + $0x8] sm:$0x80] %vm2210_vm6, %v2207_v44 }
0x1700   :  { %v2216_v39 = vpop.permute.xlu0 %2215 }
0x1701   :  { %2222 = vst.msk [vmem:[#allocation2] sm:$0x1] %vm2221_vm7, %v2216_v39  ;;  %v2218_v52 = vpop.permute.xlu1 %2217 }
0x1702   :  { %2223 = vst.msk [vmem:[#allocation2 + $0x8] sm:$0x1] %vm2221_vm7, %v2218_v52 }
0x1708   :  { %v2224_v33 = vld [vmem:[#allocation2] sm:$0xff] }
0x1709   :  { %v2225_v6 = vld [vmem:[#allocation2 + $0x8] sm:$0xff] }
0x170a   :  { %v2226_v48 = vpack.c.bf16 %v2225_v6, %v2224_v33 }
0x170c   :  { %4273 = vmatmul.mubr.msk.bf16.vlgmr.msra.gmra.mrb[28].mxu0 %vm2266_vm8, %v2226_v48 }
0x17df   :  { %v2304_v34 = vpop.f32.mrb[28].mxu0 }
0x17e0   :  { %v4274_v49 = vpop.f32.mrb[29].mxu0  ;;  %v5523_v61 = vadd.f32 %v4069_v0, %v2304_v34 }
0x17e1   :  { %v2307_v16 = vpop.f32.mrb[30].mxu0 }
0x17e2   :  { %v5521_v17 = vadd.f32 %v4069_v0, %v2307_v16  ;;  %v4275_v7 = vpop.f32.mrb[31].mxu0 }
0x17e4   :  { %v2891_v24 = vrot.slane %v5521_v17, 7 }
0x17e6   :  { %v2892_v55 = vsel %vm458_vm5, %v2891_v24, %v5523_v61 }
0x17e7   :  { %v5534_v37 = vadd.f32 %v4080_v25, %v2892_v55 }
0x17e9   :  { %v2906_v53 = vrot.slane %v5534_v37, %v4868_v5  ;;  %v2899_v62 = vrot.slane %v5534_v37, %v4865_v4 }
0x17eb   :  { %2908 = vbcast.lane.b32.xlu1 %v2906_v53, 256  ;;  %2901 = vbcast.lane.b32.xlu0 %v2899_v62, 256 }
0x17ef   :  { %2956 = vperm.xlu0 %4298, %v5541_v42  }
0x17f3   :  { %4299 = vset.pattern.permute.xlu0 %v4755_v50 }
0x17f4   :  { %3056 = vperm.xlu0 %4299, %v5541_v42  }
0x185d   :  { %v2909_v60 = vpop.permute.xlu1 %2908  ;;  %v2902_v58 = vpop.permute.xlu0 %2901 }
0x185e   :  { %v2911_v59 = vadd.f32 %v2909_v60, %v5548_v51  ;;  %v2910_v8 = vadd.f32 %v2902_v58, %v5548_v51 }
0x1860   :  { %v2919_v3 = vsel %vm2389_vm10, %v2911_v59, -inf  ;;  %v2912_v13 = vsel %vm2389_vm10, %v2910_v8, -inf }
0x1861   :  { %v2920_v15 = vrot.slane %v2919_v3, 4  ;;  %v2913_v9 = vrot.slane %v2912_v13, 4 }
0x1863   :  { %v2921_v26 = vmax.f32 %v2919_v3, %v2920_v15  ;;  %v2914_v20 = vmax.f32 %v2912_v13, %v2913_v9 }
0x1865   :  { %v2922_v31 = vrot.slane %v2921_v26, 2  ;;  %v2915_v45 = vrot.slane %v2914_v20, 2 }
0x1867   :  { %v2923_v22 = vmax.f32 %v2921_v26, %v2922_v31  ;;  %v2916_v28 = vmax.f32 %v2914_v20, %v2915_v45  ;;  %v4756_v20 = vmov 3  }
0x1868   :  { %4300 = vset.pattern.permute.xlu0 %v4756_v20 }
0x1869   :  { %v2924_v57 = vrot.slane %v2923_v22, 1  ;;  %v2917_v27 = vrot.slane %v2916_v28, 1  ;;  %3188 = vperm.xlu0 %4300, %v5541_v42  }
0x186b   :  { %v5554_v21 = vmax.f32 %v2923_v22, %v2924_v57  ;;  %v5556_v12 = vmax.f32 %v2916_v28, %v2917_v27 }
0x186d   :  { %v2927_v36 = vsub.f32 %v2911_v59, %v5554_v21  ;;  %vm2966_vm11 = vcmp.eq.f32.partialorder %v2911_v59, %v5554_v21  ;;  %v2926_v11 = vsub.f32 %v2910_v8, %v5556_v12  ;;  %vm2965_vm12 = vcmp.eq.f32.partialorder %v2910_v8, %v5556_v12 }
0x186e   :  { %v2968_v14 = vsel %vm2966_vm11, %v4861_v2, 8  ;;  %v2967_v41 = vsel %vm2965_vm12, %v4861_v2, 8  ;;  %v2989_v35 = vadd.f32 %v5556_v12, %v5523_v61  ;;  %v5566_v10 = vpop.permute.xlu0 %2956  ;;  %v2990_v40 = vadd.f32 %v5554_v21, %v5521_v17 }
0x186f   :  { %v2930_v29 = vmul.f32 1.442695, %v2927_v36  ;;  %v2979_v43 = vsel %vm2389_vm10, %v2968_v14, 2147483647  ;;  %v2928_v32 = vmul.f32 1.442695, %v2926_v11 }
0x1870   :  { %v2980_v19 = vrot.slane %v2979_v43, 4  ;;  %v2969_v54 = vsel %vm2389_vm10, %v2967_v41, 2147483647  ;;  %v2993_v63 = vrot.slane %v2989_v35, 1  ;;  %vm2958_vm13 = vcmp.eq.s32.totalorder %v5566_v10, 1 }
0x1871   :  { %4580 = vpow2.f32 %v2930_v29  ;;  %v2970_v18 = vrot.slane %v2969_v54, 4 }
0x1872   :  { %vm2981_vm14 = vcmp.lt.s32.totalorder %v2979_v43, %v2980_v19  ;;  %4582 = vpow2.f32 %v2928_v32  ;;  %v2994_v46 = vsel %vm458_vm5, %v2990_v40, %v2993_v63 }
0x1873   :  { %v2982_v47 = vsel %vm2981_vm14, %v2979_v43, %v2980_v19  ;;  %vm2971_vm15 = vcmp.lt.s32.totalorder %v2969_v54, %v2970_v18  ;;  %v5577_v30 = vsel %vm2958_vm13, %v2994_v46, %v5534_v37 }
0x1874   :  { %v2983_v44 = vrot.slane %v2982_v47, 2  ;;  %v2972_v39 = vsel %vm2971_vm15, %v2969_v54, %v2970_v18  ;;  %v3069_v52 = vrot.slane %v5577_v30, %v4865_v4  ;;  %v3076_v34 = vrot.slane %v5577_v30, %v4868_v5 }
0x1875   :  { %v2973_v33 = vrot.slane %v2972_v39, 2 }
0x1876   :  { %vm2984_vm0 = vcmp.lt.s32.totalorder %v2982_v47, %v2983_v44  ;;  %3071 = vbcast.lane.b32.xlu1 %v3069_v52, 256 }
0x1877   :  { %v2985_v6 = vsel %vm2984_vm0, %v2982_v47, %v2983_v44  ;;  %vm2974_vm1 = vcmp.lt.s32.totalorder %v2972_v39, %v2973_v33 }
0x1878   :  { %v2986_v48 = vrot.slane %v2985_v6, 1  ;;  %v2975_v56 = vsel %vm2974_vm1, %v2972_v39, %v2973_v33 }
0x1879   :  { %v2976_v49 = vrot.slane %v2975_v56, 1 }
0x187a   :  { %3078 = vbcast.lane.b32.xlu1 %v3076_v34, 256  ;;  %vm2987_vm2 = vcmp.lt.s32.totalorder %v2985_v6, %v2986_v48  ;;  %v5606_v34 = vpop.permute.xlu0 %3056 }
0x187b   :  { %v4581_v0 = vpop.eup %4580  ;;  %vm2977_vm3 = vcmp.lt.s32.totalorder %v2975_v56, %v2976_v49  ;;  %v2988_v16 = vsel %vm2987_vm2, %v2985_v6, %v2986_v48  ;;  %vm3058_vm8 = vcmp.eq.s32.totalorder %v5606_v34, 1 }
0x187c   :  { %v4583_v7 = vpop.eup %4582  ;;  %v2939_v25 = vsel %vm2389_vm10, %v4581_v0, 0.0  ;;  %v2978_v24 = vsel %vm2977_vm3, %v2975_v56, %v2976_v49 }
0x187d   :  { %v2940_v38 = vrot.slane %v2939_v25, 4  ;;  %v2932_v55 = vsel %vm2389_vm10, %v4583_v7, 0.0  ;;  %v5586_v53 = vsel %vm458_vm5, %v2988_v16, %v2978_v24 }
0x187e   :  { %v2933_v62 = vrot.slane %v2932_v55, 4 }
0x187f   :  { %v2941_v50 = vadd.f32 %v2940_v38, %v2939_v25 }
0x1880   :  { %v2934_v60 = vadd.f32 %v2933_v62, %v2932_v55 }
0x1881   :  { %v2942_v58 = vrot.slane %v2941_v50, 2 }
0x1882   :  { %v2935_v59 = vrot.slane %v2934_v60, 2 }
0x1883   :  { %v2943_v8 = vadd.f32 %v2942_v58, %v2941_v50 }
0x1884   :  { %v2936_v3 = vadd.f32 %v2935_v59, %v2934_v60 }
0x1885   :  { %v2944_v13 = vrot.slane %v2943_v8, 1 }
0x1886   :  { %v2937_v15 = vrot.slane %v2936_v3, 1 }
0x1887   :  { %v2945_v9 = vadd.f32 %v2944_v13, %v2943_v8 }
0x1888   :  { %v2938_v26 = vadd.f32 %v2937_v15, %v2936_v3 }
0x1889   :  { %4584 = vlog2.f32 %v2945_v9 }
0x188a   :  { %4586 = vlog2.f32 %v2938_v26 }
0x1893   :  { %v4585_v31 = vpop.eup %4584 }
0x1894   :  { %v4587_v45 = vpop.eup %4586  ;;  %v2949_v22 = vmul.f32 0.6931472, %v4585_v31 }
0x1895   :  { %v2947_v28 = vmul.f32 0.6931472, %v4587_v45 }
0x1896   :  { %v2951_v57 = vadd.f32 %v2949_v22, %v5554_v21 }
0x1897   :  { %v2950_v27 = vadd.f32 %v2947_v28, %v5556_v12 }
0x1898   :  { %v2953_v11 = vadd.f32 %v2951_v57, %v5521_v17 }
0x1899   :  { %v2952_v36 = vadd.f32 %v2950_v27, %v5523_v61 }
0x189b   :  { %v2961_v14 = vrot.slane %v2952_v36, 1 }
0x189d   :  { %v2962_v41 = vsel %vm458_vm5, %v2953_v11, %v2961_v14 }
0x189e   :  { %v5597_v35 = vsel %vm2958_vm13, %v2962_v41, %v5534_v37 }
0x18e8   :  { %v3072_v29 = vpop.permute.xlu1 %3071 }
0x18e9   :  { %v3080_v43 = vadd.f32 %v3072_v29, %v5548_v51 }
0x18eb   :  { %v3082_v32 = vsel %vm2389_vm10, %v3080_v43, -inf }
0x18ec   :  { %v3083_v21 = vrot.slane %v3082_v32, 4  ;;  %v3079_v40 = vpop.permute.xlu1 %3078 }
0x18ed   :  { %v3081_v12 = vadd.f32 %v3079_v40, %v5548_v51 }
0x18ee   :  { %v3084_v19 = vmax.f32 %v3082_v32, %v3083_v21 }
0x18ef   :  { %v3089_v54 = vsel %vm2389_vm10, %v3081_v12, -inf }
0x18f0   :  { %v3085_v63 = vrot.slane %v3084_v19, 2  ;;  %v3090_v18 = vrot.slane %v3089_v54, 4 }
0x18f2   :  { %v3086_v46 = vmax.f32 %v3084_v19, %v3085_v63  ;;  %v3091_v47 = vmax.f32 %v3089_v54, %v3090_v18 }
0x18f4   :  { %v3087_v44 = vrot.slane %v3086_v46, 1  ;;  %v3092_v10 = vrot.slane %v3091_v47, 2 }
0x18f6   :  { %v3088_v37 = vmax.f32 %v3086_v46, %v3087_v44  ;;  %v3093_v39 = vmax.f32 %v3091_v47, %v3092_v10  ;;  %v5629_v10 = vpop.permute.xlu0 %3188 }
0x18f7   :  { %vm3190_vm2 = vcmp.eq.s32.totalorder %v5629_v10, 1  ;;  %v5794_v10 = vld [vmem:[%s6200_s2] sm:$0x3] }
0x18f8   :  { %vm3096_vm4 = vcmp.eq.f32.partialorder %v3080_v43, %v3088_v37  ;;  %v3094_v52 = vrot.slane %v3093_v39, 1  ;;  %v3120_v48 = vadd.f32 %v3088_v37, %v5523_v61 }
0x18f9   :  { %v3098_v33 = vsel %vm3096_vm4, %v4861_v2, 8 }
0x18fa   :  { %v3100_v6 = vsel %vm2389_vm10, %v3098_v33, 2147483647  ;;  %v3095_v56 = vmax.f32 %v3093_v39, %v3094_v52  ;;  %v3124_v25 = vrot.slane %v3120_v48, 2 }
0x18fb   :  { %v3101_v49 = vrot.slane %v3100_v6, 4 }
0x18fc   :  { %vm3097_vm6 = vcmp.eq.f32.partialorder %v3081_v12, %v3095_v56  ;;  %v3121_v0 = vadd.f32 %v3095_v56, %v5521_v17 }
0x18fd   :  { %vm3102_vm7 = vcmp.lt.s32.totalorder %v3100_v6, %v3101_v49  ;;  %v3099_v16 = vsel %vm3097_vm6, %v4861_v2, 8 }
0x18fe   :  { %v3103_v7 = vsel %vm3102_vm7, %v3100_v6, %v3101_v49  ;;  %v3110_v24 = vsel %vm2389_vm10, %v3099_v16, 2147483647  ;;  %v3125_v38 = vrot.slane %v3121_v0, 1 }
0x18ff   :  { %v3104_v55 = vrot.slane %v3103_v7, 2  ;;  %v3111_v62 = vrot.slane %v3110_v24, 4 }
0x1900   :  { %v3126_v50 = vsel %vm458_vm5, %v3125_v38, %v3124_v25 }
0x1901   :  { %vm3105_vm9 = vcmp.lt.s32.totalorder %v3103_v7, %v3104_v55  ;;  %vm3112_vm11 = vcmp.lt.s32.totalorder %v3110_v24, %v3111_v62  ;;  %v3128_v60 = vsel %vm3058_vm8, %v3126_v50, %v5577_v30  ;;  %v4757_v30 = vmov 4  }
0x1902   :  { %v3106_v58 = vsel %vm3105_vm9, %v3103_v7, %v3104_v55  ;;  %v3113_v59 = vsel %vm3112_vm11, %v3110_v24, %v3111_v62  ;;  %v3201_v8 = vrot.slane %v3128_v60, %v4865_v4  ;;  %v3208_v9 = vrot.slane %v3128_v60, %v4868_v5  ;;  %4301 = vset.pattern.permute.xlu0 %v4757_v30 }
0x1903   :  { %v3107_v3 = vrot.slane %v3106_v58, 1  ;;  %v3114_v13 = vrot.slane %v3113_v59, 2  ;;  %3320 = vperm.xlu0 %4301, %v5541_v42  }
0x1904   :  { %3203 = vbcast.lane.b32.xlu1 %v3201_v8, 256 }
0x1905   :  { %vm3115_vm12 = vcmp.lt.s32.totalorder %v3113_v59, %v3114_v13  ;;  %vm3108_vm13 = vcmp.lt.s32.totalorder %v3106_v58, %v3107_v3 }
0x1906   :  { %v3116_v15 = vsel %vm3115_vm12, %v3113_v59, %v3114_v13  ;;  %v3109_v20 = vsel %vm3108_vm13, %v3106_v58, %v3107_v3 }
0x1907   :  { %v3117_v26 = vrot.slane %v3116_v15, 1 }
0x1908   :  { %3210 = vbcast.lane.b32.xlu1 %v3208_v9, 256 }
0x1909   :  { %vm3118_vm14 = vcmp.lt.s32.totalorder %v3116_v15, %v3117_v26 }
0x190a   :  { %v3119_v31 = vsel %vm3118_vm14, %v3116_v15, %v3117_v26 }
0x190b   :  { %v5619_v45 = vsel %vm458_vm5, %v3119_v31, %v3109_v20 }
0x1976   :  { %v3204_v22 = vpop.permute.xlu1 %3203 }
0x1977   :  { %v3212_v28 = vadd.f32 %v3204_v22, %v5548_v51 }
0x1979   :  { %v3214_v57 = vsel %vm2389_vm10, %v3212_v28, -inf }
0x197a   :  { %v3215_v27 = vrot.slane %v3214_v57, 4  ;;  %v3211_v36 = vpop.permute.xlu1 %3210 }
0x197b   :  { %v3213_v11 = vadd.f32 %v3211_v36, %v5548_v51 }
0x197c   :  { %v3216_v14 = vmax.f32 %v3214_v57, %v3215_v27 }
0x197d   :  { %v3221_v41 = vsel %vm2389_vm10, %v3213_v11, -inf }
0x197e   :  { %v3217_v29 = vrot.slane %v3216_v14, 2  ;;  %v3222_v43 = vrot.slane %v3221_v41, 4 }
0x1980   :  { %v3218_v32 = vmax.f32 %v3216_v14, %v3217_v29  ;;  %v3223_v21 = vmax.f32 %v3221_v41, %v3222_v43 }
0x1982   :  { %v3219_v40 = vrot.slane %v3218_v32, 1  ;;  %v3224_v12 = vrot.slane %v3223_v21, 2 }
0x1984   :  { %v3220_v19 = vmax.f32 %v3218_v32, %v3219_v40  ;;  %v3225_v54 = vmax.f32 %v3223_v21, %v3224_v12 }
0x1986   :  { %vm3228_vm15 = vcmp.eq.f32.partialorder %v3212_v28, %v3220_v19  ;;  %v3226_v63 = vrot.slane %v3225_v54, 1  ;;  %v3252_v47 = vadd.f32 %v3220_v19, %v5523_v61 }
0x1987   :  { %v3230_v18 = vsel %vm3228_vm15, %v4861_v2, 8 }
0x1988   :  { %v3232_v46 = vsel %vm2389_vm10, %v3230_v18, 2147483647  ;;  %v3227_v44 = vmax.f32 %v3225_v54, %v3226_v63  ;;  %v3256_v6 = vrot.slane %v3252_v47, 3  ;;  %v5651_v54 = vpop.permute.xlu0 %3320 }
0x1989   :  { %v3233_v37 = vrot.slane %v3232_v46, 4  ;;  %vm3322_vm14 = vcmp.eq.s32.totalorder %v5651_v54, 1 }
0x198a   :  { %vm3229_vm0 = vcmp.eq.f32.partialorder %v3213_v11, %v3227_v44  ;;  %v3253_v39 = vadd.f32 %v3227_v44, %v5521_v17 }
0x198b   :  { %vm3234_vm1 = vcmp.lt.s32.totalorder %v3232_v46, %v3233_v37  ;;  %v3231_v52 = vsel %vm3229_vm0, %v4861_v2, 8 }
0x198c   :  { %v3235_v33 = vsel %vm3234_vm1, %v3232_v46, %v3233_v37  ;;  %v3242_v48 = vsel %vm2389_vm10, %v3231_v52, 2147483647  ;;  %v3257_v56 = vrot.slane %v3253_v39, 2 }
0x198d   :  { %v3236_v49 = vrot.slane %v3235_v33, 2  ;;  %v3243_v0 = vrot.slane %v3242_v48, 4 }
0x198e   :  { %v3258_v16 = vsel %vm458_vm5, %v3257_v56, %v3256_v6 }
0x198f   :  { %vm3237_vm3 = vcmp.lt.s32.totalorder %v3235_v33, %v3236_v49  ;;  %vm3244_vm4 = vcmp.lt.s32.totalorder %v3242_v48, %v3243_v0  ;;  %v3260_v7 = vsel %vm3190_vm2, %v3258_v16, %v3128_v60  ;;  %v4758_v60 = vmov 5  }
0x1990   :  { %v3238_v25 = vsel %vm3237_vm3, %v3235_v33, %v3236_v49  ;;  %v3245_v24 = vsel %vm3244_vm4, %v3242_v48, %v3243_v0  ;;  %v3333_v38 = vrot.slane %v3260_v7, %v4865_v4  ;;  %v3340_v58 = vrot.slane %v3260_v7, %v4868_v5  ;;  %4302 = vset.pattern.permute.xlu0 %v4758_v60 }
0x1991   :  { %v3239_v55 = vrot.slane %v3238_v25, 1  ;;  %v3246_v62 = vrot.slane %v3245_v24, 2  ;;  %3452 = vperm.xlu0 %4302, %v5541_v42  }
0x1992   :  { %3335 = vbcast.lane.b32.xlu1 %v3333_v38, 256 }
0x1993   :  { %vm3247_vm6 = vcmp.lt.s32.totalorder %v3245_v24, %v3246_v62  ;;  %vm3240_vm7 = vcmp.lt.s32.totalorder %v3238_v25, %v3239_v55 }
0x1994   :  { %v3248_v50 = vsel %vm3247_vm6, %v3245_v24, %v3246_v62  ;;  %v3241_v8 = vsel %vm3240_vm7, %v3238_v25, %v3239_v55 }
0x1995   :  { %v3249_v59 = vrot.slane %v3248_v50, 1 }
0x1996   :  { %3342 = vbcast.lane.b32.xlu1 %v3340_v58, 256 }
0x1997   :  { %vm3250_vm9 = vcmp.lt.s32.totalorder %v3248_v50, %v3249_v59 }
0x1998   :  { %v3251_v3 = vsel %vm3250_vm9, %v3248_v50, %v3249_v59 }
0x1999   :  { %v5641_v13 = vsel %vm458_vm5, %v3251_v3, %v3241_v8 }
0x1a04   :  { %v3336_v15 = vpop.permute.xlu1 %3335 }
0x1a05   :  { %v3344_v9 = vadd.f32 %v3336_v15, %v5548_v51 }
0x1a07   :  { %v3346_v26 = vsel %vm2389_vm10, %v3344_v9, -inf }
0x1a08   :  { %v3347_v20 = vrot.slane %v3346_v26, 4  ;;  %v3343_v31 = vpop.permute.xlu1 %3342 }
0x1a09   :  { %v3345_v30 = vadd.f32 %v3343_v31, %v5548_v51 }
0x1a0a   :  { %v3348_v22 = vmax.f32 %v3346_v26, %v3347_v20 }
0x1a0b   :  { %v3353_v28 = vsel %vm2389_vm10, %v3345_v30, -inf }
0x1a0c   :  { %v3349_v57 = vrot.slane %v3348_v22, 2  ;;  %v3354_v27 = vrot.slane %v3353_v28, 4 }
0x1a0e   :  { %v3350_v36 = vmax.f32 %v3348_v22, %v3349_v57  ;;  %v3355_v11 = vmax.f32 %v3353_v28, %v3354_v27 }
0x1a10   :  { %v3351_v14 = vrot.slane %v3350_v36, 1  ;;  %v3356_v41 = vrot.slane %v3355_v11, 2 }
0x1a12   :  { %v3352_v29 = vmax.f32 %v3350_v36, %v3351_v14  ;;  %v3357_v43 = vmax.f32 %v3355_v11, %v3356_v41 }
0x1a14   :  { %vm3360_vm11 = vcmp.eq.f32.partialorder %v3344_v9, %v3352_v29  ;;  %v3358_v32 = vrot.slane %v3357_v43, 1  ;;  %v3384_v12 = vadd.f32 %v3352_v29, %v5523_v61 }
0x1a15   :  { %v3362_v21 = vsel %vm3360_vm11, %v4861_v2, 8 }
0x1a16   :  { %v3364_v40 = vsel %vm2389_vm10, %v3362_v21, 2147483647  ;;  %v3359_v19 = vmax.f32 %v3357_v43, %v3358_v32  ;;  %v3388_v44 = vrot.slane %v3384_v12, 4  ;;  %v5673_v21 = vpop.permute.xlu0 %3452 }
0x1a17   :  { %v3365_v63 = vrot.slane %v3364_v40, 4  ;;  %vm3454_vm11 = vcmp.eq.s32.totalorder %v5673_v21, 1 }
0x1a18   :  { %vm3361_vm12 = vcmp.eq.f32.partialorder %v3345_v30, %v3359_v19  ;;  %v3385_v18 = vadd.f32 %v3359_v19, %v5521_v17 }
0x1a19   :  { %vm3366_vm13 = vcmp.lt.s32.totalorder %v3364_v40, %v3365_v63  ;;  %v3363_v46 = vsel %vm3361_vm12, %v4861_v2, 8 }
0x1a1a   :  { %v3367_v47 = vsel %vm3366_vm13, %v3364_v40, %v3365_v63  ;;  %v3374_v37 = vsel %vm2389_vm10, %v3363_v46, 2147483647  ;;  %v3389_v39 = vrot.slane %v3385_v18, 3 }
0x1a1b   :  { %v3368_v52 = vrot.slane %v3367_v47, 2  ;;  %v3375_v33 = vrot.slane %v3374_v37, 4 }
0x1a1c   :  { %v3390_v6 = vsel %vm458_vm5, %v3389_v39, %v3388_v44 }
0x1a1d   :  { %vm3369_vm15 = vcmp.lt.s32.totalorder %v3367_v47, %v3368_v52  ;;  %vm3376_vm0 = vcmp.lt.s32.totalorder %v3374_v37, %v3375_v33  ;;  %v3392_v48 = vsel %vm3322_vm14, %v3390_v6, %v3260_v7  ;;  %v4759_v7 = vmov 6  }
0x1a1e   :  { %v3370_v56 = vsel %vm3369_vm15, %v3367_v47, %v3368_v52  ;;  %v3377_v49 = vsel %vm3376_vm0, %v3374_v37, %v3375_v33  ;;  %v3465_v0 = vrot.slane %v3392_v48, %v4865_v4  ;;  %v3472_v38 = vrot.slane %v3392_v48, %v4868_v5  ;;  %4303 = vset.pattern.permute.xlu0 %v4759_v7 }
0x1a1f   :  { %v3371_v16 = vrot.slane %v3370_v56, 1  ;;  %v3378_v25 = vrot.slane %v3377_v49, 2  ;;  %3584 = vperm.xlu0 %4303, %v5541_v42   ;;  %v4760_v7 = vmov 7  }
0x1a20   :  { %3467 = vbcast.lane.b32.xlu1 %v3465_v0, 256 }
0x1a21   :  { %vm3379_vm1 = vcmp.lt.s32.totalorder %v3377_v49, %v3378_v25  ;;  %vm3372_vm3 = vcmp.lt.s32.totalorder %v3370_v56, %v3371_v16 }
0x1a22   :  { %v3380_v24 = vsel %vm3379_vm1, %v3377_v49, %v3378_v25  ;;  %v3373_v62 = vsel %vm3372_vm3, %v3370_v56, %v3371_v16 }
0x1a23   :  { %v3381_v55 = vrot.slane %v3380_v24, 1  ;;  %4304 = vset.pattern.permute.xlu0 %v4760_v7 }
0x1a24   :  { %3474 = vbcast.lane.b32.xlu1 %v3472_v38, 256 }
0x1a25   :  { %vm3382_vm4 = vcmp.lt.s32.totalorder %v3380_v24, %v3381_v55 }
0x1a26   :  { %v3383_v50 = vsel %vm3382_vm4, %v3380_v24, %v3381_v55 }
0x1a27   :  { %v5663_v58 = vsel %vm458_vm5, %v3383_v50, %v3373_v62  ;;  %v3007_v50 = vrot.slane %v5597_v35, %v4868_v5 }
0x1a92   :  { %v3468_v59 = vpop.permute.xlu1 %3467 }
0x1a93   :  { %v3476_v8 = vadd.f32 %v3468_v59, %v5548_v51 }
0x1a95   :  { %v3478_v3 = vsel %vm2389_vm10, %v3476_v8, -inf }
0x1a96   :  { %v3479_v60 = vrot.slane %v3478_v3, 4  ;;  %v3475_v15 = vpop.permute.xlu1 %3474 }
0x1a97   :  { %v3477_v9 = vadd.f32 %v3475_v15, %v5548_v51 }
0x1a98   :  { %v3480_v26 = vmax.f32 %v3478_v3, %v3479_v60 }
0x1a99   :  { %v3485_v20 = vsel %vm2389_vm10, %v3477_v9, -inf }
0x1a9a   :  { %v3481_v31 = vrot.slane %v3480_v26, 2  ;;  %v3486_v30 = vrot.slane %v3485_v20, 4 }
0x1a9c   :  { %v3482_v22 = vmax.f32 %v3480_v26, %v3481_v31  ;;  %v3487_v28 = vmax.f32 %v3485_v20, %v3486_v30 }
0x1a9e   :  { %v3483_v57 = vrot.slane %v3482_v22, 1  ;;  %v3488_v27 = vrot.slane %v3487_v28, 2 }
0x1aa0   :  { %v3484_v36 = vmax.f32 %v3482_v22, %v3483_v57  ;;  %v3489_v11 = vmax.f32 %v3487_v28, %v3488_v27 }
0x1aa2   :  { %vm3492_vm6 = vcmp.eq.f32.partialorder %v3476_v8, %v3484_v36  ;;  %v3490_v14 = vrot.slane %v3489_v11, 1  ;;  %v3516_v43 = vadd.f32 %v3484_v36, %v5523_v61 }
0x1aa3   :  { %v3494_v41 = vsel %vm3492_vm6, %v4861_v2, 8 }
0x1aa4   :  { %v3496_v29 = vsel %vm2389_vm10, %v3494_v41, 2147483647  ;;  %v3491_v32 = vmax.f32 %v3489_v11, %v3490_v14  ;;  %v3520_v18 = vrot.slane %v3516_v43, 5 }
0x1aa5   :  { %v3497_v40 = vrot.slane %v3496_v29, 4 }
0x1aa6   :  { %vm3493_vm7 = vcmp.eq.f32.partialorder %v3477_v9, %v3491_v32  ;;  %v3517_v12 = vadd.f32 %v3491_v32, %v5521_v17 }
0x1aa7   :  { %vm3498_vm9 = vcmp.lt.s32.totalorder %v3496_v29, %v3497_v40  ;;  %v3495_v19 = vsel %vm3493_vm7, %v4861_v2, 8 }
0x1aa8   :  { %v3499_v63 = vsel %vm3498_vm9, %v3496_v29, %v3497_v40  ;;  %v3506_v46 = vsel %vm2389_vm10, %v3495_v19, 2147483647  ;;  %v3521_v47 = vrot.slane %v3517_v12, 4 }
0x1aa9   :  { %v3500_v44 = vrot.slane %v3499_v63, 2  ;;  %v3507_v37 = vrot.slane %v3506_v46, 4 }
0x1aaa   :  { %v3522_v39 = vsel %vm458_vm5, %v3521_v47, %v3520_v18 }
0x1aab   :  { %vm3501_vm12 = vcmp.lt.s32.totalorder %v3499_v63, %v3500_v44  ;;  %vm3508_vm13 = vcmp.lt.s32.totalorder %v3506_v46, %v3507_v37  ;;  %v5682_v52 = vsel %vm3454_vm11, %v3522_v39, %v3392_v48  ;;  %v3000_v48 = vrot.slane %v5597_v35, %v4865_v4 }
0x1aac   :  { %v3502_v33 = vsel %vm3501_vm12, %v3499_v63, %v3500_v44  ;;  %v3509_v6 = vsel %vm3508_vm13, %v3506_v46, %v3507_v37  ;;  %v3597_v56 = vrot.slane %v5682_v52, %v4865_v4  ;;  %v3604_v25 = vrot.slane %v5682_v52, %v4868_v5  ;;  %v5705_v37 = vpop.permute.xlu0 %3584 }
0x1aad   :  { %v3503_v49 = vrot.slane %v3502_v33, 1  ;;  %v3510_v0 = vrot.slane %v3509_v6, 2  ;;  %vm3586_vm6 = vcmp.eq.s32.totalorder %v5705_v37, 1 }
0x1aae   :  { %3599 = vbcast.lane.b32.xlu1 %v3597_v56, 256 }
0x1aaf   :  { %vm3511_vm15 = vcmp.lt.s32.totalorder %v3509_v6, %v3510_v0  ;;  %vm3504_vm0 = vcmp.lt.s32.totalorder %v3502_v33, %v3503_v49 }
0x1ab0   :  { %v3512_v16 = vsel %vm3511_vm15, %v3509_v6, %v3510_v0  ;;  %v3505_v38 = vsel %vm3504_vm0, %v3502_v33, %v3503_v49 }
0x1ab1   :  { %v3513_v24 = vrot.slane %v3512_v16, 1 }
0x1ab2   :  { %3606 = vbcast.lane.b32.xlu1 %v3604_v25, 256 }
0x1ab3   :  { %vm3514_vm1 = vcmp.lt.s32.totalorder %v3512_v16, %v3513_v24 }
0x1ab4   :  { %v3515_v55 = vsel %vm3514_vm1, %v3512_v16, %v3513_v24 }
0x1ab5   :  { %v5691_v62 = vsel %vm458_vm5, %v3515_v55, %v3505_v38 }
0x1ab6   :  { %3002 = vbcast.lane.b32.xlu1 %v3000_v48, 256 }
0x1aba   :  { %3009 = vbcast.lane.b32.xlu1 %v3007_v50, 256 }
0x1b20   :  { %v3600_v59 = vpop.permute.xlu1 %3599 }
0x1b21   :  { %v3608_v8 = vadd.f32 %v3600_v59, %v5548_v51 }
0x1b23   :  { %v3610_v3 = vsel %vm2389_vm10, %v3608_v8, -inf }
0x1b24   :  { %v3611_v60 = vrot.slane %v3610_v3, 4  ;;  %v3607_v15 = vpop.permute.xlu1 %3606 }
0x1b25   :  { %v3609_v9 = vadd.f32 %v3607_v15, %v5548_v51 }
0x1b26   :  { %v3612_v26 = vmax.f32 %v3610_v3, %v3611_v60 }
0x1b27   :  { %v3617_v20 = vsel %vm2389_vm10, %v3609_v9, -inf }
0x1b28   :  { %v3613_v31 = vrot.slane %v3612_v26, 2  ;;  %v3618_v30 = vrot.slane %v3617_v20, 4  ;;  %v3003_v22 = vpop.permute.xlu1 %3002 }
0x1b29   :  { %v3011_v28 = vadd.f32 %v3003_v22, %v5548_v51 }
0x1b2a   :  { %v3614_v57 = vmax.f32 %v3612_v26, %v3613_v31  ;;  %v3619_v27 = vmax.f32 %v3617_v20, %v3618_v30 }
0x1b2b   :  { %v3013_v36 = vsel %vm2389_vm10, %v3011_v28, -inf }
0x1b2c   :  { %v3615_v11 = vrot.slane %v3614_v57, 1  ;;  %v3620_v14 = vrot.slane %v3619_v27, 2  ;;  %v3014_v41 = vrot.slane %v3013_v36, 4  ;;  %v3010_v29 = vpop.permute.xlu1 %3009 }
0x1b2d   :  { %v3012_v43 = vadd.f32 %v3010_v29, %v5548_v51 }
0x1b2e   :  { %v3616_v32 = vmax.f32 %v3614_v57, %v3615_v11  ;;  %v3621_v40 = vmax.f32 %v3619_v27, %v3620_v14  ;;  %v3015_v12 = vmax.f32 %v3013_v36, %v3014_v41 }
0x1b2f   :  { %v3020_v19 = vsel %vm2389_vm10, %v3012_v43, -inf }
0x1b30   :  { %vm3624_vm3 = vcmp.eq.f32.partialorder %v3608_v8, %v3616_v32  ;;  %v3622_v63 = vrot.slane %v3621_v40, 1  ;;  %v3016_v18 = vrot.slane %v3015_v12, 2  ;;  %v3648_v47 = vadd.f32 %v3616_v32, %v5523_v61 }
0x1b31   :  { %v3626_v46 = vsel %vm3624_vm3, %v4861_v2, 8  ;;  %v3021_v44 = vrot.slane %v3020_v19, 4 }
0x1b32   :  { %v3628_v39 = vsel %vm2389_vm10, %v3626_v46, 2147483647  ;;  %v3623_v33 = vmax.f32 %v3621_v40, %v3622_v63  ;;  %v3017_v6 = vmax.f32 %v3015_v12, %v3016_v18  ;;  %v3652_v25 = vrot.slane %v3648_v47, 6 }
0x1b33   :  { %v3629_v56 = vrot.slane %v3628_v39, 4  ;;  %v3022_v49 = vmax.f32 %v3020_v19, %v3021_v44 }
0x1b34   :  { %vm3625_vm4 = vcmp.eq.f32.partialorder %v3609_v9, %v3623_v33  ;;  %v3649_v0 = vadd.f32 %v3623_v33, %v5521_v17  ;;  %v3018_v16 = vrot.slane %v3017_v6, 1 }
0x1b35   :  { %vm3630_vm7 = vcmp.lt.s32.totalorder %v3628_v39, %v3629_v56  ;;  %v3627_v24 = vsel %vm3625_vm4, %v4861_v2, 8  ;;  %v3023_v48 = vrot.slane %v3022_v49, 2 }
0x1b36   :  { %v3631_v38 = vsel %vm3630_vm7, %v3628_v39, %v3629_v56  ;;  %v3638_v55 = vsel %vm2389_vm10, %v3627_v24, 2147483647  ;;  %v3653_v50 = vrot.slane %v3649_v0, 5  ;;  %v3019_v7 = vmax.f32 %v3017_v6, %v3018_v16 }
0x1b37   :  { %v3632_v59 = vrot.slane %v3631_v38, 2  ;;  %v3639_v8 = vrot.slane %v3638_v55, 4  ;;  %v3024_v3 = vmax.f32 %v3022_v49, %v3023_v48 }
0x1b38   :  { %v3027_v60 = vsub.f32 %v3011_v28, %v3019_v7  ;;  %v3654_v15 = vsel %vm458_vm5, %v3653_v50, %v3652_v25 }
0x1b39   :  { %vm3633_vm9 = vcmp.lt.s32.totalorder %v3631_v38, %v3632_v59  ;;  %vm3640_vm12 = vcmp.lt.s32.totalorder %v3638_v55, %v3639_v8  ;;  %v3025_v9 = vrot.slane %v3024_v3, 1  ;;  %v5716_v26 = vsel %vm3586_vm6, %v3654_v15, %v5682_v52 }
0x1b3a   :  { %v3634_v20 = vsel %vm3633_vm9, %v3631_v38, %v3632_v59  ;;  %v3641_v31 = vsel %vm3640_vm12, %v3638_v55, %v3639_v8  ;;  %v3029_v30 = vmul.f32 1.442695, %v3027_v60  ;;  %v3736_v22 = vrot.slane %v5716_v26, %v4868_v5 }
0x1b3b   :  { %v3635_v57 = vrot.slane %v3634_v20, 1  ;;  %v3642_v27 = vrot.slane %v3641_v31, 2  ;;  %v3026_v36 = vmax.f32 %v3024_v3, %v3025_v9  ;;  %v3729_v28 = vrot.slane %v5716_v26, %v4865_v4 }
0x1b3c   :  { %4588 = vpow2.f32 %v3029_v30  ;;  %3738 = vbcast.lane.b32.xlu1 %v3736_v22, 256  ;;  %vm2318_vm9 = vcmask 58368  }
0x1b3d   :  { %vm3643_vm13 = vcmp.lt.s32.totalorder %v3641_v31, %v3642_v27  ;;  %v3028_v11 = vsub.f32 %v3012_v43, %v3026_v36  ;;  %3731 = vbcast.lane.b32.xlu0 %v3729_v28, 256  ;;  %vm3636_vm15 = vcmp.lt.s32.totalorder %v3634_v20, %v3635_v57 }
0x1b3e   :  { %v3644_v14 = vsel %vm3643_vm13, %v3641_v31, %v3642_v27  ;;  %v3637_v29 = vsel %vm3636_vm15, %v3634_v20, %v3635_v57 }
0x1b3f   :  { %v3645_v52 = vrot.slane %v3644_v14, 1  ;;  %v3031_v41 = vmul.f32 1.442695, %v3028_v11 }
0x1b41   :  { %vm3646_vm0 = vcmp.lt.s32.totalorder %v3644_v14, %v3645_v52  ;;  %4590 = vpow2.f32 %v3031_v41  ;;  %3716 = vperm.xlu0 %4304, %v5541_v42  }
0x1b42   :  { %v3647_v32 = vsel %vm3646_vm0, %v3644_v14, %v3645_v52 }
0x1b43   :  { %v5724_v40 = vsel %vm458_vm5, %v3647_v32, %v3637_v29 }
0x1b46   :  { %v4589_v12 = vpop.eup %4588 }
0x1b47   :  { %v3033_v19 = vsel %vm2389_vm10, %v4589_v12, 0.0 }
0x1b48   :  { %v3034_v63 = vrot.slane %v3033_v19, 4 }
0x1b4a   :  { %v3035_v18 = vadd.f32 %v3034_v63, %v3033_v19 }
0x1b4b   :  { %v4591_v43 = vpop.eup %4590 }
0x1b4c   :  { %v3036_v46 = vrot.slane %v3035_v18, 2  ;;  %v3040_v47 = vsel %vm2389_vm10, %v4591_v43, 0.0 }
0x1b4d   :  { %v3041_v44 = vrot.slane %v3040_v47, 4 }
0x1b4e   :  { %v3037_v39 = vadd.f32 %v3036_v46, %v3035_v18 }
0x1b4f   :  { %v3042_v33 = vadd.f32 %v3041_v44, %v3040_v47 }
0x1b50   :  { %v3038_v6 = vrot.slane %v3037_v39, 1 }
0x1b51   :  { %v3043_v56 = vrot.slane %v3042_v33, 2 }
0x1b52   :  { %v3039_v42 = vadd.f32 %v3038_v6, %v3037_v39 }
0x1b53   :  { %v3044_v49 = vadd.f32 %v3043_v56, %v3042_v33 }
0x1b54   :  { %4592 = vlog2.f32 %v3039_v42 }
0x1b55   :  { %v3045_v0 = vrot.slane %v3044_v49, 1 }
0x1b57   :  { %v3046_v16 = vadd.f32 %v3045_v0, %v3044_v49  ;;  %v5756_v0 = vld [vmem:[%s6209_s11] ss:$0 sm:$0xff] }
0x1b59   :  { %4594 = vlog2.f32 %v3046_v16 }
0x1b5e   :  { %v4593_v25 = vpop.eup %4592 }
0x1b5f   :  { %v3048_v24 = vmul.f32 0.6931472, %v4593_v25 }
0x1b61   :  { %v3051_v48 = vadd.f32 %v3048_v24, %v3019_v7 }
0x1b63   :  { %v4595_v38 = vpop.eup %4594  ;;  %v3053_v50 = vadd.f32 %v3051_v48, %v5523_v61 }
0x1b64   :  { %v3050_v55 = vmul.f32 0.6931472, %v4595_v38 }
0x1b65   :  { %v3061_v3 = vrot.slane %v3053_v50, 2 }
0x1b66   :  { %v3052_v59 = vadd.f32 %v3050_v55, %v3026_v36 }
0x1b68   :  { %v3054_v8 = vadd.f32 %v3052_v59, %v5521_v17 }
0x1b6a   :  { %v3062_v60 = vrot.slane %v3054_v8, 1 }
0x1b6c   :  { %v3063_v15 = vsel %vm458_vm5, %v3062_v60, %v3061_v3 }
0x1b6d   :  { %v5734_v9 = vsel %vm3058_vm8, %v3063_v15, %v5597_v35 }
0x1b6e   :  { %v3132_v20 = vrot.slane %v5734_v9, %v4865_v4  ;;  %v3139_v7 = vrot.slane %v5734_v9, %v4868_v5 }
0x1b70   :  { %3134 = vbcast.lane.b32.xlu0 %v3132_v20, 256 }
0x1b74   :  { %3141 = vbcast.lane.b32.xlu0 %v3139_v7, 256 }
0x1bae   :  { %v3739_v31 = vpop.permute.xlu1 %3738 }
0x1baf   :  { %v3741_v30 = vadd.f32 %v3739_v31, %v5548_v51  ;;  %v3732_v22 = vpop.permute.xlu0 %3731 }
0x1bb0   :  { %v3740_v57 = vadd.f32 %v3732_v22, %v5548_v51 }
0x1bb1   :  { %v3749_v27 = vsel %vm2389_vm10, %v3741_v30, -inf }
0x1bb2   :  { %v3750_v36 = vrot.slane %v3749_v27, 4  ;;  %v3742_v35 = vsel %vm2389_vm10, %v3740_v57, -inf }
0x1bb3   :  { %v3743_v34 = vrot.slane %v3742_v35, 4 }
0x1bb4   :  { %v3751_v28 = vmax.f32 %v3749_v27, %v3750_v36 }
0x1bb5   :  { %v3744_v11 = vmax.f32 %v3742_v35, %v3743_v34 }
0x1bb6   :  { %v3752_v14 = vrot.slane %v3751_v28, 2 }
0x1bb7   :  { %v3745_v52 = vrot.slane %v3744_v11, 2 }
0x1bb8   :  { %v3753_v41 = vmax.f32 %v3751_v28, %v3752_v14 }
0x1bb9   :  { %v3746_v29 = vmax.f32 %v3744_v11, %v3745_v52 }
0x1bba   :  { %v3754_v32 = vrot.slane %v3753_v41, 1 }
0x1bbb   :  { %v3747_v12 = vrot.slane %v3746_v29, 1 }
0x1bbc   :  { %v3755_v19 = vmax.f32 %v3753_v41, %v3754_v32 }
0x1bbd   :  { %v3748_v63 = vmax.f32 %v3746_v29, %v3747_v12 }
0x1bbe   :  { %vm3757_vm8 = vcmp.eq.f32.partialorder %v3741_v30, %v3755_v19  ;;  %v3781_v18 = vadd.f32 %v3755_v19, %v5521_v17 }
0x1bbf   :  { %v3759_v43 = vsel %vm3757_vm8, %v4861_v2, 8  ;;  %vm3756_vm1 = vcmp.eq.f32.partialorder %v3740_v57, %v3748_v63  ;;  %v3780_v46 = vadd.f32 %v3748_v63, %v5523_v61 }
0x1bc0   :  { %v3770_v47 = vsel %vm2389_vm10, %v3759_v43, 2147483647  ;;  %v3785_v44 = vrot.slane %v3781_v18, 6  ;;  %v3758_v39 = vsel %vm3756_vm1, %v4861_v2, 8  ;;  %v5749_v33 = vpop.permute.xlu0 %3716 }
0x1bc1   :  { %v3771_v6 = vrot.slane %v3770_v47, 4  ;;  %v3760_v56 = vsel %vm2389_vm10, %v3758_v39, 2147483647  ;;  %v3784_v42 = vrot.slane %v3780_v46, 7  ;;  %vm3718_vm3 = vcmp.eq.s32.totalorder %v5749_v33, 1 }
0x1bc2   :  { %v3761_v49 = vrot.slane %v3760_v56, 4 }
0x1bc3   :  { %vm3772_vm4 = vcmp.lt.s32.totalorder %v3770_v47, %v3771_v6  ;;  %v3786_v16 = vsel %vm458_vm5, %v3785_v44, %v3784_v42 }
0x1bc4   :  { %v3773_v25 = vsel %vm3772_vm4, %v3770_v47, %v3771_v6  ;;  %vm3762_vm7 = vcmp.lt.s32.totalorder %v3760_v56, %v3761_v49  ;;  %v3788_v24 = vsel %vm3718_vm3, %v3786_v16, %v5716_v26 }
0x1bc5   :  { %v3774_v48 = vrot.slane %v3773_v25, 2  ;;  %v3763_v38 = vsel %vm3762_vm7, %v3760_v56, %v3761_v49  ;;  %v5763_v55 = vadd.f32 %v5756_v0, %v3788_v24 }
0x1bc6   :  { %v3764_v50 = vrot.slane %v3763_v38, 2 }
0x1bc7   :  { %vm3775_vm12 = vcmp.lt.s32.totalorder %v3773_v25, %v3774_v48  ;;  %v3815_v59 = vsel %vm2318_vm9, %v5763_v55, -inf }
0x1bc8   :  { %v3776_v8 = vsel %vm3775_vm12, %v3773_v25, %v3774_v48  ;;  %vm3765_vm13 = vcmp.lt.s32.totalorder %v3763_v38, %v3764_v50  ;;  %3816 = vmax.xlane.f32.xlu1 %v3815_v59 }
0x1bc9   :  { %v3777_v3 = vrot.slane %v3776_v8, 1  ;;  %v3766_v60 = vsel %vm3765_vm13, %v3763_v38, %v3764_v50 }
0x1bca   :  { %v3767_v15 = vrot.slane %v3766_v60, 1 }
0x1bcb   :  { %vm3778_vm15 = vcmp.lt.s32.totalorder %v3776_v8, %v3777_v3 }
0x1bcc   :  { %vm3768_vm0 = vcmp.lt.s32.totalorder %v3766_v60, %v3767_v15  ;;  %v3779_v26 = vsel %vm3778_vm15, %v3776_v8, %v3777_v3  ;;  %vm2364_vm15 = vcmp.gt.s32.totalorder %v4861_v2, 0 }
0x1bcd   :  { %v3769_v20 = vsel %vm3768_vm0, %v3766_v60, %v3767_v15 }
0x1bce   :  { %v5768_v7 = vsel %vm458_vm5, %v3779_v26, %v3769_v20 }
0x1be2   :  { %v3135_v31 = vpop.permute.xlu0 %3134 }
0x1be3   :  { %v3143_v30 = vadd.f32 %v3135_v31, %v5548_v51 }
0x1be5   :  { %v3145_v22 = vsel %vm2389_vm10, %v3143_v30, -inf }
0x1be6   :  { %v3146_v57 = vrot.slane %v3145_v22, 4  ;;  %v3142_v27 = vpop.permute.xlu0 %3141 }
0x1be7   :  { %v3144_v36 = vadd.f32 %v3142_v27, %v5548_v51 }
0x1be8   :  { %v3147_v35 = vmax.f32 %v3145_v22, %v3146_v57 }
0x1be9   :  { %v3152_v34 = vsel %vm2389_vm10, %v3144_v36, -inf }
0x1bea   :  { %v3148_v28 = vrot.slane %v3147_v35, 2  ;;  %v3153_v11 = vrot.slane %v3152_v34, 4 }
0x1bec   :  { %v3149_v14 = vmax.f32 %v3147_v35, %v3148_v28  ;;  %v3154_v52 = vmax.f32 %v3152_v34, %v3153_v11 }
0x1bee   :  { %v3150_v41 = vrot.slane %v3149_v14, 1  ;;  %v3155_v29 = vrot.slane %v3154_v52, 2 }
0x1bf0   :  { %v3151_v32 = vmax.f32 %v3149_v14, %v3150_v41  ;;  %v3156_v12 = vmax.f32 %v3154_v52, %v3155_v29 }
0x1bf2   :  { %v3159_v19 = vsub.f32 %v3143_v30, %v3151_v32  ;;  %v3157_v63 = vrot.slane %v3156_v12, 1 }
0x1bf4   :  { %v3161_v18 = vmul.f32 1.442695, %v3159_v19  ;;  %v3158_v43 = vmax.f32 %v3156_v12, %v3157_v63  ;;  %v5801_v12 = vld [vmem:[%s6207_s9] sm:$0xff] }
0x1bf6   :  { %4596 = vpow2.f32 %v3161_v18  ;;  %v3160_v46 = vsub.f32 %v3144_v36, %v3158_v43 }
0x1bf8   :  { %v3163_v47 = vmul.f32 1.442695, %v3160_v46 }
0x1bfa   :  { %4598 = vpow2.f32 %v3163_v47 }
0x1c00   :  { %v4597_v51 = vpop.eup %4596 }
0x1c01   :  { %v3165_v44 = vsel %vm2389_vm10, %v4597_v51, 0.0 }
0x1c02   :  { %v3166_v39 = vrot.slane %v3165_v44, 4 }
0x1c04   :  { %v4599_v6 = vpop.eup %4598  ;;  %v3167_v56 = vadd.f32 %v3166_v39, %v3165_v44 }
0x1c05   :  { %v3172_v42 = vsel %vm2389_vm10, %v4599_v6, 0.0 }
0x1c06   :  { %v3168_v49 = vrot.slane %v3167_v56, 2  ;;  %v3173_v16 = vrot.slane %v3172_v42, 4 }
0x1c08   :  { %v3169_v25 = vadd.f32 %v3168_v49, %v3167_v56  ;;  %v3174_v24 = vadd.f32 %v3173_v16, %v3172_v42 }
0x1c0a   :  { %v3170_v48 = vrot.slane %v3169_v25, 1  ;;  %v3175_v38 = vrot.slane %v3174_v24, 2 }
0x1c0c   :  { %v3171_v50 = vadd.f32 %v3170_v48, %v3169_v25  ;;  %v3176_v59 = vadd.f32 %v3175_v38, %v3174_v24 }
0x1c0e   :  { %4600 = vlog2.f32 %v3171_v50  ;;  %v3177_v8 = vrot.slane %v3176_v59, 1 }
0x1c10   :  { %v3178_v3 = vadd.f32 %v3177_v8, %v3176_v59 }
0x1c12   :  { %4602 = vlog2.f32 %v3178_v3 }
0x1c18   :  { %v4601_v60 = vpop.eup %4600 }
0x1c19   :  { %v3180_v15 = vmul.f32 0.6931472, %v4601_v60 }
0x1c1b   :  { %v3183_v26 = vadd.f32 %v3180_v15, %v3151_v32 }
0x1c1c   :  { %v4603_v20 = vpop.eup %4602 }
0x1c1d   :  { %v3182_v31 = vmul.f32 0.6931472, %v4603_v20  ;;  %v3185_v30 = vadd.f32 %v3183_v26, %v5523_v61 }
0x1c1f   :  { %v3184_v22 = vadd.f32 %v3182_v31, %v3158_v43  ;;  %v3193_v27 = vrot.slane %v3185_v30, 3 }
0x1c21   :  { %v3186_v57 = vadd.f32 %v3184_v22, %v5521_v17 }
0x1c23   :  { %v3194_v36 = vrot.slane %v3186_v57, 2 }
0x1c25   :  { %v3195_v35 = vsel %vm458_vm5, %v3194_v36, %v3193_v27 }
0x1c26   :  { %v5782_v34 = vsel %vm3190_vm2, %v3195_v35, %v5734_v9  ;;  %v2319_v9 = vsel %vm2318_vm9, %v5794_v10, 0.0 }
0x1c27   :  { %v3264_v28 = vrot.slane %v5782_v34, %v4865_v4  ;;  %v3271_v32 = vrot.slane %v5782_v34, %v4868_v5 }
0x1c29   :  { %3266 = vbcast.lane.b32.xlu1 %v3264_v28, 256 }
0x1c55   :  { %v3817_v11 = vpop.xlane.xlu1 %3816 }
0x1c56   :  { %vm3818_vm8 = vcmp.eq.f32.partialorder %v5763_v55, %v3817_v11 }
0x1c57   :  { %v3819_v14 = vsel %vm3818_vm8, %v4914_v23, 8 }
0x1c58   :  { %v3820_v52 = vsel %vm2318_vm9, %v3819_v14, 2147483647 }
0x1c59   :  { %v3822_v41 = vshra.s32 %v3820_v52, 16  ;;  %v3821_v6 = vand.u32 65535, %v3820_v52 }
0x1c5b   :  { %v3824_v29 = vcvt.s32.f32 %v3822_v41  ;;  %v3823_v49 = vcvt.s32.f32 %v3821_v6 }
0x1c5d   :  { %3825 = vmin.xlane.f32.xlu0 %v3824_v29 }
0x1c73   :  { %3273 = vbcast.lane.b32.xlu0 %v3271_v32, 256 }
0x1c92   :  { %2320 = vadd.xlane.f32.xlu0 %v2319_v9 }
0x1c9b   :  { %v3267_v55 = vpop.permute.xlu1 %3266 }
0x1c9c   :  { %v3275_v19 = vadd.f32 %v5801_v12, %v3267_v55 }
0x1c9e   :  { %v3277_v63 = vsel %vm2389_vm10, %v3275_v19, -inf }
0x1c9f   :  { %v3278_v18 = vrot.slane %v3277_v63, 4 }
0x1ca1   :  { %v3279_v43 = vmax.f32 %v3277_v63, %v3278_v18 }
0x1ca3   :  { %v3280_v46 = vrot.slane %v3279_v43, 2 }
0x1ca5   :  { %v3281_v47 = vmax.f32 %v3279_v43, %v3280_v46 }
0x1ca7   :  { %v3282_v51 = vrot.slane %v3281_v47, 1 }
0x1ca9   :  { %v3283_v44 = vmax.f32 %v3281_v47, %v3282_v51 }
0x1cab   :  { %v3291_v39 = vsub.f32 %v3275_v19, %v3283_v44 }
0x1cad   :  { %v3293_v56 = vmul.f32 1.442695, %v3291_v39 }
0x1caf   :  { %4604 = vpow2.f32 %v3293_v56 }
0x1cb9   :  { %v4605_v50 = vpop.eup %4604 }
0x1cba   :  { %v3297_v3 = vsel %vm2389_vm10, %v4605_v50, 0.0 }
0x1cbb   :  { %v3298_v15 = vrot.slane %v3297_v3, 4 }
0x1cbd   :  { %v3299_v31 = vadd.f32 %v3298_v15, %v3297_v3 }
0x1cbf   :  { %v3300_v57 = vrot.slane %v3299_v31, 2 }
0x1cc1   :  { %v3301_v27 = vadd.f32 %v3300_v57, %v3299_v31 }
0x1cc3   :  { %v3302_v36 = vrot.slane %v3301_v27, 1 }
0x1cc5   :  { %v3303_v11 = vadd.f32 %v3302_v36, %v3301_v27 }
0x1cea   :  { %v3826_v42 = vpop.xlane.xlu0 %3825 }
0x1ceb   :  { %vm3827_vm2 = vcmp.eq.f32.partialorder %v3824_v29, %v3826_v42 }
0x1cec   :  { %v3828_v16 = vsel %vm3827_vm2, %v3823_v49, inf }
0x1ced   :  { %3829 = vmin.xlane.f32.xlu1 %v3828_v16 }
0x1cee   :  { %v3274_v25 = vpop.permute.xlu0 %3273 }
0x1cef   :  { %v3276_v24 = vadd.f32 %v5801_v12, %v3274_v25 }
0x1cf1   :  { %v3284_v48 = vsel %vm2389_vm10, %v3276_v24, -inf }
0x1cf2   :  { %v3285_v38 = vrot.slane %v3284_v48, 4 }
0x1cf4   :  { %v3286_v59 = vmax.f32 %v3284_v48, %v3285_v38 }
0x1cf6   :  { %v3287_v8 = vrot.slane %v3286_v59, 2 }
0x1cf8   :  { %v3288_v60 = vmax.f32 %v3286_v59, %v3287_v8 }
0x1cfa   :  { %v3289_v26 = vrot.slane %v3288_v60, 1 }
0x1cfc   :  { %v3290_v20 = vmax.f32 %v3288_v60, %v3289_v26 }
0x1cfe   :  { %v3292_v30 = vsub.f32 %v3276_v24, %v3290_v20 }
0x1d00   :  { %v3295_v22 = vmul.f32 1.442695, %v3292_v30 }
0x1d02   :  { %4606 = vpow2.f32 %v3295_v22 }
0x1d03   :  { %4608 = vlog2.f32 %v3303_v11 }
0x1d0c   :  { %v4607_v35 = vpop.eup %4606 }
0x1d0d   :  { %v3304_v28 = vsel %vm2389_vm10, %v4607_v35, 0.0  ;;  %v4609_v55 = vpop.eup %4608 }
0x1d0e   :  { %v3305_v14 = vrot.slane %v3304_v28, 4  ;;  %v3312_v19 = vmul.f32 0.6931472, %v4609_v55 }
0x1d10   :  { %v3306_v52 = vadd.f32 %v3305_v14, %v3304_v28  ;;  %v3315_v63 = vadd.f32 %v3312_v19, %v3283_v44  ;;  %v3832_v44 = vcvt.f32.s32 %v3826_v42 }
0x1d12   :  { %v3307_v41 = vrot.slane %v3306_v52, 2  ;;  %v3317_v46 = vadd.f32 %v3315_v63, %v5523_v61  ;;  %v3833_v24 = vshll.u32 %v3832_v44, 16 }
0x1d14   :  { %v3308_v29 = vadd.f32 %v3307_v41, %v3306_v52  ;;  %v3325_v39 = vrot.slane %v3317_v46, 4 }
0x1d16   :  { %v3309_v32 = vrot.slane %v3308_v29, 1 }
0x1d18   :  { %v3310_v9 = vadd.f32 %v3309_v32, %v3308_v29 }
0x1d1a   :  { %4610 = vlog2.f32 %v3310_v9 }
0x1d1f   :  { %v2321_v60 = vpop.xlane.xlu0 %2320 }
0x1d20   :  { %v4276_v36 = vtrunc.f32 %v2321_v60 }
0x1d22   :  { %v4277_v28 = vcvt.f32.s32 %v4276_v36 }
0x1d24   :  { %v4611_v18 = vpop.eup %4610  ;;  %v5829_v41 = vadd.s32 4294967295, %v4277_v28 }
0x1d25   :  { %v3314_v43 = vmul.f32 0.6931472, %v4611_v18 }
0x1d26   :  { %vm3869_vm7 = vcmp.ge.s32.totalorder %v5829_v41, 6  ;;  %vm3887_vm12 = vcmp.ge.s32.totalorder %v5829_v41, 5 }
0x1d27   :  { %v3316_v47 = vadd.f32 %v3314_v43, %v3290_v20 }
0x1d29   :  { %v3318_v51 = vadd.f32 %v3316_v47, %v5521_v17 }
0x1d2b   :  { %v3326_v6 = vrot.slane %v3318_v51, 3 }
0x1d2d   :  { %v3327_v56 = vsel %vm458_vm5, %v3326_v6, %v3325_v39 }
0x1d2e   :  { %v5815_v49 = vsel %vm3322_vm14, %v3327_v56, %v5782_v34  ;;  %vm3851_vm14 = vcmp.ge.s32.totalorder %v5829_v41, 7 }
0x1d2f   :  { %v3403_v16 = vrot.slane %v5815_v49, %v4868_v5  ;;  %v3396_v42 = vrot.slane %v5815_v49, %v4865_v4 }
0x1d31   :  { %3405 = vbcast.lane.b32.xlu0 %v3403_v16, 256 }
0x1d7a   :  { %v3830_v25 = vpop.xlane.xlu1 %3829 }
0x1d7b   :  { %v3831_v48 = vcvt.f32.s32 %v3830_v25 }
0x1d7d   :  { %v5819_v38 = vadd.s32 %v3833_v24, %v3831_v48 }
0x1d7f   :  { %6215 = vst [vmem:[#allocation15_spill] sm:$0xff] %v5819_v38  ;;  %vm3835_vm1 = vcmp.eq.s32.totalorder %v4914_v23, %v5819_v38 }
0x1d80   :  { %v3837_v50 = vsel %vm3835_vm1, %v5768_v7, 0 }
0x1d81   :  { %v3838_v59 = vsel %vm2318_vm9, %v3837_v50, 0 }
0x1d82   :  { %v3840_v54 = vshrl.u32 %v3838_v59, 16  ;;  %v3839_v8 = vand.u32 65535, %v3838_v59 }
0x1d84   :  { %v3842_v34 = vcvt.s32.f32 %v3840_v54  ;;  %v3841_v3 = vcvt.s32.f32 %v3839_v8 }
0x1d86   :  { %3845 = vadd.xlane.f32.xlu1 %v3842_v34 }
0x1d8a   :  { %3843 = vadd.xlane.f32.xlu1 %v3841_v3 }
0x1d9b   :  { %3398 = vbcast.lane.b32.xlu1 %v3396_v42, 256 }
0x1da3   :  { %v3406_v15 = vpop.permute.xlu0 %3405 }
0x1da4   :  { %v3408_v26 = vadd.f32 %v5801_v12, %v3406_v15 }
0x1da6   :  { %v3416_v20 = vsel %vm2389_vm10, %v3408_v26, -inf }
0x1da7   :  { %v3417_v31 = vrot.slane %v3416_v20, 4 }
0x1da9   :  { %v3418_v7 = vmax.f32 %v3416_v20, %v3417_v31 }
0x1dab   :  { %v3419_v30 = vrot.slane %v3418_v7, 2 }
0x1dad   :  { %v3420_v22 = vmax.f32 %v3418_v7, %v3419_v30 }
0x1daf   :  { %v3421_v57 = vrot.slane %v3420_v22, 1 }
0x1db1   :  { %v3422_v27 = vmax.f32 %v3420_v22, %v3421_v57 }
0x1db3   :  { %v3424_v35 = vsub.f32 %v3408_v26, %v3422_v27 }
0x1db5   :  { %v3427_v11 = vmul.f32 1.442695, %v3424_v35 }
0x1db7   :  { %4612 = vpow2.f32 %v3427_v11 }
0x1dc1   :  { %v4613_v56 = vpop.eup %4612 }
0x1dc2   :  { %v3436_v48 = vsel %vm2389_vm10, %v4613_v56, 0.0 }
0x1dc3   :  { %v3437_v59 = vrot.slane %v3436_v48, 4 }
0x1dc5   :  { %v3438_v8 = vadd.f32 %v3437_v59, %v3436_v48 }
0x1dc7   :  { %v3439_v42 = vrot.slane %v3438_v8, 2 }
0x1dc9   :  { %v3440_v60 = vadd.f32 %v3439_v42, %v3438_v8 }
0x1dcb   :  { %v3441_v15 = vrot.slane %v3440_v60, 1 }
0x1dcd   :  { %v3442_v31 = vadd.f32 %v3441_v15, %v3440_v60 }
0x1e13   :  { %v3846_v14 = vpop.xlane.xlu1 %3845 }
0x1e14   :  { %v3848_v52 = vcvt.f32.s32 %v3846_v14 }
0x1e16   :  { %v3849_v32 = vshll.u32 %v3848_v52, 16 }
0x1e17   :  { %v3844_v29 = vpop.xlane.xlu1 %3843 }
0x1e18   :  { %v3847_v9 = vcvt.f32.s32 %v3844_v29 }
0x1e1a   :  { %v3850_v55 = vadd.s32 %v3849_v32, %v3847_v9 }
0x1e1b   :  { %v3399_v19 = vpop.permute.xlu1 %3398 }
0x1e1c   :  { %v5833_v63 = vsel %vm3851_vm14, %v3850_v55, %v5819_v38  ;;  %v3407_v18 = vadd.f32 %v5801_v12, %v3399_v19 }
0x1e1d   :  { %vm3853_vm4 = vcmp.eq.s32.totalorder %v4914_v23, %v5833_v63 }
0x1e1e   :  { %v3409_v43 = vsel %vm2389_vm10, %v3407_v18, -inf  ;;  %v3855_v46 = vsel %vm3853_vm4, %v5724_v40, 0  ;;  %vm2837_vm4 = vcmp.eq.s32.totalorder %v4914_v23, %v5829_v41 }
0x1e1f   :  { %v3410_v47 = vrot.slane %v3409_v43, 4  ;;  %v3856_v51 = vsel %vm2318_vm9, %v3855_v46, 0 }
0x1e20   :  { %v3858_v39 = vshrl.u32 %v3856_v51, 16  ;;  %v3857_v6 = vand.u32 65535, %v3856_v51 }
0x1e21   :  { %v3411_v16 = vmax.f32 %v3409_v43, %v3410_v47 }
0x1e22   :  { %v3860_v44 = vcvt.s32.f32 %v3858_v39  ;;  %v3859_v25 = vcvt.s32.f32 %v3857_v6 }
0x1e23   :  { %v3412_v24 = vrot.slane %v3411_v16, 2 }
0x1e24   :  { %3863 = vadd.xlane.f32.xlu1 %v3860_v44  ;;  %3861 = vadd.xlane.f32.xlu0 %v3859_v25 }
0x1e25   :  { %v3413_v50 = vmax.f32 %v3411_v16, %v3412_v24 }
0x1e27   :  { %v3414_v54 = vrot.slane %v3413_v50, 1 }
0x1e29   :  { %v3415_v34 = vmax.f32 %v3413_v50, %v3414_v54  ;;  %v5866_v54 = vld [vmem:[%s6199_s1] sm:$0x3] }
0x1e2b   :  { %v3423_v40 = vsub.f32 %v3407_v18, %v3415_v34 }
0x1e2d   :  { %v3425_v3 = vmul.f32 1.442695, %v3423_v40 }
0x1e2f   :  { %4614 = vpow2.f32 %v3425_v3 }
0x1e30   :  { %4616 = vlog2.f32 %v3442_v31 }
0x1e39   :  { %v4615_v26 = vpop.eup %4614 }
0x1e3a   :  { %v3429_v20 = vsel %vm2389_vm10, %v4615_v26, 0.0  ;;  %v4617_v28 = vpop.eup %4616 }
0x1e3b   :  { %v3430_v7 = vrot.slane %v3429_v20, 4  ;;  %v3446_v11 = vmul.f32 0.6931472, %v4617_v28 }
0x1e3d   :  { %v3431_v30 = vadd.f32 %v3430_v7, %v3429_v20  ;;  %v3448_v14 = vadd.f32 %v3446_v11, %v3422_v27 }
0x1e3f   :  { %v3432_v22 = vrot.slane %v3431_v30, 2  ;;  %v3450_v32 = vadd.f32 %v3448_v14, %v5521_v17 }
0x1e41   :  { %v3433_v57 = vadd.f32 %v3432_v22, %v3431_v30  ;;  %v3458_v19 = vrot.slane %v3450_v32, 4 }
0x1e43   :  { %v3434_v36 = vrot.slane %v3433_v57, 1 }
0x1e45   :  { %v3435_v35 = vadd.f32 %v3434_v36, %v3433_v57 }
0x1e47   :  { %4618 = vlog2.f32 %v3435_v35 }
0x1e51   :  { %v4619_v52 = vpop.eup %4618 }
0x1e52   :  { %v3444_v29 = vmul.f32 0.6931472, %v4619_v52 }
0x1e54   :  { %v3447_v9 = vadd.f32 %v3444_v29, %v3415_v34 }
0x1e56   :  { %v3449_v55 = vadd.f32 %v3447_v9, %v5523_v61 }
0x1e58   :  { %v3457_v18 = vrot.slane %v3449_v55, 5 }
0x1e5a   :  { %v3459_v43 = vsel %vm458_vm5, %v3458_v19, %v3457_v18 }
0x1e5b   :  { %v5849_v46 = vsel %vm3454_vm11, %v3459_v43, %v5815_v49 }
0x1e5c   :  { %v3535_v47 = vrot.slane %v5849_v46, %v4868_v5  ;;  %v3528_v27 = vrot.slane %v5849_v46, %v4865_v4 }
0x1e5e   :  { %3537 = vbcast.lane.b32.xlu0 %v3535_v47, 256  ;;  %3530 = vbcast.lane.b32.xlu1 %v3528_v27, 256 }
0x1eb1   :  { %v3864_v51 = vpop.xlane.xlu1 %3863  ;;  %v3862_v39 = vpop.xlane.xlu0 %3861 }
0x1eb2   :  { %v3866_v6 = vcvt.f32.s32 %v3864_v51  ;;  %v3865_v16 = vcvt.f32.s32 %v3862_v39 }
0x1eb4   :  { %v3867_v56 = vshll.u32 %v3866_v6, 16 }
0x1eb6   :  { %v3868_v44 = vadd.s32 %v3867_v56, %v3865_v16 }
0x1eb8   :  { %v5857_v21 = vsel %vm3869_vm7, %v3868_v44, %v5833_v63  ;;  %vm3923_vm7 = vcmp.ge.s32.totalorder %v5829_v41, 3 }
0x1eb9   :  { %vm3871_vm11 = vcmp.eq.s32.totalorder %v4914_v23, %v5857_v21 }
0x1eba   :  { %v3873_v49 = vsel %vm3871_vm11, %v5691_v62, 0 }
0x1ebb   :  { %v3874_v25 = vsel %vm2318_vm9, %v3873_v49, 0 }
0x1ebc   :  { %v3876_v24 = vshrl.u32 %v3874_v25, 16  ;;  %v3875_v48 = vand.u32 65535, %v3874_v25 }
0x1ebe   :  { %v3878_v50 = vcvt.s32.f32 %v3876_v24  ;;  %v3877_v59 = vcvt.s32.f32 %v3875_v48 }
0x1ec0   :  { %3881 = vadd.xlane.f32.xlu1 %v3878_v50  ;;  %3879 = vadd.xlane.f32.xlu0 %v3877_v59 }
0x1ed0   :  { %v3531_v34 = vpop.permute.xlu1 %3530  ;;  %v3538_v8 = vpop.permute.xlu0 %3537 }
0x1ed1   :  { %v3539_v40 = vadd.f32 %v5801_v12, %v3531_v34  ;;  %v3540_v3 = vadd.f32 %v5801_v12, %v3538_v8  ;;  %2344 = vrot.lane.b32.xlu1 %v5866_v54, %s4761_s26 }
0x1ed3   :  { %v3541_v62 = vsel %vm2389_vm10, %v3539_v40, -inf  ;;  %v3548_v42 = vsel %vm2389_vm10, %v3540_v3, -inf }
0x1ed4   :  { %v3542_v60 = vrot.slane %v3541_v62, 4  ;;  %v3549_v15 = vrot.slane %v3548_v42, 4 }
0x1ed6   :  { %v3543_v26 = vmax.f32 %v3541_v62, %v3542_v60  ;;  %v3550_v20 = vmax.f32 %v3548_v42, %v3549_v15 }
0x1ed8   :  { %v3544_v31 = vrot.slane %v3543_v26, 2  ;;  %v3551_v7 = vrot.slane %v3550_v20, 2 }
0x1eda   :  { %v3545_v30 = vmax.f32 %v3543_v26, %v3544_v31  ;;  %v3552_v22 = vmax.f32 %v3550_v20, %v3551_v7 }
0x1edc   :  { %v3546_v57 = vrot.slane %v3545_v30, 1  ;;  %v3553_v36 = vrot.slane %v3552_v22, 1 }
0x1ede   :  { %v3547_v35 = vmax.f32 %v3545_v30, %v3546_v57  ;;  %v3554_v28 = vmax.f32 %v3552_v22, %v3553_v36 }
0x1ee0   :  { %v3555_v11 = vsub.f32 %v3539_v40, %v3547_v35  ;;  %v3556_v14 = vsub.f32 %v3540_v3, %v3554_v28 }
0x1ee2   :  { %v3557_v52 = vmul.f32 1.442695, %v3555_v11  ;;  %v3559_v29 = vmul.f32 1.442695, %v3556_v14 }
0x1ee4   :  { %4620 = vpow2.f32 %v3557_v52 }
0x1ee5   :  { %4622 = vpow2.f32 %v3559_v29 }
0x1eee   :  { %v4621_v32 = vpop.eup %4620 }
0x1eef   :  { %v4623_v9 = vpop.eup %4622  ;;  %v3561_v55 = vsel %vm2389_vm10, %v4621_v32, 0.0 }
0x1ef0   :  { %v3562_v19 = vrot.slane %v3561_v55, 4  ;;  %v3568_v18 = vsel %vm2389_vm10, %v4623_v9, 0.0 }
0x1ef1   :  { %v3569_v43 = vrot.slane %v3568_v18, 4 }
0x1ef2   :  { %v3563_v47 = vadd.f32 %v3562_v19, %v3561_v55 }
0x1ef3   :  { %v3570_v27 = vadd.f32 %v3569_v43, %v3568_v18 }
0x1ef4   :  { %v3564_v51 = vrot.slane %v3563_v47, 2 }
0x1ef5   :  { %v3571_v39 = vrot.slane %v3570_v27, 2 }
0x1ef6   :  { %v3565_v6 = vadd.f32 %v3564_v51, %v3563_v47 }
0x1ef7   :  { %v3572_v56 = vadd.f32 %v3571_v39, %v3570_v27 }
0x1ef8   :  { %v3566_v16 = vrot.slane %v3565_v6, 1 }
0x1ef9   :  { %v3573_v44 = vrot.slane %v3572_v56, 1 }
0x1efa   :  { %v3567_v49 = vadd.f32 %v3566_v16, %v3565_v6 }
0x1efb   :  { %v3574_v25 = vadd.f32 %v3573_v44, %v3572_v56 }
0x1efc   :  { %4624 = vlog2.f32 %v3567_v49 }
0x1efd   :  { %4626 = vlog2.f32 %v3574_v25 }
0x1f06   :  { %v4625_v24 = vpop.eup %4624 }
0x1f07   :  { %v4627_v48 = vpop.eup %4626  ;;  %v3576_v50 = vmul.f32 0.6931472, %v4625_v24 }
0x1f08   :  { %v3578_v59 = vmul.f32 0.6931472, %v4627_v48  ;;  %v2427_v48 = vsub.s32 2, %v4861_v2 }
0x1f09   :  { %v3579_v34 = vadd.f32 %v3576_v50, %v3547_v35 }
0x1f0a   :  { %v3580_v8 = vadd.f32 %v3578_v59, %v3554_v28 }
0x1f0b   :  { %v3581_v40 = vadd.f32 %v3579_v34, %v5523_v61 }
0x1f0c   :  { %v3582_v3 = vadd.f32 %v3580_v8, %v5521_v17 }
0x1f0d   :  { %v3589_v62 = vrot.slane %v3581_v40, 6 }
0x1f0e   :  { %v3590_v42 = vrot.slane %v3582_v3, 5 }
0x1f10   :  { %v3591_v60 = vsel %vm458_vm5, %v3590_v42, %v3589_v62  ;;  %v2434_v42 = vsub.s32 3, %v4861_v2 }
0x1f11   :  { %v5881_v15 = vsel %vm3586_vm6, %v3591_v60, %v5849_v46  ;;  %vm2346_vm6 = vcmask 7168  }
0x1f12   :  { %v3660_v26 = vrot.slane %v5881_v15, %v4865_v4  ;;  %v3667_v52 = vrot.slane %v5881_v15, %v4868_v5 }
0x1f14   :  { %3662 = vbcast.lane.b32.xlu0 %v3660_v26, 256 }
0x1f4d   :  { %v3882_v20 = vpop.xlane.xlu1 %3881  ;;  %v3880_v31 = vpop.xlane.xlu0 %3879 }
0x1f4e   :  { %v3884_v7 = vcvt.f32.s32 %v3882_v20  ;;  %v3883_v22 = vcvt.f32.s32 %v3880_v31  ;;  %v2441_v31 = vsub.s32 4, %v4861_v2 }
0x1f50   :  { %v3885_v30 = vshll.u32 %v3884_v7, 16 }
0x1f51   :  { %v2345_v11 = vpop.permute.xlu1 %2344 }
0x1f52   :  { %v3886_v57 = vadd.s32 %v3885_v30, %v3883_v22  ;;  %v2347_v14 = vsel %vm2346_vm6, %v5866_v54, %v2345_v11 }
0x1f53   :  { %v2358_v29 = vrot.slane %v2347_v14, %v4868_v5 }
0x1f54   :  { %v5887_v36 = vsel %vm3887_vm12, %v3886_v57, %v5857_v21 }
0x1f55   :  { %vm3889_vm13 = vcmp.eq.s32.totalorder %v4914_v23, %v5887_v36 }
0x1f56   :  { %v3891_v37 = vsel %vm3889_vm13, %v5663_v58, 0  ;;  %v2351_v58 = vrot.slane %v2347_v14, %v4865_v4 }
0x1f57   :  { %v5893_v46 = vsel %vm2318_vm9, %v3891_v37, 0 }
0x1f58   :  { %v3894_v35 = vshrl.u32 %v5893_v46, 16 }
0x1f5a   :  { %v3896_v28 = vcvt.s32.f32 %v3894_v35 }
0x1f5c   :  { %3899 = vadd.xlane.f32.xlu1 %v3896_v28 }
0x1f6d   :  { %3669 = vbcast.lane.b32.xlu1 %v3667_v52, 256 }
0x1f71   :  { %2360 = vbcast.lane.b32.xlu1 %v2358_v29, 256 }
0x1f75   :  { %2353 = vbcast.lane.b32.xlu1 %v2351_v58, 256 }
0x1f86   :  { %v3663_v32 = vpop.permute.xlu0 %3662 }
0x1f87   :  { %v3671_v9 = vadd.f32 %v5801_v12, %v3663_v32 }
0x1f89   :  { %v3673_v55 = vsel %vm2389_vm10, %v3671_v9, -inf }
0x1f8a   :  { %v3674_v19 = vrot.slane %v3673_v55, 4 }
0x1f8c   :  { %v3675_v18 = vmax.f32 %v3673_v55, %v3674_v19 }
0x1f8e   :  { %v3676_v43 = vrot.slane %v3675_v18, 2 }
0x1f90   :  { %v3677_v47 = vmax.f32 %v3675_v18, %v3676_v43 }
0x1f92   :  { %v3678_v27 = vrot.slane %v3677_v47, 1 }
0x1f94   :  { %v5904_v51 = vmax.f32 %v3677_v47, %v3678_v27 }
0x1f96   :  { %v3687_v39 = vsub.f32 %v3671_v9, %v5904_v51 }
0x1f98   :  { %v3689_v6 = vmul.f32 1.442695, %v3687_v39 }
0x1f9a   :  { %4628 = vpow2.f32 %v3689_v6 }
0x1fa4   :  { %v4629_v50 = vpop.eup %4628 }
0x1fa5   :  { %v3693_v60 = vsel %vm2389_vm10, %v4629_v50, 0.0 }
0x1fa6   :  { %v3694_v7 = vrot.slane %v3693_v60, 4 }
0x1fa8   :  { %v3695_v28 = vadd.f32 %v3694_v7, %v3693_v60 }
0x1faa   :  { %v3696_v58 = vrot.slane %v3695_v28, 2 }
0x1fac   :  { %v3697_v55 = vadd.f32 %v3696_v58, %v3695_v28 }
0x1fae   :  { %v3698_v19 = vrot.slane %v3697_v55, 1 }
0x1fb0   :  { %v3699_v47 = vadd.f32 %v3698_v19, %v3697_v55 }
0x1fe9   :  { %v5907_v56 = vpop.xlane.xlu1 %3899 }
0x1fed   :  { %v3670_v16 = vpop.permute.xlu1 %3669 }
0x1fee   :  { %v3672_v44 = vadd.f32 %v5801_v12, %v3670_v16 }
0x1ff0   :  { %v3680_v49 = vsel %vm2389_vm10, %v3672_v44, -inf }
0x1ff1   :  { %v3681_v25 = vrot.slane %v3680_v49, 4  ;;  %v2361_v24 = vpop.permute.xlu1 %2360 }
0x1ff2   :  { %vm2363_vm0 = vcmp.eq.s32.totalorder %v4914_v23, %v2361_v24  ;;  %v3893_v24 = vand.u32 65535, %v5893_v46 }
0x1ff3   :  { %v3682_v59 = vmax.f32 %v3680_v49, %v3681_v25  ;;  %vm2366_vm8 = vmand %vm2363_vm0, %vm2364_vm15  ;;  %vm2769_vm0 = vcmask 1043459  }
0x1ff4   :  { %v5917_v34 = vsel %vm2366_vm8, 1.0, %v6212_v1  ;;  %v3895_v50 = vcvt.s32.f32 %v3893_v24  ;;  %vm2772_vm8 = vcmask 1044484  }
0x1ff5   :  { %v3683_v8 = vrot.slane %v3682_v59, 2  ;;  %v2354_v40 = vpop.permute.xlu1 %2353  ;;  %v2484_v3 = vrot.slane %v5917_v34, %v2427_v48  ;;  %v2477_v62 = vrot.slane %v5917_v34, %v4868_v5  ;;  %v2491_v22 = vrot.slane %v5917_v34, %v2434_v42 }
0x1ff6   :  { %vm2362_vm2 = vcmp.eq.s32.totalorder %v4914_v23, %v2354_v40  ;;  %v2498_v14 = vrot.slane %v5917_v34, %v2441_v31  ;;  %v2470_v52 = vrot.slane %v5917_v34, %v4865_v4 }
0x1ff7   :  { %v3684_v26 = vmax.f32 %v3682_v59, %v3683_v8  ;;  %vm2365_vm1 = vmand %vm2362_vm2, %vm2364_vm15  ;;  %2486 = vbcast.lane.b32.xlu1 %v2484_v3, 256  ;;  %2479 = vbcast.lane.b32.xlu0 %v2477_v62, 256  ;;  %vm2766_vm15 = vcmask 1042434   ;;  %vm2775_vm2 = vcmask 1045509  }
0x1ff8   :  { %v5928_v20 = vsel %vm2365_vm1, 1.0, %v6212_v1  ;;  %vm2778_vm1 = vcmask 1046534  }
0x1ff9   :  { %v3685_v30 = vrot.slane %v3684_v26, 1  ;;  %v2421_v57 = vrot.slane %v5928_v20, %v4868_v5  ;;  %v2442_v37 = vrot.slane %v5928_v20, %v2441_v31  ;;  %v2435_v32 = vrot.slane %v5928_v20, %v2434_v42 }
0x1ffa   :  { %v2428_v9 = vrot.slane %v5928_v20, %v2427_v48 }
0x1ffb   :  { %v3686_v35 = vmax.f32 %v3684_v26, %v3685_v30  ;;  %2493 = vbcast.lane.b32.xlu1 %v2491_v22, 256  ;;  %2423 = vbcast.lane.b32.xlu0 %v2421_v57, 256  ;;  %v2414_v30 = vrot.slane %v5928_v20, %v4865_v4  ;;  %v2448_v22 = vsub.s32 5, %v4861_v2 }
0x1ffd   :  { %v3688_v11 = vsub.f32 %v3672_v44, %v3686_v35  ;;  %v2505_v57 = vrot.slane %v5917_v34, %v2448_v22 }
0x1fff   :  { %v3691_v29 = vmul.f32 1.442695, %v3688_v11  ;;  %2500 = vbcast.lane.b32.xlu1 %v2498_v14, 256  ;;  %2472 = vbcast.lane.b32.xlu0 %v2470_v52, 256 }
0x2001   :  { %4630 = vpow2.f32 %v3691_v29 }
0x2002   :  { %4632 = vlog2.f32 %v3699_v47 }
0x2003   :  { %2437 = vbcast.lane.b32.xlu1 %v2435_v32, 256  ;;  %2430 = vbcast.lane.b32.xlu0 %v2428_v9, 256  ;;  %v3902_v32 = vcvt.f32.s32 %v5907_v56 }
0x2005   :  { %v3903_v55 = vshll.u32 %v3902_v32, 16 }
0x200b   :  { %v4631_v18 = vpop.eup %4630 }
0x200c   :  { %v3700_v43 = vsel %vm2389_vm10, %v4631_v18, 0.0  ;;  %v4633_v25 = vpop.eup %4632 }
0x200d   :  { %v3701_v27 = vrot.slane %v3700_v43, 4  ;;  %v3708_v48 = vmul.f32 0.6931472, %v4633_v25 }
0x200f   :  { %v3702_v39 = vadd.f32 %v3701_v27, %v3700_v43  ;;  %v3711_v59 = vadd.f32 %v3708_v48, %v5904_v51 }
0x2011   :  { %v3703_v6 = vrot.slane %v3702_v39, 2  ;;  %v3713_v3 = vadd.f32 %v3711_v59, %v5523_v61 }
0x2013   :  { %v3704_v16 = vadd.f32 %v3703_v6, %v3702_v39  ;;  %v3721_v60 = vrot.slane %v3713_v3, 7  ;;  %v2376_v39 = vrot.slane %v5794_v10, %v4865_v4  ;;  %v2334_v6 = vrot.slane %v5866_v54, %v4868_v5 }
0x2015   :  { %v3705_v44 = vrot.slane %v3704_v16, 1 }
0x2017   :  { %v3706_v49 = vadd.f32 %v3705_v44, %v3704_v16  ;;  %v2327_v16 = vrot.slane %v5866_v54, %v4865_v4 }
0x2019   :  { %4634 = vlog2.f32 %v3706_v49 }
0x2022   :  { %3897 = vadd.xlane.f32.xlu0 %v3895_v50 }
0x2023   :  { %v4635_v8 = vpop.eup %4634 }
0x2024   :  { %v3710_v40 = vmul.f32 0.6931472, %v4635_v8 }
0x2026   :  { %v3712_v62 = vadd.f32 %v3710_v40, %v3686_v35  ;;  %v2455_v35 = vsub.s32 6, %v4861_v2 }
0x2028   :  { %v3714_v42 = vadd.f32 %v3712_v62, %v5521_v17  ;;  %v2512_v33 = vrot.slane %v5917_v34, %v2455_v35  ;;  %v2456_v11 = vrot.slane %v5928_v20, %v2455_v35 }
0x202a   :  { %v3722_v26 = vrot.slane %v3714_v42, 6 }
0x202c   :  { %v3723_v31 = vsel %vm458_vm5, %v3722_v26, %v3721_v60 }
0x202d   :  { %v3725_v46 = vsel %vm3718_vm3, %v3723_v31, %v5881_v15  ;;  %v2462_v15 = vsub.s32 7, %v4861_v2  ;;  %vm3905_vm3 = vcmp.ge.s32.totalorder %v5829_v41, 4 }
0x202e   :  { %v5950_v7 = vadd.f32 %v5756_v0, %v3725_v46  ;;  %v2449_v0 = vrot.slane %v5928_v20, %v2448_v22 }
0x202f   :  { %v2519_v28 = vrot.slane %v5917_v34, %v2462_v15  ;;  %v2463_v14 = vrot.slane %v5928_v20, %v2462_v15 }
0x2030   :  { %v3790_v51 = vsel %vm2318_vm9, %v5950_v7, -inf }
0x2031   :  { %3791 = vmax.xlane.f32.xlu1 %v3790_v51 }
0x2038   :  { %2416 = vbcast.lane.b32.xlu0 %v2414_v30, 256 }
0x203c   :  { %2507 = vbcast.lane.b32.xlu0 %v2505_v57, 256 }
0x2040   :  { %2444 = vbcast.lane.b32.xlu0 %v2442_v37, 256 }
0x2044   :  { %2514 = vbcast.lane.b32.xlu0 %v2512_v33, 256 }
0x2048   :  { %2451 = vbcast.lane.b32.xlu0 %v2449_v0, 256 }
0x204c   :  { %2521 = vbcast.lane.b32.xlu0 %v2519_v28, 256 }
0x2050   :  { %2458 = vbcast.lane.b32.xlu0 %v2456_v11, 256 }
0x2054   :  { %2465 = vbcast.lane.b32.xlu0 %v2463_v14, 256 }
0x2069   :  { %v2480_v52 = vpop.permute.xlu0 %2479  ;;  %v2487_v48 = vpop.permute.xlu1 %2486 }
0x206a   :  { %v2533_v59 = vmul.f32 %v5801_v12, %v2487_v48  ;;  %v2532_v40 = vmul.f32 %v5801_v12, %v2480_v52  ;;  %v5997_v52 = vsel %vm2837_vm4, 1.0, %v6212_v1 }
0x206c   :  { %v2609_v3 = vsel %vm2389_vm10, %v2533_v59, 0.0  ;;  %v2602_v42 = vsel %vm2389_vm10, %v2532_v40, 0.0 }
0x206d   :  { %v2424_v29 = vpop.permute.xlu0 %2423  ;;  %v2494_v8 = vpop.permute.xlu1 %2493  ;;  %v2610_v60 = vrot.slane %v2609_v3, 4  ;;  %v2603_v26 = vrot.slane %v2602_v42, 4 }
0x206e   :  { %v2534_v54 = vmul.f32 %v5801_v12, %v2494_v8  ;;  %v2524_v46 = vmul.f32 %v5801_v12, %v2424_v29 }
0x206f   :  { %v2611_v22 = vadd.f32 %v2610_v60, %v2609_v3  ;;  %v2604_v33 = vadd.f32 %v2603_v26, %v2602_v42 }
0x2070   :  { %v2616_v31 = vsel %vm2389_vm10, %v2534_v54, 0.0  ;;  %v2546_v0 = vsel %vm2389_vm10, %v2524_v46, 0.0 }
0x2071   :  { %v2473_v37 = vpop.permute.xlu0 %2472  ;;  %v2617_v57 = vrot.slane %v2616_v31, 4  ;;  %v2612_v11 = vrot.slane %v2611_v22, 2  ;;  %v2547_v32 = vrot.slane %v2546_v0, 4 }
0x2072   :  { %v2531_v28 = vmul.f32 %v5801_v12, %v2473_v37 }
0x2073   :  { %v2618_v29 = vadd.f32 %v2617_v57, %v2616_v31 }
0x2074   :  { %v2595_v37 = vsel %vm2389_vm10, %v2531_v28, 0.0 }
0x2075   :  { %v2431_v58 = vpop.permute.xlu0 %2430  ;;  %v2596_v59 = vrot.slane %v2595_v37, 4 }
0x20af   :  { %v3898_v9 = vpop.xlane.xlu0 %3897 }
0x20b0   :  { %v3901_v19 = vcvt.f32.s32 %v3898_v9  ;;  %v2525_v9 = vmul.f32 %v5801_v12, %v2431_v58 }
0x20b2   :  { %v3904_v2 = vadd.s32 %v3903_v55, %v3901_v19 }
0x20b3   :  { %v2417_v44 = vpop.permute.xlu0 %2416 }
0x20b4   :  { %v5968_v34 = vsel %vm3905_vm3, %v3904_v2, %v5887_v36  ;;  %v2523_v55 = vmul.f32 %v5801_v12, %v2417_v44  ;;  %v2605_v2 = vrot.slane %v2604_v33, 2  ;;  %v2548_v44 = vadd.f32 %v2547_v32, %v2546_v0 }
0x20b5   :  { %vm3907_vm14 = vcmp.eq.s32.totalorder %v4914_v23, %v5968_v34  ;;  %v2597_v0 = vadd.f32 %v2596_v59, %v2595_v37  ;;  %vm2781_vm3 = vcmask 1047559  }
0x20b6   :  { %v3909_v20 = vsel %vm3907_vm14, %v5641_v13, 0  ;;  %v2383_v13 = vrot.slane %v5794_v10, %v4868_v5  ;;  %v2501_v10 = vpop.permute.xlu1 %2500  ;;  %v2606_v60 = vadd.f32 %v2605_v2, %v2604_v33  ;;  %v2549_v26 = vrot.slane %v2548_v44, 2 }
0x20b7   :  { %v3910_v18 = vsel %vm2318_vm9, %v3909_v20, 0  ;;  %v2508_v49 = vpop.permute.xlu0 %2507  ;;  %v2535_v51 = vmul.f32 %v5801_v12, %v2501_v10  ;;  %vm3941_vm14 = vcmp.ge.s32.totalorder %v5829_v41, 2 }
0x20b8   :  { %v3912_v43 = vshrl.u32 %v3910_v18, 16  ;;  %v3911_v47 = vand.u32 65535, %v3910_v18  ;;  %v2536_v18 = vmul.f32 %v5801_v12, %v2508_v49  ;;  %v2553_v49 = vsel %vm2389_vm10, %v2525_v9, 0.0 }
0x20b9   :  { %v2623_v15 = vsel %vm2389_vm10, %v2535_v51, 0.0 }
0x20ba   :  { %v3914_v27 = vcvt.s32.f32 %v3912_v43  ;;  %v3913_v56 = vcvt.s32.f32 %v3911_v47  ;;  %v2438_v35 = vpop.permute.xlu1 %2437  ;;  %v2624_v20 = vrot.slane %v2623_v15, 4 }
0x20bb   :  { %v2445_v25 = vpop.permute.xlu0 %2444  ;;  %v2526_v14 = vmul.f32 %v5801_v12, %v2438_v35 }
0x20bc   :  { %3917 = vadd.xlane.f32.xlu0 %v3914_v27  ;;  %3915 = vadd.xlane.f32.xlu1 %v3913_v56  ;;  %v2527_v43 = vmul.f32 %v5801_v12, %v2445_v25  ;;  %v2539_v25 = vsel %vm2389_vm10, %v2523_v55, 0.0  ;;  %v2625_v48 = vadd.f32 %v2624_v20, %v2623_v15  ;;  %v2607_v55 = vrot.slane %v2606_v60, 1 }
0x20bd   :  { %v2560_v58 = vsel %vm2389_vm10, %v2526_v14, 0.0  ;;  %v2540_v54 = vrot.slane %v2539_v25, 4 }
0x20be   :  { %v2561_v8 = vrot.slane %v2560_v58, 4  ;;  %v6019_v2 = vpop.xlane.xlu1 %3791 }
0x20bf   :  { %v2515_v24 = vpop.permute.xlu0 %2514  ;;  %v2541_v9 = vadd.f32 %v2540_v54, %v2539_v25 }
0x20c0   :  { %v2537_v47 = vmul.f32 %v5801_v12, %v2515_v24  ;;  %v2630_v24 = vsel %vm2389_vm10, %v2536_v18, 0.0  ;;  %v2562_v14 = vadd.f32 %v2561_v8, %v2560_v58 }
0x20c1   :  { %v2631_v31 = vrot.slane %v2630_v24, 4 }
0x20c2   :  { %v2637_v40 = vsel %vm2389_vm10, %v2537_v47, 0.0 }
0x20c3   :  { %v2452_v50 = vpop.permute.xlu0 %2451  ;;  %v2632_v20 = vadd.f32 %v2631_v31, %v2630_v24 }
0x20c4   :  { %v2528_v27 = vmul.f32 %v5801_v12, %v2452_v50  ;;  %v2567_v50 = vsel %vm2389_vm10, %v2527_v43, 0.0 }
0x20c5   :  { %v2568_v46 = vrot.slane %v2567_v50, 4  ;;  %v2633_v59 = vrot.slane %v2632_v20, 2 }
0x20c6   :  { %v2574_v3 = vsel %vm2389_vm10, %v2528_v27, 0.0 }
0x20c7   :  { %v2522_v62 = vpop.permute.xlu0 %2521  ;;  %v2569_v18 = vadd.f32 %v2568_v46, %v2567_v50 }
0x20c8   :  { %v2538_v56 = vmul.f32 %v5801_v12, %v2522_v62 }
0x20c9   :  { %v2570_v24 = vrot.slane %v2569_v18, 2 }
0x20ca   :  { %v2644_v62 = vsel %vm2389_vm10, %v2538_v56, 0.0  ;;  %v2598_v56 = vrot.slane %v2597_v0, 2 }
0x20cb   :  { %v2459_v30 = vpop.permute.xlu0 %2458  ;;  %v2645_v57 = vrot.slane %v2644_v62, 4 }
0x20cd   :  { %2378 = vbcast.lane.b32.xlu1 %v2376_v39, 256  ;;  %v2613_v39 = vadd.f32 %v2612_v11, %v2611_v22  ;;  %v2575_v22 = vrot.slane %v2574_v3, 4  ;;  %v2626_v11 = vrot.slane %v2625_v48, 2  ;;  %v2646_v47 = vadd.f32 %v2645_v57, %v2644_v62 }
0x20cf   :  { %v2466_v19 = vpop.permute.xlu0 %2465  ;;  %v2614_v35 = vrot.slane %v2613_v39, 1 }
0x20d1   :  { %v6021_v27 = vadd.f32 %v2614_v35, %v2613_v39  ;;  %v2647_v39 = vrot.slane %v2646_v47, 2 }
0x20d2   :  { %2336 = vbcast.lane.b32.xlu0 %v2334_v6, 256  ;;  %v2529_v6 = vmul.f32 %v5801_v12, %v2459_v30  ;;  %v2638_v30 = vrot.slane %v2637_v40, 4 }
0x20d4   :  { %v2581_v42 = vsel %vm2389_vm10, %v2529_v6, 0.0  ;;  %v2639_v43 = vadd.f32 %v2638_v30, %v2637_v40  ;;  %v2571_v30 = vadd.f32 %v2570_v24, %v2569_v18 }
0x20d5   :  { %v2582_v15 = vrot.slane %v2581_v42, 4 }
0x20d6   :  { %2329 = vbcast.lane.b32.xlu0 %v2327_v16, 256  ;;  %v2530_v16 = vmul.f32 %v5801_v12, %v2466_v19  ;;  %v2554_v12 = vrot.slane %v2553_v49, 4  ;;  %v2550_v19 = vadd.f32 %v2549_v26, %v2548_v44  ;;  %v6024_v44 = vadd.f32 %v2607_v55, %v2606_v60 }
0x20d7   :  { %v2583_v37 = vadd.f32 %v2582_v15, %v2581_v42  ;;  %v2640_v8 = vrot.slane %v2639_v43, 2  ;;  %v2634_v60 = vadd.f32 %v2633_v59, %v2632_v20 }
0x20d8   :  { %v2588_v10 = vsel %vm2389_vm10, %v2530_v16, 0.0  ;;  %v2555_v32 = vadd.f32 %v2554_v12, %v2553_v49  ;;  %v2627_v16 = vadd.f32 %v2626_v11, %v2625_v48  ;;  %v2542_v49 = vrot.slane %v2541_v9, 2 }
0x20d9   :  { %v2589_v28 = vrot.slane %v2588_v10, 4  ;;  %v2551_v25 = vrot.slane %v2550_v19, 1  ;;  %v2599_v12 = vadd.f32 %v2598_v56, %v2597_v0  ;;  %v2584_v54 = vrot.slane %v2583_v37, 2 }
0x20da   :  { %2385 = vbcast.lane.b32.xlu0 %v2383_v13, 256  ;;  %v2619_v13 = vrot.slane %v2618_v29, 2  ;;  %v2556_v58 = vrot.slane %v2555_v32, 2  ;;  %v2543_v46 = vadd.f32 %v2542_v49, %v2541_v9  ;;  %v2572_v9 = vrot.slane %v2571_v30, 1 }
0x20db   :  { %v2590_v6 = vadd.f32 %v2589_v28, %v2588_v10  ;;  %v2628_v10 = vrot.slane %v2627_v16, 1  ;;  %v2552_v35 = vadd.f32 %v2551_v25, %v2550_v19  ;;  %v2648_v28 = vadd.f32 %v2647_v39, %v2646_v47 }
0x20dc   :  { %v2620_v51 = vadd.f32 %v2619_v13, %v2618_v29  ;;  %v2576_v29 = vadd.f32 %v2575_v22, %v2574_v3  ;;  %v2563_v13 = vrot.slane %v2562_v14, 2  ;;  %v2557_v31 = vadd.f32 %v2556_v58, %v2555_v32 }
0x20dd   :  { %v2591_v48 = vrot.slane %v2590_v6, 2  ;;  %v2600_v55 = vrot.slane %v2599_v12, 1  ;;  %v6028_v56 = vadd.f32 %v2628_v10, %v2627_v16  ;;  %v2635_v32 = vrot.slane %v2634_v60, 1 }
0x20de   :  { %v2621_v33 = vrot.slane %v2620_v51, 1  ;;  %v2577_v40 = vrot.slane %v2576_v29, 2  ;;  %v2564_v26 = vadd.f32 %v2563_v13, %v2562_v14  ;;  %v2558_v38 = vrot.slane %v2557_v31, 1 }
0x20df   :  { %v2592_v1 = vadd.f32 %v2591_v48, %v2590_v6  ;;  %v2544_v14 = vrot.slane %v2543_v46, 1  ;;  %v6216_v6 = vmov 0.0   ;;  %v2601_v13 = vadd.f32 %v2600_v55, %v2599_v12 }
0x20e0   :  { %v6026_v50 = vadd.f32 %v2621_v33, %v2620_v51  ;;  %v2641_v51 = vadd.f32 %v2640_v8, %v2639_v43  ;;  %v2578_v15 = vadd.f32 %v2577_v40, %v2576_v29  ;;  %v2585_v33 = vadd.f32 %v2584_v54, %v2583_v37 }
0x20e1   :  { %v2649_v43 = vrot.slane %v2648_v28, 1  ;;  %v2593_v37 = vrot.slane %v2592_v1, 1  ;;  %v2559_v49 = vadd.f32 %v2558_v38, %v2557_v31  ;;  %v2545_v59 = vadd.f32 %v2544_v14, %v2543_v46 }
0x20e2   :  { %v2642_v20 = vrot.slane %v2641_v51, 1  ;;  %v2579_v18 = vrot.slane %v2578_v15, 1  ;;  %v2586_v47 = vrot.slane %v2585_v33, 1  ;;  %v6045_v24 = vadd.f32 %v2635_v32, %v2634_v60 }
0x20e3   :  { %v2573_v8 = vadd.f32 %v2572_v9, %v2571_v30  ;;  %v2594_v10 = vadd.f32 %v2593_v37, %v2592_v1 }
0x20e4   :  { %v2580_v54 = vadd.f32 %v2579_v18, %v2578_v15  ;;  %v2587_v38 = vadd.f32 %v2586_v47, %v2585_v33 }
0x2149   :  { %v3916_v3 = vpop.xlane.xlu1 %3915  ;;  %v3918_v62 = vpop.xlane.xlu0 %3917 }
0x214a   :  { %v3920_v42 = vcvt.f32.s32 %v3918_v62  ;;  %v3919_v22 = vcvt.f32.s32 %v3916_v3  ;;  %v2565_v62 = vrot.slane %v2564_v26, 1  ;;  %v6050_v3 = vadd.f32 %v2642_v20, %v2641_v51 }
0x214c   :  { %v3921_v57 = vshll.u32 %v3920_v42, 16  ;;  %v2566_v58 = vadd.f32 %v2565_v62, %v2564_v26  ;;  %v6054_v42 = vadd.f32 %v2649_v43, %v2648_v28 }
0x214d   :  { %v2337_v11 = vpop.permute.xlu0 %2336  ;;  %v6047_v40 = vpop.permute.xlu1 %2378 }
0x214e   :  { %v3922_v0 = vadd.s32 %v3921_v57, %v3919_v22  ;;  %vm2339_vm11 = vcmp.eq.s32.totalorder %v4914_v23, %v2337_v11  ;;  %v2701_v60 = vrot.slane %v6047_v40, 1  ;;  %v2702_v30 = vrot.slane %v6047_v40, 2 }
0x214f   :  { %v6039_v16 = vsel %vm2339_vm11, 1.0, %v6216_v6  ;;  %v2703_v22 = vrot.slane %v6047_v40, 3  ;;  %v2704_v57 = vrot.slane %v6047_v40, 4  ;;  %v2705_v1 = vrot.slane %v6047_v40, 5 }
0x2150   :  { %v6034_v19 = vsel %vm3923_vm7, %v3922_v0, %v5968_v34  ;;  %v2660_v48 = vrot.slane %v6039_v16, 1  ;;  %v2661_v12 = vrot.slane %v6039_v16, 2  ;;  %v2662_v51 = vrot.slane %v6039_v16, 3 }
0x2151   :  { %v2330_v29 = vpop.permute.xlu0 %2329  ;;  %vm3925_vm12 = vcmp.eq.s32.totalorder %v4914_v23, %v6034_v19  ;;  %v2691_v28 = vmul.f32 %v6039_v16, %v2601_v13  ;;  %vm3962_vm7 = vcmask 15360   ;;  %vm3964_vm11 = vcmask 23552  }
0x2152   :  { %vm2338_vm13 = vcmp.eq.s32.totalorder %v4914_v23, %v2330_v29  ;;  %v3927_v39 = vsel %vm3925_vm12, %v5619_v45, 0  ;;  %v2692_v11 = vmul.f32 %v2660_v48, %v6024_v44  ;;  %v2693_v55 = vmul.f32 %v2661_v12, %v6021_v27 }
0x2153   :  { %v6043_v25 = vsel %vm2338_vm13, 1.0, %v6216_v6  ;;  %v3928_v45 = vsel %vm2318_vm9, %v3927_v39, 0  ;;  %v2694_v43 = vmul.f32 %v2662_v51, %v6026_v50  ;;  %v2663_v6 = vrot.slane %v6039_v16, 4 }
0x2154   :  { %v2653_v26 = vrot.slane %v6043_v25, 1  ;;  %v2654_v31 = vrot.slane %v6043_v25, 2  ;;  %v2655_v46 = vrot.slane %v6043_v25, 3  ;;  %v2683_v33 = vmul.f32 %v6043_v25, %v2545_v59 }
0x2155   :  { %v6065_v15 = vpop.permute.xlu0 %2385  ;;  %v3930_v62 = vshrl.u32 %v3928_v45, 16  ;;  %v3929_v14 = vand.u32 65535, %v3928_v45  ;;  %v2656_v18 = vrot.slane %v6043_v25, 4  ;;  %v2657_v44 = vrot.slane %v6043_v25, 5 }
0x2156   :  { %v2684_v0 = vmul.f32 %v2653_v26, %v2552_v35  ;;  %v2685_v32 = vmul.f32 %v2654_v31, %v2559_v49  ;;  %v2686_v9 = vmul.f32 %v2655_v46, %v2566_v58  ;;  %v2708_v20 = vrot.slane %v6065_v15, 1 }
0x2157   :  { %v2709_v29 = vrot.slane %v6065_v15, 2  ;;  %v3932_v47 = vcvt.s32.f32 %v3930_v62  ;;  %v3931_v37 = vcvt.s32.f32 %v3929_v14  ;;  %v2710_v27 = vrot.slane %v6065_v15, 3 }
0x2158   :  { %v2658_v35 = vrot.slane %v6043_v25, 6  ;;  %v2731_v13 = vmul.f32 %v2683_v33, %v6047_v40  ;;  %v2732_v58 = vmul.f32 %v2701_v60, %v2684_v0  ;;  %v2711_v49 = vrot.slane %v6065_v15, 4 }
0x2159   :  { %3935 = vadd.xlane.f32.xlu0 %v3932_v47  ;;  %3933 = vadd.xlane.f32.xlu1 %v3931_v37  ;;  %v2659_v50 = vrot.slane %v6043_v25, 7  ;;  %v2733_v59 = vmul.f32 %v2702_v30, %v2685_v32  ;;  %v2734_v39 = vmul.f32 %v2703_v22, %v2686_v9  ;;  %v2740_v48 = vmul.f32 %v2708_v20, %v2692_v11 }
0x215a   :  { %v2687_v12 = vmul.f32 %v2656_v18, %v2573_v8  ;;  %v2712_v26 = vrot.slane %v6065_v15, 5  ;;  %v2739_v31 = vmul.f32 %v2691_v28, %v6065_v15  ;;  %v2741_v46 = vmul.f32 %v2709_v29, %v2693_v55 }
0x215b   :  { %v2688_v45 = vmul.f32 %v2657_v44, %v2580_v54  ;;  %v2742_v60 = vmul.f32 %v2710_v27, %v2694_v43  ;;  %v2664_v51 = vrot.slane %v6039_v16, 5  ;;  %v2665_v33 = vrot.slane %v6039_v16, 6 }
0x215c   :  { %v2689_v0 = vmul.f32 %v2658_v35, %v2587_v38  ;;  %v2763_v62 = vrot.slane %v2732_v58, 7  ;;  %v2690_v30 = vmul.f32 %v2659_v50, %v2594_v10  ;;  %v2706_v22 = vrot.slane %v6047_v40, 6 }
0x215d   :  { %v2707_v8 = vrot.slane %v6047_v40, 7  ;;  %v2765_v11 = vrot.slane %v2733_v59, 6  ;;  %v2783_v14 = vrot.slane %v2740_v48, 7  ;;  %v2666_v28 = vrot.slane %v6039_v16, 7 }
0x215e   :  { %v2735_v55 = vmul.f32 %v2704_v57, %v2687_v12  ;;  %v2785_v54 = vrot.slane %v2741_v46, 6  ;;  %v2695_v32 = vmul.f32 %v2663_v6, %v6028_v56  ;;  %v2713_v9 = vrot.slane %v6065_v15, 6 }
0x215f   :  { %v2736_v20 = vmul.f32 %v2705_v1, %v2688_v45  ;;  %v2696_v38 = vmul.f32 %v2664_v51, %v6045_v24  ;;  %v2697_v18 = vmul.f32 %v2665_v33, %v6050_v3  ;;  %v2714_v10 = vrot.slane %v6065_v15, 7 }
0x2160   :  { %v2737_v43 = vmul.f32 %v2706_v22, %v2689_v0  ;;  %v2738_v29 = vmul.f32 %v2707_v8, %v2690_v30  ;;  %v2743_v47 = vmul.f32 %v2711_v49, %v2695_v32  ;;  %v2764_v37 = vsel %vm458_vm5, %v2763_v62, %v2731_v13 }
0x2161   :  { %v2768_v27 = vrot.slane %v2734_v39, 5  ;;  %v2698_v57 = vmul.f32 %v2666_v28, %v6054_v42  ;;  %v2744_v44 = vmul.f32 %v2712_v26, %v2696_v38  ;;  %v2767_v56 = vsel %vm2766_vm15, %v2765_v11, %v2764_v37 }
0x2162   :  { %v2771_v35 = vrot.slane %v2735_v55, 4  ;;  %v2787_v6 = vrot.slane %v2742_v60, 5  ;;  %v2745_v1 = vmul.f32 %v2713_v9, %v2697_v18  ;;  %v2774_v58 = vrot.slane %v2736_v20, 3 }
0x2163   :  { %v2770_v24 = vsel %vm2769_vm0, %v2768_v27, %v2767_v56  ;;  %v2746_v3 = vmul.f32 %v2714_v10, %v2698_v57  ;;  %v2777_v59 = vrot.slane %v2737_v43, 2  ;;  %v2784_v49 = vsel %vm458_vm5, %v2783_v14, %v2739_v31 }
0x2164   :  { %v2773_v50 = vsel %vm2772_vm8, %v2771_v35, %v2770_v24  ;;  %v2780_v39 = vrot.slane %v2738_v29, 1  ;;  %v2786_v42 = vsel %vm2766_vm15, %v2785_v54, %v2784_v49  ;;  %v2789_v48 = vrot.slane %v2743_v47, 4 }
0x2165   :  { %v2776_v13 = vsel %vm2775_vm2, %v2774_v58, %v2773_v50  ;;  %v2788_v26 = vsel %vm2769_vm0, %v2787_v6, %v2786_v42  ;;  %v2791_v46 = vrot.slane %v2744_v44, 3  ;;  %v2371_v45 = vmul.f32 %v6043_v25, %v5523_v61 }
0x2166   :  { %v2779_v12 = vsel %vm2778_vm1, %v2777_v59, %v2776_v13  ;;  %v2790_v51 = vsel %vm2772_vm8, %v2789_v48, %v2788_v26  ;;  %v2793_v33 = vrot.slane %v2745_v1, 2  ;;  %v2843_v31 = vrot.slane %v5997_v52, %v4865_v4  ;;  %v4646_v59 = vld [vmem:[%s6208_s10] ss:$0 sm:$0xff] }
0x2167   :  { %v2782_v60 = vsel %vm2781_vm3, %v2780_v39, %v2779_v12  ;;  %v2792_v0 = vsel %vm2775_vm2, %v2791_v46, %v2790_v51  ;;  %v2795_v62 = vrot.slane %v2746_v3, 1  ;;  %v2372_v22 = vmul.f32 %v6039_v16, %v5521_v17 }
0x2168   :  { %v2799_v30 = vsel %vm2389_vm10, %v2782_v60, 0.0  ;;  %v2794_v8 = vsel %vm2778_vm1, %v2793_v33, %v2792_v0  ;;  %v2387_v14 = vmul.f32 %v6047_v40, %v2371_v45  ;;  %v2850_v32 = vrot.slane %v5997_v52, %v4868_v5 }
0x2169   :  { %v2800_v11 = vrot.slane %v2799_v30, 4  ;;  %v2796_v61 = vsel %vm2781_vm3, %v2795_v62, %v2794_v8  ;;  %v2388_v28 = vmul.f32 %v6065_v15, %v2372_v22  ;;  %v3793_v5 = vsub.f32 %v5950_v7, %v6019_v2 }
0x216a   :  { %2845 = vbcast.lane.b32.xlu1 %v2843_v31, 256  ;;  %v2806_v4 = vsel %vm2389_vm10, %v2796_v61, 0.0  ;;  %v2390_v17 = vsel %vm2389_vm10, %v2387_v14, 0.0  ;;  %v2828_v49 = vmul.f32 %v4646_v59, %v6039_v16  ;;  %v2827_v39 = vmul.f32 %v4646_v59, %v6043_v25 }
0x216b   :  { %v2801_v55 = vadd.f32 %v2800_v11, %v2799_v30  ;;  %v2807_v54 = vrot.slane %v2806_v4, 4  ;;  %v2397_v38 = vsel %vm2389_vm10, %v2388_v28, 0.0  ;;  %v2391_v43 = vrot.slane %v2390_v17, 4 }
0x216c   :  { %v2398_v40 = vrot.slane %v2397_v38, 4  ;;  %v3794_v1 = vmul.f32 1.442695, %v3793_v5  ;;  %v2831_v42 = vrot.slane %v2828_v49, 7  ;;  %vm3966_vm12 = vcmask 31744  }
0x216d   :  { %v2802_v9 = vrot.slane %v2801_v55, 2  ;;  %v2808_v20 = vadd.f32 %v2807_v54, %v2806_v4  ;;  %v2392_v37 = vadd.f32 %v2391_v43, %v2390_v17  ;;  %vm3968_vm13 = vcmask 39936  }
0x216e   :  { %v2399_v27 = vadd.f32 %v2398_v40, %v2397_v38  ;;  %4636 = vpow2.f32 %v3794_v1  ;;  %v2832_v26 = vsel %vm458_vm5, %v2831_v42, %v2827_v39  ;;  %vm3970_vm15 = vcmask 48128  }
0x216f   :  { %2852 = vbcast.lane.b32.xlu0 %v2850_v32, 256  ;;  %v2803_v18 = vadd.f32 %v2802_v9, %v2801_v55  ;;  %v2809_v10 = vrot.slane %v2808_v20, 2  ;;  %v2393_v56 = vrot.slane %v2392_v37, 2  ;;  %v2834_v60 = vsel %vm2318_vm9, %v2832_v26, 0.0 }
0x2170   :  { %v2400_v35 = vrot.slane %v2399_v27, 2  ;;  %vm3812_vm0 = vcmask 0   ;;  %vm3972_vm8 = vcmask 56320  }
0x2171   :  { %v2810_v29 = vadd.f32 %v2809_v10, %v2808_v20  ;;  %v2804_v15 = vrot.slane %v2803_v18, 1  ;;  %v2394_v24 = vadd.f32 %v2393_v56, %v2392_v37 }
0x2172   :  { %v2401_v58 = vadd.f32 %v2400_v35, %v2399_v27 }
0x2173   :  { %v2811_v47 = vrot.slane %v2810_v29, 1  ;;  %v2805_v52 = vadd.f32 %v2804_v15, %v2803_v18  ;;  %v2395_v3 = vrot.slane %v2394_v24, 1  ;;  %v4647_v15 = vld [vmem:[%s6209_s11] ss:$0 sm:$0xff]  ;;  %s4762_s11 = smov [#allocation8]  }
0x2174   :  { %v2402_v50 = vrot.slane %v2401_v58, 1  ;;  %s3983_s4 = sshll.u32 %s4762_s11, 4  ;;  %s3984_s4 = int_to_ptr.vmem [resolvable:$true] %s3983_s4 }
0x2175   :  { %v2812_v57 = vadd.f32 %v2811_v47, %v2810_v29  ;;  %v2396_v13 = vadd.f32 %v2395_v3, %v2394_v24  ;;  %s4692_s18 = scalar_lea.vmem %s3984_s4, 16  ;;  %s4696_s19 = scalar_lea.vmem %s3984_s4, 32 }
0x2176   :  { %v2403_v7 = vadd.f32 %v2402_v50, %v2401_v58  ;;  %p4693_p2 = scmp.ne.s32.totalorder %s3984_s4, %s4692_s18  ;;  %p4697_p3 = scmp.lt.s32.totalorder %s3984_s4, %s3984_s4 }
0x2177   :  { %v2815_v44 = vrot.slane %v2812_v57, 7  ;;  %p4698_p4 = scmp.lt.s32.totalorder %s4696_s19, %s4692_s18 }
0x2178   :  { %v4637_v48 = vpop.eup %4636  ;;  %v2406_v12 = vsel %vm458_vm5, %v2403_v7, %v2396_v13 }
0x2179   :  { %v2816_v6 = vsel %vm458_vm5, %v2815_v44, %v2805_v52  ;;  %v3796_v46 = vsel %vm2318_vm9, %v4637_v48, 0.0  ;;  %v2408_v45 = vsel %vm2318_vm9, %v2406_v12, 0.0  ;;  %p4699_p5 = por %p4698_p4, %p4697_p3 }
0x217a   :  { %v2818_v51 = vsel %vm2318_vm9, %v2816_v6, 0.0 }
0x217b   :  { %p4700_p6 = pnand %p4699_p5, %p4693_p2 }
0x218e   :  { %3797 = vadd.xlane.f32.xlu0 %v3796_v46  ;;  %2409 = vadd.xlane.f32.xlu1 %v2408_v45 }
0x2192   :  { %2835 = vadd.xlane.f32.xlu0 %v2834_v60 }
0x2196   :  { %2819 = vadd.xlane.f32.xlu0 %v2818_v51 }
0x21e6   :  { %v3934_v33 = vpop.xlane.xlu1 %3933  ;;  %v3936_v31 = vpop.xlane.xlu0 %3935 }
0x21e7   :  { %v3938_v0 = vcvt.f32.s32 %v3936_v31  ;;  %v3937_v61 = vcvt.f32.s32 %v3934_v33 }
0x21e9   :  { %v3939_v62 = vshll.u32 %v3938_v0, 16 }
0x21ea   :  { %v2846_v30 = vpop.permute.xlu1 %2845  ;;  %v2853_v22 = vpop.permute.xlu0 %2852 }
0x21eb   :  { %v2854_v8 = vmul.f32 %v6043_v25, %v2846_v30  ;;  %v2855_v11 = vmul.f32 %v6039_v16, %v2853_v22  ;;  %v3940_v55 = vadd.s32 %v3939_v62, %v3937_v61 }
0x21ed   :  { %v2856_v14 = vsel %vm2389_vm10, %v2854_v8, 0.0  ;;  %v2863_v28 = vsel %vm2389_vm10, %v2855_v11, 0.0  ;;  %v3942_v20 = vsel %vm3941_vm14, %v3940_v55, %v6034_v19  ;;  %vm3959_vm10 = vcmp.ge.s32.totalorder %v5829_v41, 1 }
0x21ee   :  { %v2857_v4 = vrot.slane %v2856_v14, 4  ;;  %v2864_v54 = vrot.slane %v2863_v28, 4  ;;  %vm3943_vm4 = vcmp.eq.s32.totalorder %v4914_v23, %v3942_v20 }
0x21ef   :  { %v3945_v29 = vsel %vm3943_vm4, %v5586_v53, 0 }
0x21f0   :  { %v2858_v32 = vadd.f32 %v2857_v4, %v2856_v14  ;;  %v2865_v9 = vadd.f32 %v2864_v54, %v2863_v28  ;;  %v3946_v37 = vsel %vm2318_vm9, %v3945_v29, 0 }
0x21f1   :  { %v3948_v52 = vshrl.u32 %v3946_v37, 16  ;;  %v3947_v35 = vand.u32 65535, %v3946_v37 }
0x21f2   :  { %v2859_v17 = vrot.slane %v2858_v32, 2  ;;  %v2866_v38 = vrot.slane %v2865_v9, 2 }
0x21f3   :  { %v3950_v56 = vcvt.s32.f32 %v3948_v52  ;;  %v3949_v6 = vcvt.s32.f32 %v3947_v35 }
0x21f4   :  { %v2860_v18 = vadd.f32 %v2859_v17, %v2858_v32  ;;  %v2867_v25 = vadd.f32 %v2866_v38, %v2865_v9 }
0x21f6   :  { %v2861_v16 = vrot.slane %v2860_v18, 1  ;;  %v2868_v10 = vrot.slane %v2867_v25, 1 }
0x21f8   :  { %v2862_v43 = vadd.f32 %v2861_v16, %v2860_v18  ;;  %v2869_v40 = vadd.f32 %v2868_v10, %v2867_v25 }
0x21fa   :  { %v2877_v47 = vmul.f32 %v4647_v15, %v2869_v40  ;;  %v2876_v27 = vmul.f32 %v4647_v15, %v2862_v43 }
0x21fc   :  { %v2880_v57 = vrot.slane %v2877_v47, 7 }
0x21fe   :  { %v2881_v5 = vsel %vm458_vm5, %v2880_v57, %v2876_v27  ;;  %vm3803_vm5 = vcmask 1041408  }
0x21ff   :  { %v2883_v44 = vsel %vm2318_vm9, %v2881_v5, 0.0 }
0x2200   :  { %2884 = vadd.xlane.f32.xlu0 %v2883_v44 }
0x2204   :  { %3953 = vadd.xlane.f32.xlu0 %v3950_v56 }
0x2208   :  { %3951 = vadd.xlane.f32.xlu0 %v3949_v6 }
0x221b   :  { %v3798_v53 = vpop.xlane.xlu0 %3797  ;;  %v2410_v58 = vpop.xlane.xlu1 %2409 }
0x221c   :  { %4638 = vlog2.f32 %v3798_v53 }
0x221f   :  { %v2836_v1 = vpop.xlane.xlu0 %2835 }
0x2220   :  { %v2886_v59 = vadd.f32 %v2836_v1, %v2410_v58 }
0x2223   :  { %v2820_v3 = vpop.xlane.xlu0 %2819 }
0x2224   :  { %v2887_v49 = vadd.f32 %v2886_v59, %v2820_v3 }
0x2226   :  { %v4639_v24 = vpop.eup %4638 }
0x2227   :  { %v3800_v50 = vmul.f32 0.6931472, %v4639_v24 }
0x2229   :  { %v3801_v7 = vadd.f32 %v3800_v50, %v6019_v2 }
0x228d   :  { %v2885_v13 = vpop.xlane.xlu0 %2884 }
0x228e   :  { %v2888_v39 = vadd.f32 %v2887_v49, %v2885_v13 }
0x2290   :  { %v3802_v42 = vsub.f32 %v2888_v39, %v3801_v7 }
0x2291   :  { %v3954_v48 = vpop.xlane.xlu0 %3953 }
0x2292   :  { %v3804_v12 = vsel %vm3803_vm5, %v3802_v42, 0.0  ;;  %v3956_v26 = vcvt.f32.s32 %v3954_v48 }
0x2293   :  { %v3805_v46 = vrot.slane %v3804_v12, 4 }
0x2294   :  { %v3957_v51 = vshll.u32 %v3956_v26, 16 }
0x2295   :  { %v3806_v45 = vadd.f32 %v3805_v46, %v3804_v12  ;;  %v3952_v60 = vpop.xlane.xlu0 %3951 }
0x2296   :  { %v3955_v33 = vcvt.f32.s32 %v3952_v60 }
0x2297   :  { %v3807_v31 = vrot.slane %v3806_v45, 2 }
0x2298   :  { %v3958_v0 = vadd.s32 %v3957_v51, %v3955_v33 }
0x2299   :  { %v3808_v62 = vadd.f32 %v3807_v31, %v3806_v45 }
0x229a   :  { %v3960_v30 = vsel %vm3959_vm10, %v3958_v0, %v3942_v20 }
0x229b   :  { %v3961_v2 = vsel %vm2346_vm6, %v3960_v30, %v3942_v20  ;;  %v3809_v22 = vrot.slane %v3808_v62, 1  ;;  %vm3974_vm6 = vcmp.le.s32.totalorder %v4914_v23, %v5829_v41 }
0x229c   :  { %v3963_v8 = vsel %vm3962_vm7, %v3961_v2, %v6034_v19  ;;  %v6217_v19 = vld [vmem:[#allocation15_spill] sm:$0xff] }
0x229d   :  { %v3965_v11 = vsel %vm3964_vm11, %v3963_v8, %v5968_v34  ;;  %v3810_v61 = vadd.f32 %v3809_v22, %v3808_v62 }
0x229e   :  { %v3967_v14 = vsel %vm3966_vm12, %v3965_v11, %v5887_v36 }
0x229f   :  { %v3811_v28 = vmul.f32 0.5, %v3810_v61  ;;  %v3969_v55 = vsel %vm3968_vm13, %v3967_v14, %v5857_v21 }
0x22a0   :  { %v3971_v4 = vsel %vm3970_vm15, %v3969_v55, %v5833_v63 }
0x22a1   :  { %3813 = vst.msk [vmem:[#allocation8] sm:$0x1] %vm3812_vm0, %v3811_v28  ;;  %v3973_v54 = vsel %vm3972_vm8, %v3971_v4, %v6217_v19 }
0x22a2   :  { %4703 = shalt.err (!%p4700_p6)
}
0x22a3   :  { %s4704_s7 = scalar_lea.hbm %s6210_s12, 16 }
0x22a4   :  { %p4705_p7 = scmp.ne.s32.totalorder %s6210_s12, %s4704_s7  ;;  %p4708_p8 = scmp.lt.u32.totalorder %s4704_s7, %s6210_s12 }
0x22a6   :  { %p4710_p9 = pnand %p4708_p8, %p4705_p7 }
0x22a8   :  { %4713 = shalt.err (!%p4710_p9)
}
0x22a9   :  { %3986 = dma.vmem_to_hbm [thread:$0]  %s3984_s4, 16, %s6210_s12, [#allocation5]   ;;  %v3975_v63 = vsel %vm3974_vm6, %v3973_v54, 0 }
0x22aa   :  { %3976 = vst.msk [vmem:[#allocation9] sm:$0x3] %vm2318_vm9, %v3975_v63  ;;  %s4714_s27 = scalar_lea.vmem %s6163_s17, 32  ;;  %p4719_p11 = scmp.lt.s32.totalorder %s6163_s17, %s6163_s17 }
0x22ab   :  { %p4715_p10 = scmp.ne.s32.totalorder %s6163_s17, %s4714_s27  ;;  %p4720_p12 = scmp.lt.s32.totalorder %s4714_s27, %s4714_s27 }
0x22ad   :  { %p4721_p13 = por %p4720_p12, %p4719_p11 }
0x22af   :  { %p4722_p0 = pnand %p4721_p13, %p4715_p10 }
0x22b1   :  { %4725 = shalt.err (!%p4722_p0)
}
0x22b2   :  { %s4726_s30 = scalar_lea.hbm %s6211_s13, 32 }
0x22b3   :  { %p4727_p1 = scmp.ne.s32.totalorder %s6211_s13, %s4726_s30  ;;  %p4730_p2 = scmp.lt.u32.totalorder %s4726_s30, %s6211_s13 }
0x22b5   :  { %p4732_p3 = pnand %p4730_p2, %p4727_p1 }
0x22b7   :  { %4735 = shalt.err (!%p4732_p3)
}
0x22b8   :  { %3996 = dma.vmem_to_hbm [thread:$0]  %s6163_s17, 32, %s6211_s13, [#allocation10]  }
0x22b9   :  { %4740 = dma.done.wait [#allocation5], 16  }
0x22ba   :  { %4741 = vsyncadd [#allocation5], 4294967280 }
0x22bb   :  { %4742 = dma.done.wait [#allocation10], 32  }
0x22bc   :  { %4743 = vsyncadd [#allocation10], 4294967264 }
0x22bd   :  { %4003 = vsyncpa [#allocation4], 1 }
0x22be   :  { %4004 = vsyncpa [#allocation7], 1 }
0x22bf   :  { %4005 = vsyncpa [#allocation5], 1 }
0x22c0   :  { %4006 = vsyncpa [#allocation10], 1 }

</bundles_post_ra>
